<compile_context>
chip_gen: v7x
topology: tpu7x:2x2x1
jax: 0.10.0
libtpu: 0.0.40
codegen_flags: <defaults>
</compile_context>

<pallas_src>
import jax
import jax.numpy as jnp
from jax.experimental import pallas as pl
from jax.experimental.pallas import tpu as pltpu

BN_EPS = 1e-5
HALO = 16   # interior row offset in the pad scratch: 16-sublane aligned for both f32 and bf16


def _leaky_sinelu(v):
    s = jnp.sin(v) ** 2 + v
    return jnp.maximum(0.1 * s, s)


def _residual_kernel(x_ref, w1_ref, w2_ref, w3_ref, ws_ref,
                     g1_ref, b1_ref, g2_ref, b2_ref, g3_ref, b3_ref,
                     gs_ref, bs_ref, o_ref, pad_ref):
    B, L, Cin = x_ref.shape
    O = o_ref.shape[-1]
    N = B * L
    CS = pad_ref.shape[-1]          # max(Cin, O) channels in the shared pad scratch
    mdt = pad_ref.dtype             # MXU operand dtype (bf16 on v6e/v7x, f32 for exact mode)
    inv_n = 1.0 / N

    # Edge-only zeroing of the halo rows, done once.  Only the interior rows
    # [HALO, HALO + L) are rewritten by each conv; halos stay zero for all three
    # kernel widths (max pad = 3 < HALO).
    halo_zeros = jnp.zeros((B, HALO, CS), mdt)
    pad_ref[:, 0:HALO, :] = halo_zeros
    pad_ref[:, HALO + L:2 * HALO + L, :] = halo_zeros

    def conv_same(y_blc, w_ref):
        # "same"-padded cross-correlation == stride-1 ConvTranspose1d with flipped taps.
        # Per-tap accumulating matmuls (no im2col concat temporary).
        k, Ci, Co = w_ref.shape
        p = (k - 1) // 2
        pad_ref[:, HALO:HALO + L, :Ci] = y_blc.astype(mdt)   # aligned interior store

        def tap(i):
            r = HALO - p + i
            return pad_ref[:, r:r + L, :Ci].reshape(N, Ci)

        acc = jnp.dot(tap(0), w_ref[0], preferred_element_type=jnp.float32)
        for i in range(1, k):                                # static unroll, k in {3, 5, 7}
            acc = acc + jnp.dot(tap(i), w_ref[i], preferred_element_type=jnp.float32)
        return acc                                           # (N, Co) f32

    def bn(y, g_ref, b_ref):
        # training-mode BatchNorm1d: biased batch stats over N = B*L, f32 math.
        # TODO(synk): at production sizes fold the two reductions into one
        #             (ones(1,N) @ [y | y*y] on the otherwise idle MXU).
        mean = jnp.sum(y, axis=0, keepdims=True) * inv_n
        var = jnp.maximum(jnp.sum(y * y, axis=0, keepdims=True) * inv_n - mean * mean, 0.0)
        return (y - mean) * jax.lax.rsqrt(var + BN_EPS) * g_ref[...] + b_ref[...]

    x = x_ref[...]                                           # (B, L, Cin) f32

    y1 = _leaky_sinelu(bn(conv_same(x, w1_ref), g1_ref, b1_ref))
    y2 = _leaky_sinelu(bn(conv_same(y1.reshape(B, L, O), w2_ref), g2_ref, b2_ref))
    y3 = bn(conv_same(y2.reshape(B, L, O), w3_ref), g3_ref, b3_ref)

    # shortcut: 1x1 conv (pure channel matmul) + BN
    sc = bn(jnp.dot(x.reshape(N, Cin).astype(mdt), ws_ref[...],
                    preferred_element_type=jnp.float32), gs_ref, bs_ref)

    o_ref[...] = _leaky_sinelu(y3 + sc).reshape(B, L, O).astype(o_ref.dtype)


def residual_transpose_forward(x_ncl, params, mxu_dtype=jnp.bfloat16):
    """x_ncl: (B, Cin, L) as in PyTorch Conv1d; returns (B, O, L).

    mxu_dtype: dtype of the MXU matmul operands (activations + conv weights).
      jnp.bfloat16 -> production path for v6e/v7x (f32 accumulation, BN math stays f32).
      jnp.float32  -> exact mode, matches the f32 reference to ~1e-4.
    """
    B, Cin, L = x_ncl.shape
    O = params["w1"].shape[-1]
    CS = max(Cin, O)
    N = B * L

    # Real-channel NLC activation: no pad-to-128 in HBM.
    # TODO(synk): fuse this transpose (and the output one below) into the kernel at scale.
    x = jnp.transpose(x_ncl, (0, 2, 1)).astype(jnp.float32)          # (B, L, Cin)

    w1 = params["w1"].astype(mxu_dtype)                              # (3, Cin, O)
    w2 = params["w2"].astype(mxu_dtype)                              # (5, O, O)
    w3 = params["w3"].astype(mxu_dtype)                              # (7, O, O)
    ws = params["ws"].astype(mxu_dtype)                              # (Cin, O)

    args = (x, w1, w2, w3, ws,
            params["g1"], params["b1"], params["g2"], params["b2"],
            params["g3"], params["b3"], params["gs"], params["bs"])

    # Whole-array VMEM residency, no grid: a single invocation has nothing to pipeline,
    # so avoid the implicit double-buffering a grid-based BlockSpec would add.
    vmem_spec = pl.BlockSpec(memory_space=pltpu.MemorySpace.VMEM)

    wbytes = jnp.dtype(mxu_dtype).itemsize
    w_elems = 3 * Cin * O + 5 * O * O + 7 * O * O + Cin * O
    cost = pl.CostEstimate(
        flops=2 * N * w_elems,
        transcendentals=3 * N * O + 4 * O,                           # sin (x3) + rsqrt (x4 BN)
        bytes_accessed=4 * (N * Cin + N * O + 8 * O) + wbytes * w_elems,
    )

    out_nlc = pl.pallas_call(
        _residual_kernel,
        out_shape=jax.ShapeDtypeStruct((B, L, O), jnp.float32),
        in_specs=[vmem_spec] * len(args),
        out_specs=vmem_spec,
        scratch_shapes=[
            # shared, halo-zeroed L-pad scratch reused by all three convs
            pltpu.VMEM((B, L + 2 * HALO, CS), mxu_dtype),
        ],
        compiler_params=pltpu.CompilerParams(vmem_limit_bytes=32 * 1024 * 1024),
        cost_estimate=cost,
    )(*args)

    return jnp.transpose(out_nlc, (0, 2, 1))                         # (B, O, L)


def init_params(key, in_channels, out_channels):
    ks = jax.random.split(key, 12)

    # PyTorch layouts:
    #   ConvTranspose1d weight: (in_ch, out_ch, k)
    #   Conv1d weight:          (out_ch, in_ch, k)
    wT1 = 0.2 * jax.random.normal(ks[0], (in_channels, out_channels, 3), jnp.float32)
    wT2 = 0.2 * jax.random.normal(ks[1], (out_channels, out_channels, 5), jnp.float32)
    wT3 = 0.2 * jax.random.normal(ks[2], (out_channels, out_channels, 7), jnp.float32)
    wsc = 0.2 * jax.random.normal(ks[3], (out_channels, in_channels, 1), jnp.float32)

    def tconv_to_corr(w):
        # (Cin, O, k) -> (k, Cin, O), taps flipped: stride-1 "same" ConvTranspose1d is a
        # same-padded cross-correlation with flipped taps.
        return jnp.flip(jnp.transpose(w, (2, 0, 1)), axis=0)

    def gb(kg, kb, n):
        g = 1.0 + 0.1 * jax.random.normal(kg, (1, n), jnp.float32)
        b = 0.1 * jax.random.normal(kb, (1, n), jnp.float32)
        return g, b

    g1, b1 = gb(ks[4], ks[5], out_channels)
    g2, b2 = gb(ks[6], ks[7], out_channels)
    g3, b3 = gb(ks[8], ks[9], out_channels)
    gs, bs = gb(ks[10], ks[11], out_channels)

    return dict(
        w1=tconv_to_corr(wT1), w2=tconv_to_corr(wT2), w3=tconv_to_corr(wT3),
        ws=jnp.transpose(wsc[:, :, 0], (1, 0)),  # (Cin, O)
        g1=g1, b1=b1, g2=g2, b2=b2, g3=g3, b3=b3, gs=gs, bs=bs,
    )


def reference_forward(x_ncl, params):
    """Plain-JAX reference mirroring the PyTorch forward (training-mode BN)."""
    x = jnp.transpose(x_ncl, (0, 2, 1)).astype(jnp.float32)
    B, L, _ = x.shape

    def conv_same(xv, w):
        k = w.shape[0]
        pad = (k - 1) // 2
        xp = jnp.pad(xv, ((0, 0), (pad, pad), (0, 0)))
        return sum(jnp.einsum("blc,co->blo", xp[:, i:i + L, :], w[i]) for i in range(k))

    def bn(y, g, b):
        mean = y.mean(axis=(0, 1), keepdims=True)
        var = ((y - mean) ** 2).mean(axis=(0, 1), keepdims=True)
        return (y - mean) * jax.lax.rsqrt(var + BN_EPS) * g.reshape(1, 1, -1) + b.reshape(1, 1, -1)

    y1 = _leaky_sinelu(bn(conv_same(x, params["w1"]), params["g1"], params["b1"]))
    y2 = _leaky_sinelu(bn(conv_same(y1, params["w2"]), params["g2"], params["b2"]))
    y3 = bn(conv_same(y2, params["w3"]), params["g3"], params["b3"])
    sc = bn(jnp.einsum("blc,co->blo", x, params["ws"]), params["gs"], params["bs"])
    return jnp.transpose(_leaky_sinelu(y3 + sc), (0, 2, 1))


if __name__ == "__main__":
    B, C_IN, C_OUT, L = 2, 4, 8, 16
    key = jax.random.PRNGKey(0)
    k_x, k_p = jax.random.split(key)
    x = jax.random.normal(k_x, (B, C_IN, L), jnp.float32)  # PyTorch NCL input
    params = init_params(k_p, C_IN, C_OUT)

    ref = jax.block_until_ready(reference_forward(x, params))

    # Exact mode (f32 MXU operands): must match the plain-JAX reference tightly.
    out_f32 = jax.block_until_ready(
        residual_transpose_forward(x, params, mxu_dtype=jnp.float32))
    assert out_f32.shape == (B, C_OUT, L), out_f32.shape
    assert jnp.allclose(out_f32, ref, rtol=1e-4, atol=1e-4), \
        float(jnp.max(jnp.abs(out_f32 - ref)))

    # Fast path (bf16 MXU operands, the v6e/v7x production setting): loose tolerance because
    # bf16 rounding of the conv operands propagates through three BatchNorm layers.
    out_bf16 = jax.block_until_ready(
        residual_transpose_forward(x, params, mxu_dtype=jnp.bfloat16))
    assert out_bf16.shape == (B, C_OUT, L), out_bf16.shape
    assert jnp.allclose(out_bf16, ref, rtol=2e-1, atol=2e-1), \
        float(jnp.max(jnp.abs(out_bf16 - ref)))

    print("KERNEL_OK")
</pallas_src>

<mosaic_0001>
module attributes {stable_mosaic.version = 11 : i64} {
  func.func @_residual_kernel(%arg0: memref<2x16x4xf32, #tpu.memory_space<vmem>>, %arg1: memref<3x4x8xf32, #tpu.memory_space<vmem>>, %arg2: memref<5x8x8xf32, #tpu.memory_space<vmem>>, %arg3: memref<7x8x8xf32, #tpu.memory_space<vmem>>, %arg4: memref<4x8xf32, #tpu.memory_space<vmem>>, %arg5: memref<1x8xf32, #tpu.memory_space<vmem>>, %arg6: memref<1x8xf32, #tpu.memory_space<vmem>>, %arg7: memref<1x8xf32, #tpu.memory_space<vmem>>, %arg8: memref<1x8xf32, #tpu.memory_space<vmem>>, %arg9: memref<1x8xf32, #tpu.memory_space<vmem>>, %arg10: memref<1x8xf32, #tpu.memory_space<vmem>>, %arg11: memref<1x8xf32, #tpu.memory_space<vmem>>, %arg12: memref<1x8xf32, #tpu.memory_space<vmem>>, %arg13: memref<2x16x8xf32, #tpu.memory_space<vmem>>, %arg14: memref<2x48x8xf32, #tpu.memory_space<vmem>>) attributes {dimension_semantics = [], scalar_prefetch = 0 : i64, scratch_operands = 1 : i64, tpu.core_type = #tpu.core_type<tc>} {
    %cst = arith.constant 0.000000e+00 : f32
    %0 = vector.broadcast %cst : f32 to vector<2x16x8xf32>
    %c0 = arith.constant 0 : index
    %c0_0 = arith.constant 0 : index
    %c0_1 = arith.constant 0 : index
    %1 = vector.load %arg14[%c0, %c0_0, %c0_1] : memref<2x48x8xf32, #tpu.memory_space<vmem>>, vector<2x16x8xf32>
    tpu.vector_store %arg14[%c0, %c0_0, %c0_1], %0 {strides = array<i32>} : memref<2x48x8xf32, #tpu.memory_space<vmem>>, vector<2x16x8xf32>,
    %c0_2 = arith.constant 0 : index
    %c32 = arith.constant 32 : index
    %c0_3 = arith.constant 0 : index
    %2 = vector.load %arg14[%c0_2, %c32, %c0_3] : memref<2x48x8xf32, #tpu.memory_space<vmem>>, vector<2x16x8xf32>
    tpu.vector_store %arg14[%c0_2, %c32, %c0_3], %0 {strides = array<i32>} : memref<2x48x8xf32, #tpu.memory_space<vmem>>, vector<2x16x8xf32>,
    %c0_4 = arith.constant 0 : index
    %c0_5 = arith.constant 0 : index
    %c0_6 = arith.constant 0 : index
    %3 = vector.load %arg0[%c0_4, %c0_5, %c0_6] : memref<2x16x4xf32, #tpu.memory_space<vmem>>, vector<2x16x4xf32>
    %c0_7 = arith.constant 0 : index
    %c16 = arith.constant 16 : index
    %c0_8 = arith.constant 0 : index
    %4 = vector.load %arg14[%c0_7, %c16, %c0_8] : memref<2x48x8xf32, #tpu.memory_space<vmem>>, vector<2x16x4xf32>
    tpu.vector_store %arg14[%c0_7, %c16, %c0_8], %3 {strides = array<i32>} : memref<2x48x8xf32, #tpu.memory_space<vmem>>, vector<2x16x4xf32>,
    %c0_9 = arith.constant 0 : index
    %c15 = arith.constant 15 : index
    %c0_10 = arith.constant 0 : index
    %5 = vector.load %arg14[%c0_9, %c15, %c0_10] : memref<2x48x8xf32, #tpu.memory_space<vmem>>, vector<2x16x4xf32>
    %6 = vector.shape_cast %5 : vector<2x16x4xf32> to vector<32x4xf32>
    %c0_11 = arith.constant 0 : index
    %c0_12 = arith.constant 0 : index
    %c0_13 = arith.constant 0 : index
    %7 = vector.load %arg1[%c0_11, %c0_12, %c0_13] : memref<3x4x8xf32, #tpu.memory_space<vmem>>, vector<1x4x8xf32>
    %8 = vector.shape_cast %7 : vector<1x4x8xf32> to vector<4x8xf32>
    %cst_14 = arith.constant dense<0.000000e+00> : vector<32x8xf32>
    %9 = tpu.matmul %6, %8, %cst_14 {dimension_numbers = #tpu.dot_dimension_numbers<[1], [0], [0], [1], [0, 0, 1, 1], [], []>} : vector<32x4xf32>, vector<4x8xf32>, vector<32x8xf32> -> vector<32x8xf32>
    %c0_15 = arith.constant 0 : index
    %c16_16 = arith.constant 16 : index
    %c0_17 = arith.constant 0 : index
    %10 = vector.load %arg14[%c0_15, %c16_16, %c0_17] : memref<2x48x8xf32, #tpu.memory_space<vmem>>, vector<2x16x4xf32>
    %11 = vector.shape_cast %10 : vector<2x16x4xf32> to vector<32x4xf32>
    %c1 = arith.constant 1 : index
    %c0_18 = arith.constant 0 : index
    %c0_19 = arith.constant 0 : index
    %12 = vector.load %arg1[%c1, %c0_18, %c0_19] : memref<3x4x8xf32, #tpu.memory_space<vmem>>, vector<1x4x8xf32>
    %13 = vector.shape_cast %12 : vector<1x4x8xf32> to vector<4x8xf32>
    %cst_20 = arith.constant dense<0.000000e+00> : vector<32x8xf32>
    %14 = tpu.matmul %11, %13, %cst_20 {dimension_numbers = #tpu.dot_dimension_numbers<[1], [0], [0], [1], [0, 0, 1, 1], [], []>} : vector<32x4xf32>, vector<4x8xf32>, vector<32x8xf32> -> vector<32x8xf32>
    %15 = arith.addf %9, %14 : vector<32x8xf32>
    %c0_21 = arith.constant 0 : index
    %c17 = arith.constant 17 : index
    %c0_22 = arith.constant 0 : index
    %16 = vector.load %arg14[%c0_21, %c17, %c0_22] : memref<2x48x8xf32, #tpu.memory_space<vmem>>, vector<2x16x4xf32>
    %17 = vector.shape_cast %16 : vector<2x16x4xf32> to vector<32x4xf32>
    %c2 = arith.constant 2 : index
    %c0_23 = arith.constant 0 : index
    %c0_24 = arith.constant 0 : index
    %18 = vector.load %arg1[%c2, %c0_23, %c0_24] : memref<3x4x8xf32, #tpu.memory_space<vmem>>, vector<1x4x8xf32>
    %19 = vector.shape_cast %18 : vector<1x4x8xf32> to vector<4x8xf32>
    %cst_25 = arith.constant dense<0.000000e+00> : vector<32x8xf32>
    %20 = tpu.matmul %17, %19, %cst_25 {dimension_numbers = #tpu.dot_dimension_numbers<[1], [0], [0], [1], [0, 0, 1, 1], [], []>} : vector<32x4xf32>, vector<4x8xf32>, vector<32x8xf32> -> vector<32x8xf32>
    %21 = arith.addf %15, %20 : vector<32x8xf32>
    %cst_26 = arith.constant dense<0.000000e+00> : vector<8xf32>
    %22 = vector.multi_reduction <add>, %21, %cst_26 [0] : vector<32x8xf32> to vector<8xf32>
    %23 = vector.shape_cast %22 : vector<8xf32> to vector<1x8xf32>
    %cst_27 = arith.constant 3.125000e-02 : f32
    %24 = vector.broadcast %cst_27 : f32 to vector<1x8xf32>
    %25 = arith.mulf %23, %24 : vector<1x8xf32>
    %26 = arith.mulf %21, %21 : vector<32x8xf32>
    %cst_28 = arith.constant dense<0.000000e+00> : vector<8xf32>
    %27 = vector.multi_reduction <add>, %26, %cst_28 [0] : vector<32x8xf32> to vector<8xf32>
    %28 = vector.shape_cast %27 : vector<8xf32> to vector<1x8xf32>
    %cst_29 = arith.constant 3.125000e-02 : f32
    %29 = vector.broadcast %cst_29 : f32 to vector<1x8xf32>
    %30 = arith.mulf %28, %29 : vector<1x8xf32>
    %31 = arith.mulf %25, %25 : vector<1x8xf32>
    %32 = arith.subf %30, %31 : vector<1x8xf32>
    %cst_30 = arith.constant 0.000000e+00 : f32
    %33 = vector.broadcast %cst_30 : f32 to vector<1x8xf32>
    %34 = arith.maximumf %32, %33 : vector<1x8xf32>
    %35 = vector.broadcast %25 : vector<1x8xf32> to vector<32x8xf32>
    %36 = arith.subf %21, %35 : vector<32x8xf32>
    %cst_31 = arith.constant 9.99999974E-6 : f32
    %37 = vector.broadcast %cst_31 : f32 to vector<1x8xf32>
    %38 = arith.addf %34, %37 : vector<1x8xf32>
    %39 = math.rsqrt %38 : vector<1x8xf32>
    %40 = vector.broadcast %39 : vector<1x8xf32> to vector<32x8xf32>
    %41 = arith.mulf %36, %40 : vector<32x8xf32>
    %c0_32 = arith.constant 0 : index
    %c0_33 = arith.constant 0 : index
    %42 = vector.load %arg5[%c0_32, %c0_33] : memref<1x8xf32, #tpu.memory_space<vmem>>, vector<1x8xf32>
    %43 = vector.broadcast %42 : vector<1x8xf32> to vector<32x8xf32>
    %44 = arith.mulf %41, %43 : vector<32x8xf32>
    %c0_34 = arith.constant 0 : index
    %c0_35 = arith.constant 0 : index
    %45 = vector.load %arg6[%c0_34, %c0_35] : memref<1x8xf32, #tpu.memory_space<vmem>>, vector<1x8xf32>
    %46 = vector.broadcast %45 : vector<1x8xf32> to vector<32x8xf32>
    %47 = arith.addf %44, %46 : vector<32x8xf32>
    %48 = math.sin %47 : vector<32x8xf32>
    %49 = arith.mulf %48, %48 : vector<32x8xf32>
    %50 = arith.addf %49, %47 : vector<32x8xf32>
    %cst_36 = arith.constant 1.000000e-01 : f32
    %51 = vector.broadcast %cst_36 : f32 to vector<32x8xf32>
    %52 = arith.mulf %51, %50 : vector<32x8xf32>
    %53 = arith.maximumf %52, %50 : vector<32x8xf32>
    %54 = vector.shape_cast %53 : vector<32x8xf32> to vector<2x16x8xf32>
    %c0_37 = arith.constant 0 : index
    %c16_38 = arith.constant 16 : index
    %c0_39 = arith.constant 0 : index
    %55 = vector.load %arg14[%c0_37, %c16_38, %c0_39] : memref<2x48x8xf32, #tpu.memory_space<vmem>>, vector<2x16x8xf32>
    tpu.vector_store %arg14[%c0_37, %c16_38, %c0_39], %54 {strides = array<i32>} : memref<2x48x8xf32, #tpu.memory_space<vmem>>, vector<2x16x8xf32>,
    %c0_40 = arith.constant 0 : index
    %c14 = arith.constant 14 : index
    %c0_41 = arith.constant 0 : index
    %56 = vector.load %arg14[%c0_40, %c14, %c0_41] : memref<2x48x8xf32, #tpu.memory_space<vmem>>, vector<2x16x8xf32>
    %57 = vector.shape_cast %56 : vector<2x16x8xf32> to vector<32x8xf32>
    %c0_42 = arith.constant 0 : index
    %c0_43 = arith.constant 0 : index
    %c0_44 = arith.constant 0 : index
    %58 = vector.load %arg2[%c0_42, %c0_43, %c0_44] : memref<5x8x8xf32, #tpu.memory_space<vmem>>, vector<1x8x8xf32>
    %59 = vector.shape_cast %58 : vector<1x8x8xf32> to vector<8x8xf32>
    %cst_45 = arith.constant dense<0.000000e+00> : vector<32x8xf32>
    %60 = tpu.matmul %57, %59, %cst_45 {dimension_numbers = #tpu.dot_dimension_numbers<[1], [0], [0], [1], [0, 0, 1, 1], [], []>} : vector<32x8xf32>, vector<8x8xf32>, vector<32x8xf32> -> vector<32x8xf32>
    %c0_46 = arith.constant 0 : index
    %c15_47 = arith.constant 15 : index
    %c0_48 = arith.constant 0 : index
    %61 = vector.load %arg14[%c0_46, %c15_47, %c0_48] : memref<2x48x8xf32, #tpu.memory_space<vmem>>, vector<2x16x8xf32>
    %62 = vector.shape_cast %61 : vector<2x16x8xf32> to vector<32x8xf32>
    %c1_49 = arith.constant 1 : index
    %c0_50 = arith.constant 0 : index
    %c0_51 = arith.constant 0 : index
    %63 = vector.load %arg2[%c1_49, %c0_50, %c0_51] : memref<5x8x8xf32, #tpu.memory_space<vmem>>, vector<1x8x8xf32>
    %64 = vector.shape_cast %63 : vector<1x8x8xf32> to vector<8x8xf32>
    %cst_52 = arith.constant dense<0.000000e+00> : vector<32x8xf32>
    %65 = tpu.matmul %62, %64, %cst_52 {dimension_numbers = #tpu.dot_dimension_numbers<[1], [0], [0], [1], [0, 0, 1, 1], [], []>} : vector<32x8xf32>, vector<8x8xf32>, vector<32x8xf32> -> vector<32x8xf32>
    %66 = arith.addf %60, %65 : vector<32x8xf32>
    %c0_53 = arith.constant 0 : index
    %c16_54 = arith.constant 16 : index
    %c0_55 = arith.constant 0 : index
    %67 = vector.load %arg14[%c0_53, %c16_54, %c0_55] : memref<2x48x8xf32, #tpu.memory_space<vmem>>, vector<2x16x8xf32>
    %68 = vector.shape_cast %67 : vector<2x16x8xf32> to vector<32x8xf32>
    %c2_56 = arith.constant 2 : index
    %c0_57 = arith.constant 0 : index
    %c0_58 = arith.constant 0 : index
    %69 = vector.load %arg2[%c2_56, %c0_57, %c0_58] : memref<5x8x8xf32, #tpu.memory_space<vmem>>, vector<1x8x8xf32>
    %70 = vector.shape_cast %69 : vector<1x8x8xf32> to vector<8x8xf32>
    %cst_59 = arith.constant dense<0.000000e+00> : vector<32x8xf32>
    %71 = tpu.matmul %68, %70, %cst_59 {dimension_numbers = #tpu.dot_dimension_numbers<[1], [0], [0], [1], [0, 0, 1, 1], [], []>} : vector<32x8xf32>, vector<8x8xf32>, vector<32x8xf32> -> vector<32x8xf32>
    %72 = arith.addf %66, %71 : vector<32x8xf32>
    %c0_60 = arith.constant 0 : index
    %c17_61 = arith.constant 17 : index
    %c0_62 = arith.constant 0 : index
    %73 = vector.load %arg14[%c0_60, %c17_61, %c0_62] : memref<2x48x8xf32, #tpu.memory_space<vmem>>, vector<2x16x8xf32>
    %74 = vector.shape_cast %73 : vector<2x16x8xf32> to vector<32x8xf32>
    %c3 = arith.constant 3 : index
    %c0_63 = arith.constant 0 : index
    %c0_64 = arith.constant 0 : index
    %75 = vector.load %arg2[%c3, %c0_63, %c0_64] : memref<5x8x8xf32, #tpu.memory_space<vmem>>, vector<1x8x8xf32>
    %76 = vector.shape_cast %75 : vector<1x8x8xf32> to vector<8x8xf32>
    %cst_65 = arith.constant dense<0.000000e+00> : vector<32x8xf32>
    %77 = tpu.matmul %74, %76, %cst_65 {dimension_numbers = #tpu.dot_dimension_numbers<[1], [0], [0], [1], [0, 0, 1, 1], [], []>} : vector<32x8xf32>, vector<8x8xf32>, vector<32x8xf32> -> vector<32x8xf32>
    %78 = arith.addf %72, %77 : vector<32x8xf32>
    %c0_66 = arith.constant 0 : index
    %c18 = arith.constant 18 : index
    %c0_67 = arith.constant 0 : index
    %79 = vector.load %arg14[%c0_66, %c18, %c0_67] : memref<2x48x8xf32, #tpu.memory_space<vmem>>, vector<2x16x8xf32>
    %80 = vector.shape_cast %79 : vector<2x16x8xf32> to vector<32x8xf32>
    %c4 = arith.constant 4 : index
    %c0_68 = arith.constant 0 : index
    %c0_69 = arith.constant 0 : index
    %81 = vector.load %arg2[%c4, %c0_68, %c0_69] : memref<5x8x8xf32, #tpu.memory_space<vmem>>, vector<1x8x8xf32>
    %82 = vector.shape_cast %81 : vector<1x8x8xf32> to vector<8x8xf32>
    %cst_70 = arith.constant dense<0.000000e+00> : vector<32x8xf32>
    %83 = tpu.matmul %80, %82, %cst_70 {dimension_numbers = #tpu.dot_dimension_numbers<[1], [0], [0], [1], [0, 0, 1, 1], [], []>} : vector<32x8xf32>, vector<8x8xf32>, vector<32x8xf32> -> vector<32x8xf32>
    %84 = arith.addf %78, %83 : vector<32x8xf32>
    %cst_71 = arith.constant dense<0.000000e+00> : vector<8xf32>
    %85 = vector.multi_reduction <add>, %84, %cst_71 [0] : vector<32x8xf32> to vector<8xf32>
    %86 = vector.shape_cast %85 : vector<8xf32> to vector<1x8xf32>
    %cst_72 = arith.constant 3.125000e-02 : f32
    %87 = vector.broadcast %cst_72 : f32 to vector<1x8xf32>
    %88 = arith.mulf %86, %87 : vector<1x8xf32>
    %89 = arith.mulf %84, %84 : vector<32x8xf32>
    %cst_73 = arith.constant dense<0.000000e+00> : vector<8xf32>
    %90 = vector.multi_reduction <add>, %89, %cst_73 [0] : vector<32x8xf32> to vector<8xf32>
    %91 = vector.shape_cast %90 : vector<8xf32> to vector<1x8xf32>
    %cst_74 = arith.constant 3.125000e-02 : f32
    %92 = vector.broadcast %cst_74 : f32 to vector<1x8xf32>
    %93 = arith.mulf %91, %92 : vector<1x8xf32>
    %94 = arith.mulf %88, %88 : vector<1x8xf32>
    %95 = arith.subf %93, %94 : vector<1x8xf32>
    %cst_75 = arith.constant 0.000000e+00 : f32
    %96 = vector.broadcast %cst_75 : f32 to vector<1x8xf32>
    %97 = arith.maximumf %95, %96 : vector<1x8xf32>
    %98 = vector.broadcast %88 : vector<1x8xf32> to vector<32x8xf32>
    %99 = arith.subf %84, %98 : vector<32x8xf32>
    %cst_76 = arith.constant 9.99999974E-6 : f32
    %100 = vector.broadcast %cst_76 : f32 to vector<1x8xf32>
    %101 = arith.addf %97, %100 : vector<1x8xf32>
    %102 = math.rsqrt %101 : vector<1x8xf32>
    %103 = vector.broadcast %102 : vector<1x8xf32> to vector<32x8xf32>
    %104 = arith.mulf %99, %103 : vector<32x8xf32>
    %c0_77 = arith.constant 0 : index
    %c0_78 = arith.constant 0 : index
    %105 = vector.load %arg7[%c0_77, %c0_78] : memref<1x8xf32, #tpu.memory_space<vmem>>, vector<1x8xf32>
    %106 = vector.broadcast %105 : vector<1x8xf32> to vector<32x8xf32>
    %107 = arith.mulf %104, %106 : vector<32x8xf32>
    %c0_79 = arith.constant 0 : index
    %c0_80 = arith.constant 0 : index
    %108 = vector.load %arg8[%c0_79, %c0_80] : memref<1x8xf32, #tpu.memory_space<vmem>>, vector<1x8xf32>
    %109 = vector.broadcast %108 : vector<1x8xf32> to vector<32x8xf32>
    %110 = arith.addf %107, %109 : vector<32x8xf32>
    %111 = math.sin %110 : vector<32x8xf32>
    %112 = arith.mulf %111, %111 : vector<32x8xf32>
    %113 = arith.addf %112, %110 : vector<32x8xf32>
    %cst_81 = arith.constant 1.000000e-01 : f32
    %114 = vector.broadcast %cst_81 : f32 to vector<32x8xf32>
    %115 = arith.mulf %114, %113 : vector<32x8xf32>
    %116 = arith.maximumf %115, %113 : vector<32x8xf32>
    %117 = vector.shape_cast %116 : vector<32x8xf32> to vector<2x16x8xf32>
    %c0_82 = arith.constant 0 : index
    %c16_83 = arith.constant 16 : index
    %c0_84 = arith.constant 0 : index
    %118 = vector.load %arg14[%c0_82, %c16_83, %c0_84] : memref<2x48x8xf32, #tpu.memory_space<vmem>>, vector<2x16x8xf32>
    tpu.vector_store %arg14[%c0_82, %c16_83, %c0_84], %117 {strides = array<i32>} : memref<2x48x8xf32, #tpu.memory_space<vmem>>, vector<2x16x8xf32>,
    %c0_85 = arith.constant 0 : index
    %c13 = arith.constant 13 : index
    %c0_86 = arith.constant 0 : index
    %119 = vector.load %arg14[%c0_85, %c13, %c0_86] : memref<2x48x8xf32, #tpu.memory_space<vmem>>, vector<2x16x8xf32>
    %120 = vector.shape_cast %119 : vector<2x16x8xf32> to vector<32x8xf32>
    %c0_87 = arith.constant 0 : index
    %c0_88 = arith.constant 0 : index
    %c0_89 = arith.constant 0 : index
    %121 = vector.load %arg3[%c0_87, %c0_88, %c0_89] : memref<7x8x8xf32, #tpu.memory_space<vmem>>, vector<1x8x8xf32>
    %122 = vector.shape_cast %121 : vector<1x8x8xf32> to vector<8x8xf32>
    %cst_90 = arith.constant dense<0.000000e+00> : vector<32x8xf32>
    %123 = tpu.matmul %120, %122, %cst_90 {dimension_numbers = #tpu.dot_dimension_numbers<[1], [0], [0], [1], [0, 0, 1, 1], [], []>} : vector<32x8xf32>, vector<8x8xf32>, vector<32x8xf32> -> vector<32x8xf32>
    %c0_91 = arith.constant 0 : index
    %c14_92 = arith.constant 14 : index
    %c0_93 = arith.constant 0 : index
    %124 = vector.load %arg14[%c0_91, %c14_92, %c0_93] : memref<2x48x8xf32, #tpu.memory_space<vmem>>, vector<2x16x8xf32>
    %125 = vector.shape_cast %124 : vector<2x16x8xf32> to vector<32x8xf32>
    %c1_94 = arith.constant 1 : index
    %c0_95 = arith.constant 0 : index
    %c0_96 = arith.constant 0 : index
    %126 = vector.load %arg3[%c1_94, %c0_95, %c0_96] : memref<7x8x8xf32, #tpu.memory_space<vmem>>, vector<1x8x8xf32>
    %127 = vector.shape_cast %126 : vector<1x8x8xf32> to vector<8x8xf32>
    %cst_97 = arith.constant dense<0.000000e+00> : vector<32x8xf32>
    %128 = tpu.matmul %125, %127, %cst_97 {dimension_numbers = #tpu.dot_dimension_numbers<[1], [0], [0], [1], [0, 0, 1, 1], [], []>} : vector<32x8xf32>, vector<8x8xf32>, vector<32x8xf32> -> vector<32x8xf32>
    %129 = arith.addf %123, %128 : vector<32x8xf32>
    %c0_98 = arith.constant 0 : index
    %c15_99 = arith.constant 15 : index
    %c0_100 = arith.constant 0 : index
    %130 = vector.load %arg14[%c0_98, %c15_99, %c0_100] : memref<2x48x8xf32, #tpu.memory_space<vmem>>, vector<2x16x8xf32>
    %131 = vector.shape_cast %130 : vector<2x16x8xf32> to vector<32x8xf32>
    %c2_101 = arith.constant 2 : index
    %c0_102 = arith.constant 0 : index
    %c0_103 = arith.constant 0 : index
    %132 = vector.load %arg3[%c2_101, %c0_102, %c0_103] : memref<7x8x8xf32, #tpu.memory_space<vmem>>, vector<1x8x8xf32>
    %133 = vector.shape_cast %132 : vector<1x8x8xf32> to vector<8x8xf32>
    %cst_104 = arith.constant dense<0.000000e+00> : vector<32x8xf32>
    %134 = tpu.matmul %131, %133, %cst_104 {dimension_numbers = #tpu.dot_dimension_numbers<[1], [0], [0], [1], [0, 0, 1, 1], [], []>} : vector<32x8xf32>, vector<8x8xf32>, vector<32x8xf32> -> vector<32x8xf32>
    %135 = arith.addf %129, %134 : vector<32x8xf32>
    %c0_105 = arith.constant 0 : index
    %c16_106 = arith.constant 16 : index
    %c0_107 = arith.constant 0 : index
    %136 = vector.load %arg14[%c0_105, %c16_106, %c0_107] : memref<2x48x8xf32, #tpu.memory_space<vmem>>, vector<2x16x8xf32>
    %137 = vector.shape_cast %136 : vector<2x16x8xf32> to vector<32x8xf32>
    %c3_108 = arith.constant 3 : index
    %c0_109 = arith.constant 0 : index
    %c0_110 = arith.constant 0 : index
    %138 = vector.load %arg3[%c3_108, %c0_109, %c0_110] : memref<7x8x8xf32, #tpu.memory_space<vmem>>, vector<1x8x8xf32>
    %139 = vector.shape_cast %138 : vector<1x8x8xf32> to vector<8x8xf32>
    %cst_111 = arith.constant dense<0.000000e+00> : vector<32x8xf32>
    %140 = tpu.matmul %137, %139, %cst_111 {dimension_numbers = #tpu.dot_dimension_numbers<[1], [0], [0], [1], [0, 0, 1, 1], [], []>} : vector<32x8xf32>, vector<8x8xf32>, vector<32x8xf32> -> vector<32x8xf32>
    %141 = arith.addf %135, %140 : vector<32x8xf32>
    %c0_112 = arith.constant 0 : index
    %c17_113 = arith.constant 17 : index
    %c0_114 = arith.constant 0 : index
    %142 = vector.load %arg14[%c0_112, %c17_113, %c0_114] : memref<2x48x8xf32, #tpu.memory_space<vmem>>, vector<2x16x8xf32>
    %143 = vector.shape_cast %142 : vector<2x16x8xf32> to vector<32x8xf32>
    %c4_115 = arith.constant 4 : index
    %c0_116 = arith.constant 0 : index
    %c0_117 = arith.constant 0 : index
    %144 = vector.load %arg3[%c4_115, %c0_116, %c0_117] : memref<7x8x8xf32, #tpu.memory_space<vmem>>, vector<1x8x8xf32>
    %145 = vector.shape_cast %144 : vector<1x8x8xf32> to vector<8x8xf32>
    %cst_118 = arith.constant dense<0.000000e+00> : vector<32x8xf32>
    %146 = tpu.matmul %143, %145, %cst_118 {dimension_numbers = #tpu.dot_dimension_numbers<[1], [0], [0], [1], [0, 0, 1, 1], [], []>} : vector<32x8xf32>, vector<8x8xf32>, vector<32x8xf32> -> vector<32x8xf32>
    %147 = arith.addf %141, %146 : vector<32x8xf32>
    %c0_119 = arith.constant 0 : index
    %c18_120 = arith.constant 18 : index
    %c0_121 = arith.constant 0 : index
    %148 = vector.load %arg14[%c0_119, %c18_120, %c0_121] : memref<2x48x8xf32, #tpu.memory_space<vmem>>, vector<2x16x8xf32>
    %149 = vector.shape_cast %148 : vector<2x16x8xf32> to vector<32x8xf32>
    %c5 = arith.constant 5 : index
    %c0_122 = arith.constant 0 : index
    %c0_123 = arith.constant 0 : index
    %150 = vector.load %arg3[%c5, %c0_122, %c0_123] : memref<7x8x8xf32, #tpu.memory_space<vmem>>, vector<1x8x8xf32>
    %151 = vector.shape_cast %150 : vector<1x8x8xf32> to vector<8x8xf32>
    %cst_124 = arith.constant dense<0.000000e+00> : vector<32x8xf32>
    %152 = tpu.matmul %149, %151, %cst_124 {dimension_numbers = #tpu.dot_dimension_numbers<[1], [0], [0], [1], [0, 0, 1, 1], [], []>} : vector<32x8xf32>, vector<8x8xf32>, vector<32x8xf32> -> vector<32x8xf32>
    %153 = arith.addf %147, %152 : vector<32x8xf32>
    %c0_125 = arith.constant 0 : index
    %c19 = arith.constant 19 : index
    %c0_126 = arith.constant 0 : index
    %154 = vector.load %arg14[%c0_125, %c19, %c0_126] : memref<2x48x8xf32, #tpu.memory_space<vmem>>, vector<2x16x8xf32>
    %155 = vector.shape_cast %154 : vector<2x16x8xf32> to vector<32x8xf32>
    %c6 = arith.constant 6 : index
    %c0_127 = arith.constant 0 : index
    %c0_128 = arith.constant 0 : index
    %156 = vector.load %arg3[%c6, %c0_127, %c0_128] : memref<7x8x8xf32, #tpu.memory_space<vmem>>, vector<1x8x8xf32>
    %157 = vector.shape_cast %156 : vector<1x8x8xf32> to vector<8x8xf32>
    %cst_129 = arith.constant dense<0.000000e+00> : vector<32x8xf32>
    %158 = tpu.matmul %155, %157, %cst_129 {dimension_numbers = #tpu.dot_dimension_numbers<[1], [0], [0], [1], [0, 0, 1, 1], [], []>} : vector<32x8xf32>, vector<8x8xf32>, vector<32x8xf32> -> vector<32x8xf32>
    %159 = arith.addf %153, %158 : vector<32x8xf32>
    %cst_130 = arith.constant dense<0.000000e+00> : vector<8xf32>
    %160 = vector.multi_reduction <add>, %159, %cst_130 [0] : vector<32x8xf32> to vector<8xf32>
    %161 = vector.shape_cast %160 : vector<8xf32> to vector<1x8xf32>
    %cst_131 = arith.constant 3.125000e-02 : f32
    %162 = vector.broadcast %cst_131 : f32 to vector<1x8xf32>
    %163 = arith.mulf %161, %162 : vector<1x8xf32>
    %164 = arith.mulf %159, %159 : vector<32x8xf32>
    %cst_132 = arith.constant dense<0.000000e+00> : vector<8xf32>
    %165 = vector.multi_reduction <add>, %164, %cst_132 [0] : vector<32x8xf32> to vector<8xf32>
    %166 = vector.shape_cast %165 : vector<8xf32> to vector<1x8xf32>
    %cst_133 = arith.constant 3.125000e-02 : f32
    %167 = vector.broadcast %cst_133 : f32 to vector<1x8xf32>
    %168 = arith.mulf %166, %167 : vector<1x8xf32>
    %169 = arith.mulf %163, %163 : vector<1x8xf32>
    %170 = arith.subf %168, %169 : vector<1x8xf32>
    %cst_134 = arith.constant 0.000000e+00 : f32
    %171 = vector.broadcast %cst_134 : f32 to vector<1x8xf32>
    %172 = arith.maximumf %170, %171 : vector<1x8xf32>
    %173 = vector.broadcast %163 : vector<1x8xf32> to vector<32x8xf32>
    %174 = arith.subf %159, %173 : vector<32x8xf32>
    %cst_135 = arith.constant 9.99999974E-6 : f32
    %175 = vector.broadcast %cst_135 : f32 to vector<1x8xf32>
    %176 = arith.addf %172, %175 : vector<1x8xf32>
    %177 = math.rsqrt %176 : vector<1x8xf32>
    %178 = vector.broadcast %177 : vector<1x8xf32> to vector<32x8xf32>
    %179 = arith.mulf %174, %178 : vector<32x8xf32>
    %c0_136 = arith.constant 0 : index
    %c0_137 = arith.constant 0 : index
    %180 = vector.load %arg9[%c0_136, %c0_137] : memref<1x8xf32, #tpu.memory_space<vmem>>, vector<1x8xf32>
    %181 = vector.broadcast %180 : vector<1x8xf32> to vector<32x8xf32>
    %182 = arith.mulf %179, %181 : vector<32x8xf32>
    %c0_138 = arith.constant 0 : index
    %c0_139 = arith.constant 0 : index
    %183 = vector.load %arg10[%c0_138, %c0_139] : memref<1x8xf32, #tpu.memory_space<vmem>>, vector<1x8xf32>
    %184 = vector.broadcast %183 : vector<1x8xf32> to vector<32x8xf32>
    %185 = arith.addf %182, %184 : vector<32x8xf32>
    %186 = vector.shape_cast %3 : vector<2x16x4xf32> to vector<32x4xf32>
    %c0_140 = arith.constant 0 : index
    %c0_141 = arith.constant 0 : index
    %187 = vector.load %arg4[%c0_140, %c0_141] : memref<4x8xf32, #tpu.memory_space<vmem>>, vector<4x8xf32>
    %cst_142 = arith.constant dense<0.000000e+00> : vector<32x8xf32>
    %188 = tpu.matmul %186, %187, %cst_142 {dimension_numbers = #tpu.dot_dimension_numbers<[1], [0], [0], [1], [0, 0, 1, 1], [], []>} : vector<32x4xf32>, vector<4x8xf32>, vector<32x8xf32> -> vector<32x8xf32>
    %cst_143 = arith.constant dense<0.000000e+00> : vector<8xf32>
    %189 = vector.multi_reduction <add>, %188, %cst_143 [0] : vector<32x8xf32> to vector<8xf32>
    %190 = vector.shape_cast %189 : vector<8xf32> to vector<1x8xf32>
    %cst_144 = arith.constant 3.125000e-02 : f32
    %191 = vector.broadcast %cst_144 : f32 to vector<1x8xf32>
    %192 = arith.mulf %190, %191 : vector<1x8xf32>
    %193 = arith.mulf %188, %188 : vector<32x8xf32>
    %cst_145 = arith.constant dense<0.000000e+00> : vector<8xf32>
    %194 = vector.multi_reduction <add>, %193, %cst_145 [0] : vector<32x8xf32> to vector<8xf32>
    %195 = vector.shape_cast %194 : vector<8xf32> to vector<1x8xf32>
    %cst_146 = arith.constant 3.125000e-02 : f32
    %196 = vector.broadcast %cst_146 : f32 to vector<1x8xf32>
    %197 = arith.mulf %195, %196 : vector<1x8xf32>
    %198 = arith.mulf %192, %192 : vector<1x8xf32>
    %199 = arith.subf %197, %198 : vector<1x8xf32>
    %cst_147 = arith.constant 0.000000e+00 : f32
    %200 = vector.broadcast %cst_147 : f32 to vector<1x8xf32>
    %201 = arith.maximumf %199, %200 : vector<1x8xf32>
    %202 = vector.broadcast %192 : vector<1x8xf32> to vector<32x8xf32>
    %203 = arith.subf %188, %202 : vector<32x8xf32>
    %cst_148 = arith.constant 9.99999974E-6 : f32
    %204 = vector.broadcast %cst_148 : f32 to vector<1x8xf32>
    %205 = arith.addf %201, %204 : vector<1x8xf32>
    %206 = math.rsqrt %205 : vector<1x8xf32>
    %207 = vector.broadcast %206 : vector<1x8xf32> to vector<32x8xf32>
    %208 = arith.mulf %203, %207 : vector<32x8xf32>
    %c0_149 = arith.constant 0 : index
    %c0_150 = arith.constant 0 : index
    %209 = vector.load %arg11[%c0_149, %c0_150] : memref<1x8xf32, #tpu.memory_space<vmem>>, vector<1x8xf32>
    %210 = vector.broadcast %209 : vector<1x8xf32> to vector<32x8xf32>
    %211 = arith.mulf %208, %210 : vector<32x8xf32>
    %c0_151 = arith.constant 0 : index
    %c0_152 = arith.constant 0 : index
    %212 = vector.load %arg12[%c0_151, %c0_152] : memref<1x8xf32, #tpu.memory_space<vmem>>, vector<1x8xf32>
    %213 = vector.broadcast %212 : vector<1x8xf32> to vector<32x8xf32>
    %214 = arith.addf %211, %213 : vector<32x8xf32>
    %215 = arith.addf %185, %214 : vector<32x8xf32>
    %216 = math.sin %215 : vector<32x8xf32>
    %217 = arith.mulf %216, %216 : vector<32x8xf32>
    %218 = arith.addf %217, %215 : vector<32x8xf32>
    %cst_153 = arith.constant 1.000000e-01 : f32
    %219 = vector.broadcast %cst_153 : f32 to vector<32x8xf32>
    %220 = arith.mulf %219, %218 : vector<32x8xf32>
    %221 = arith.maximumf %220, %218 : vector<32x8xf32>
    %222 = vector.shape_cast %221 : vector<32x8xf32> to vector<2x16x8xf32>
    %c0_154 = arith.constant 0 : index
    %c0_155 = arith.constant 0 : index
    %c0_156 = arith.constant 0 : index
    %223 = vector.load %arg13[%c0_154, %c0_155, %c0_156] : memref<2x16x8xf32, #tpu.memory_space<vmem>>, vector<2x16x8xf32>
    tpu.vector_store %arg13[%c0_154, %c0_155, %c0_156], %222 {strides = array<i32>} : memref<2x16x8xf32, #tpu.memory_space<vmem>>, vector<2x16x8xf32>,
    return
  }
}

</mosaic_0001>

<bundles_post_ra>
// kernel: tpu_custom_call.1
= control target key start
LH: loop header
LB: loop body
LE: loop exit
PB: predicated region body
PF: predicated region fallthrough
CT: control target
= control target key end

     0   :  { %18 = vsyncpa [#allocation4], 0  ;;  %s5176_s0 = inlined_call_operand.vmem [shape: f32[2,16,4], index: 0, kind: input, shape index: {}]   ;;  %s5177_s1 = inlined_call_operand.hbm [shape: f32[3,4,8], index: 1, kind: input, shape index: {}]   ;;  %s5178_s2 = inlined_call_operand.vmem [shape: f32[5,8,8], index: 2, kind: input, shape index: {}]   ;;  %s5179_s3 = inlined_call_operand.hbm [shape: f32[7,8,8], index: 3, kind: input, shape index: {}]   ;;  %s5180_s4 = inlined_call_operand.vmem [shape: f32[4,8], index: 4, kind: input, shape index: {}]   ;;  %s5181_s5 = inlined_call_operand.vmem [shape: f32[1,8], index: 5, kind: input, shape index: {}]   ;;  %s5182_s6 = inlined_call_operand.vmem [shape: f32[1,8], index: 6, kind: input, shape index: {}]   ;;  %s5183_s7 = inlined_call_operand.vmem [shape: f32[1,8], index: 7, kind: input, shape index: {}]   ;;  %s5184_s8 = inlined_call_operand.vmem [shape: f32[1,8], index: 8, kind: input, shape index: {}]   ;;  %s5185_s9 = inlined_call_operand.vmem [shape: f32[1,8], index: 9, kind: input, shape index: {}]   ;;  %s5186_s10 = inlined_call_operand.vmem [shape: f32[1,8], index: 10, kind: input, shape index: {}]   ;;  %s5187_s11 = inlined_call_operand.vmem [shape: f32[1,8], index: 11, kind: input, shape index: {}]   ;;  %s5188_s12 = inlined_call_operand.vmem [shape: f32[1,8], index: 12, kind: input, shape index: {}]   ;;  %s5189_s13 = inlined_call_operand.vmem [shape: f32[2,16,8], index: 13, kind: output, shape index: {}]  }
   0x1   :  { %19 = vsyncpa [#allocation6], 0  ;;  %s3914_s25 = smov [#allocation3]   ;;  %s3866_s29 = scalar_lea.hbm %s5177_s1, 192 }
   0x2   :  { %s27_s26 = sshll.u32 %s3914_s25, 4  ;;  %p3867_p0 = scmp.ne.s32.totalorder %s5177_s1, %s3866_s29  ;;  %s28_s26 = int_to_ptr.vmem [resolvable:$true] %s27_s26 }
   0x3   :  { %p3870_p1 = scmp.lt.u32.totalorder %s3866_s29, %s5177_s1 }
   0x5   :  { %p3872_p2 = pnand %p3870_p1, %p3867_p0 }
   0x7   :  { %3875 = shalt.err (!%p3872_p2)
}
   0x8   :  { %s3876_s17 = scalar_lea.vmem %s28_s26, 192  ;;  %p3881_p4 = scmp.lt.s32.totalorder %s28_s26, %s28_s26 }
   0x9   :  { %p3877_p3 = scmp.ne.s32.totalorder %s28_s26, %s3876_s17  ;;  %p3882_p5 = scmp.lt.s32.totalorder %s3876_s17, %s3876_s17 }
   0xb   :  { %p3883_p6 = por %p3882_p5, %p3881_p4 }
   0xd   :  { %p3884_p7 = pnand %p3883_p6, %p3877_p3 }
   0xf   :  { %3887 = shalt.err (!%p3884_p7)
}
  0x10   :  { %s3915_s18 = smov 64   ;;  %s3916_s19 = smov 4  }
  0x11   :  { %33 = dma.hbm_to_vmem [thread:$0]  %s5177_s1, 192, %s28_s26, [#allocation4], %s3915_s18, %s3915_s18, %s3916_s19  }
  0x12   :  { %s3917_s22 = smov [#allocation5]   ;;  %s3888_s27 = scalar_lea.hbm %s5179_s3, 896 }
  0x13   :  { %s41_s23 = sshll.u32 %s3917_s22, 4  ;;  %p3889_p8 = scmp.ne.s32.totalorder %s5179_s3, %s3888_s27  ;;  %s42_s23 = int_to_ptr.vmem [resolvable:$true] %s41_s23 }
  0x14   :  { %p3892_p9 = scmp.lt.u32.totalorder %s3888_s27, %s5179_s3 }
  0x16   :  { %p3894_p10 = pnand %p3892_p9, %p3889_p8 }
  0x18   :  { %3897 = shalt.err (!%p3894_p10)
}
  0x19   :  { %s3898_s15 = scalar_lea.vmem %s42_s23, 896  ;;  %p3903_p12 = scmp.lt.s32.totalorder %s42_s23, %s42_s23 }
  0x1a   :  { %p3899_p11 = scmp.ne.s32.totalorder %s42_s23, %s3898_s15  ;;  %p3904_p13 = scmp.lt.s32.totalorder %s3898_s15, %s3898_s15 }
  0x1c   :  { %p3905_p0 = por %p3904_p13, %p3903_p12 }
  0x1e   :  { %p3906_p1 = pnand %p3905_p0, %p3899_p11 }
  0x20   :  { %3909 = shalt.err (!%p3906_p1)
}
  0x21   :  { %s3918_s1 = smov 128   ;;  %s3919_s26 = smov 8  }
  0x22   :  { %47 = dma.hbm_to_vmem [thread:$0]  %s5179_s3, 896, %s42_s23, [#allocation6], %s3918_s1, %s3918_s1, %s3919_s26  }
  0x23   :  { %3910 = dma.done.wait [#allocation4], 192  }
  0x24   :  { %3911 = vsyncadd [#allocation4], 4294967104 }
  0x25   :  { %3912 = dma.done.wait [#allocation6], 896  }
  0x26   :  { %3913 = vsyncadd [#allocation6], 4294966400  ;;  %vm72_vm0 = vcmask 64512   ;;  %v3920_v0 = vmov 0.0   ;;  %vm113_vm1 = vcmask 1043456   ;;  %vm85_vm2 = vcmask 31744  }
  0x27   :  { %74 = vst.msk [vmem:[#allocation2 + $0x8] sm:$0xff] %vm72_vm0, %v3920_v0  ;;  %76 = vst.msk [vmem:[#allocation2 + $0x38] sm:$0xff] %vm72_vm0, %v3920_v0  ;;  %v100_v1 = vld [vmem:[#allocation3 + $0x4] sm:$0xf]  ;;  %v4028_v2 = vld [vmem:[%s5176_s0] sm:$0xff] }
  0x28   :  { %77 = vst.msk [vmem:[#allocation2 + $0x20] sm:$0xff] %vm72_vm0, %v3920_v0  ;;  %79 = vst.msk [vmem:[#allocation2 + $0x50] sm:$0xff] %vm72_vm0, %v3920_v0  ;;  %v94_v3 = vld [vmem:[#allocation3] sm:$0xf]  ;;  %3573 = vmatprep.subr.msk.mxu1 %vm113_vm1, %v100_v1  ;;  %v4041_v5 = vld [vmem:[%s5176_s0 + $0x10] sm:$0xff] }
  0x29   :  { %86 = vst.msk [vmem:[#allocation2 + $0x10] sm:$0xff] %vm85_vm2, %v4028_v2  ;;  %v4036_v4 = vld [vmem:[%s5176_s0 + $0x8] sm:$0xff]  ;;  %v4046_v6 = vld [vmem:[%s5176_s0 + $0x18] sm:$0xff]  ;;  %3574 = vmatpush3.msk.msra.mxu1 %vm113_vm1, %v100_v1  ;;  %88 = vst.msk [vmem:[#allocation2 + $0x40] sm:$0xff] %vm85_vm2, %v4041_v5 }
  0x2a   :  { %87 = vst.msk [vmem:[#allocation2 + $0x18] sm:$0xff] %vm85_vm2, %v4036_v4  ;;  %89 = vst.msk [vmem:[#allocation2 + $0x48] sm:$0xff] %vm85_vm2, %v4046_v6  ;;  %v307_v7 = vld [vmem:[#allocation3 + $0x8] sm:$0xf]  ;;  %3581 = vmatprep.subr.msk.mxu1 %vm113_vm1, %v94_v3 }
  0x2b   :  { %3589 = vmatprep.subr.msk.mxu0 %vm113_vm1, %v307_v7 }
  0x2c   :  { %3590 = vmatpush3.msk.msra.mxu0 %vm113_vm1, %v307_v7 }
  0x30   :  { %v95_v8 = vld [vmem:[#allocation2 + $0x10] sm:$0xff]  ;;  %v97_v10 = vld [vmem:[#allocation2 + $0x40] sm:$0xff] }
  0x31   :  { %3575 = vmatprep.mubr.msk.f32.mxu1 %vm85_vm2, %v95_v8  ;;  %v96_v9 = vld [vmem:[#allocation2 + $0x18] sm:$0xff]  ;;  %v98_v13 = vld [vmem:[#allocation2 + $0x48] sm:$0xff] }
  0x32   :  { %3576 = vmatmul.mubr.msk.f32.vlgmr.msra.gmra.mrb[0].mxu1 %vm85_vm2, %v96_v9  ;;  %v302_v11 = vld [vmem:[#allocation2 + $0x11] sm:$0xff]  ;;  %v303_v12 = vld [vmem:[#allocation2 + $0x19] sm:$0xff]  ;;  %v304_v14 = vld [vmem:[#allocation2 + $0x41] sm:$0xff] }
  0x33   :  { %3582 = vmatpush3.msk.msra.mxu1 %vm113_vm1, %v94_v3  ;;  %3578 = vmatprep.mubr.msk.f32.mxu1 %vm85_vm2, %v97_v10  ;;  %v90_v15 = vld [vmem:[#allocation2 + $0xf] sm:$0xff]  ;;  %v91_v17 = vld [vmem:[#allocation2 + $0x17] sm:$0xff]  ;;  %v92_v18 = vld [vmem:[#allocation2 + $0x3f] sm:$0xff] }
  0x34   :  { %3591 = vmatprep.mubr.msk.f32.mxu0 %vm85_vm2, %v302_v11  ;;  %v305_v16 = vld [vmem:[#allocation2 + $0x49] sm:$0xff] }
  0x35   :  { %3592 = vmatmul.mubr.msk.f32.vlgmr.msra.gmra.mrb[0].mxu0 %vm85_vm2, %v303_v12  ;;  %v93_v19 = vld [vmem:[#allocation2 + $0x47] sm:$0xff] }
  0x36   :  { %3579 = vmatmul.mubr.msk.f32.gmra.mrb[2].mxu1 %vm85_vm2, %v98_v13  ;;  %3594 = vmatprep.mubr.msk.f32.mxu0 %vm85_vm2, %v304_v14  ;;  %v3380_v13 = vld [vmem:[%s5181_s5] ss:$0 sm:$0xff] }
  0x37   :  { %3583 = vmatprep.mubr.msk.f32.mxu1 %vm85_vm2, %v90_v15 }
  0x39   :  { %3595 = vmatmul.mubr.msk.f32.gmra.mrb[2].mxu0 %vm85_vm2, %v305_v16 }
  0x3a   :  { %3584 = vmatmul.mubr.msk.f32.vlgmr.msra.gmra.mrb[0].mxu1 %vm85_vm2, %v91_v17 }
  0x3b   :  { %3586 = vmatprep.mubr.msk.f32.mxu1 %vm85_vm2, %v92_v18  ;;  %v3381_v18 = vld [vmem:[%s5182_s6] ss:$0 sm:$0xff] }
  0x3e   :  { %3587 = vmatmul.mubr.msk.f32.gmra.mrb[2].mxu1 %vm85_vm2, %v93_v19 }
 0x108   :  { %v3593_v20 = vpop.f32.mrb[0].mxu0 }
 0x109   :  { %v389_v21 = vpop.f32.mrb[1].mxu0 }
 0x10c   :  { %v3596_v22 = vpop.f32.mrb[2].mxu0 }
 0x10d   :  { %v3585_v23 = vpop.f32.mrb[0].mxu1  ;;  %v399_v24 = vpop.f32.mrb[3].mxu0 }
 0x10e   :  { %v3701_v25 = vadd.f32 %v3593_v20, %v3585_v23  ;;  %v283_v26 = vpop.f32.mrb[1].mxu1 }
 0x10f   :  { %v3702_v27 = vadd.f32 %v389_v21, %v283_v26 }
 0x110   :  { %v413_v28 = vsel %vm72_vm0, %v3701_v25, 0.0  ;;  %v427_v29 = vmul.f32 %v3701_v25, %v3701_v25 }
 0x111   :  { %v412_v30 = vsel %vm72_vm0, %v3702_v27, 0.0  ;;  %v426_v31 = vmul.f32 %v3702_v27, %v3702_v27  ;;  %v3588_v32 = vpop.f32.mrb[2].mxu1 }
 0x112   :  { %v431_v33 = vsel %vm72_vm0, %v427_v29, 0.0  ;;  %v414_v34 = vadd.f32 %v413_v28, %v412_v30  ;;  %v3703_v35 = vadd.f32 %v3596_v22, %v3588_v32  ;;  %v293_v36 = vpop.f32.mrb[3].mxu1 }
 0x113   :  { %v430_v37 = vsel %vm72_vm0, %v426_v31, 0.0  ;;  %v3704_v38 = vadd.f32 %v399_v24, %v293_v36 }
 0x114   :  { %v432_v39 = vadd.f32 %v431_v33, %v430_v37  ;;  %v429_v40 = vmul.f32 %v3703_v35, %v3703_v35  ;;  %v417_v44 = vsel %vm72_vm0, %v3703_v35, 0.0 }
 0x115   :  { %v415_v41 = vsel %vm72_vm0, %v3704_v38, 0.0  ;;  %v428_v42 = vmul.f32 %v3704_v38, %v3704_v38 }
 0x116   :  { %v416_v43 = vadd.f32 %v415_v41, %v414_v34  ;;  %v435_v48 = vsel %vm72_vm0, %v429_v40, 0.0 }
 0x117   :  { %v433_v45 = vsel %vm72_vm0, %v428_v42, 0.0 }
 0x118   :  { %v418_v46 = vadd.f32 %v417_v44, %v416_v43  ;;  %v434_v47 = vadd.f32 %v433_v45, %v432_v39 }
 0x11a   :  { %v419_v49 = vrot.slane %v418_v46, 4  ;;  %v436_v50 = vadd.f32 %v435_v48, %v434_v47 }
 0x11c   :  { %v420_v51 = vadd.f32 %v419_v49, %v418_v46  ;;  %v437_v52 = vrot.slane %v436_v50, 4 }
 0x11e   :  { %v421_v53 = vrot.slane %v420_v51, 2  ;;  %v438_v54 = vadd.f32 %v437_v52, %v436_v50 }
 0x120   :  { %v422_v55 = vadd.f32 %v421_v53, %v420_v51  ;;  %v439_v56 = vrot.slane %v438_v54, 2 }
 0x122   :  { %v423_v57 = vrot.slane %v422_v55, 1  ;;  %v440_v58 = vadd.f32 %v439_v56, %v438_v54  ;;  %v3921_v54 = vmov 683565275  }
 0x124   :  { %v424_v59 = vadd.f32 %v423_v57, %v422_v55  ;;  %v441_v60 = vrot.slane %v440_v58, 1 }
 0x126   :  { %v425_v61 = vmul.f32 0.03125, %v424_v59  ;;  %v442_v62 = vadd.f32 %v441_v60, %v440_v58  ;;  %v3922_v58 = vmov 2475754826   ;;  %v3923_v60 = vmov 2131351028  }
 0x128   :  { %v443_v63 = vmul.f32 0.03125, %v442_v62  ;;  %v444_v0 = vmul.f32 %v425_v61, %v425_v61  ;;  %v447_v1 = vsub.f32 %v3702_v27, %v425_v61  ;;  %v448_v3 = vsub.f32 %v3701_v25, %v425_v61 }
 0x129   :  { %v449_v7 = vsub.f32 %v3704_v38, %v425_v61  ;;  %v450_v8 = vsub.f32 %v3703_v35, %v425_v61  ;;  %v3924_v62 = vmov 2102212464  }
 0x12a   :  { %v445_v9 = vsub.f32 %v443_v63, %v444_v0  ;;  %v3925_v0 = vmov 920167782  }
 0x12c   :  { %v446_v10 = vmax.f32 %v445_v9, 0.0 }
 0x12e   :  { %v451_v11 = vadd.f32 1e-05, %v446_v10 }
 0x130   :  { %3810 = vrsqrt.f32 %v451_v11  ;;  %v3926_v11 = vmov 1326507024  }
 0x13a   :  { %v3811_v12 = vpop.eup %3810 }
 0x13b   :  { %v453_v14 = vmul.f32 %v3811_v12, %v447_v1  ;;  %v454_v15 = vmul.f32 %v3811_v12, %v448_v3  ;;  %v455_v16 = vmul.f32 %v3811_v12, %v449_v7  ;;  %v456_v17 = vmul.f32 %v3811_v12, %v450_v8 }
 0x13d   :  { %v464_v19 = vmul.f32 %v3380_v13, %v453_v14  ;;  %v465_v20 = vmul.f32 %v3380_v13, %v454_v15  ;;  %v466_v21 = vmul.f32 %v3380_v13, %v455_v16  ;;  %v467_v37 = vmul.f32 %v3380_v13, %v456_v17 }
 0x13f   :  { %v4085_v22 = vadd.f32 %v3381_v18, %v464_v19  ;;  %v4087_v23 = vadd.f32 %v3381_v18, %v465_v20  ;;  %v4089_v24 = vadd.f32 %v3381_v18, %v466_v21  ;;  %v4101_v45 = vadd.f32 %v3381_v18, %v467_v37  ;;  %v3398_v19 = vld [vmem:[%s5178_s2 + $0x8] sm:$0xff]  ;;  %v4132_v20 = vld [vmem:[%s5178_s2] sm:$0xff] }
 0x140   :  { %3597 = vmatprep.subr.mxu1 %v3398_v19 }
 0x141   :  { %v479_v25 = vand.u32 2147483647, %v4085_v22  ;;  %v482_v26 = vand.u32 2139095040, %v4085_v22  ;;  %v583_v27 = vand.u32 2147483647, %v4087_v23  ;;  %v586_v28 = vand.u32 2139095040, %v4087_v23  ;;  %3598 = vmatpush3.msra.mxu1 %v3398_v19 }
 0x142   :  { %v690_v33 = vand.u32 2139095040, %v4089_v24  ;;  %v687_v42 = vand.u32 2147483647, %v4089_v24  ;;  %3605 = vmatprep.subr.mxu1 %v4132_v20 }
 0x143   :  { %v483_v29 = vshrl.u32 %v482_v26, 23  ;;  %v486_v30 = vand.u32 8388607, %v479_v25  ;;  %v587_v31 = vshrl.u32 %v586_v28, 23  ;;  %v590_v32 = vand.u32 8388607, %v583_v27 }
 0x144   :  { %v691_v36 = vshrl.u32 %v690_v33, 23  ;;  %v4109_v51 = vand.u32 8388607, %v687_v42 }
 0x145   :  { %v3382_v34 = vadd.s32 4294967169, %v483_v29  ;;  %v3386_v35 = vadd.s32 4294967169, %v587_v31  ;;  %v487_v38 = vor.u32 8388608, %v486_v30  ;;  %v591_v40 = vor.u32 8388608, %v590_v32 }
 0x146   :  { %v3390_v43 = vadd.s32 4294967169, %v691_v36 }
 0x147   :  { %v489_v39 = vadd.s32 1, %v3382_v34  ;;  %v593_v41 = vadd.s32 1, %v3386_v35  ;;  %v4103_v49 = vshll.u32 %v487_v38, 8  ;;  %v4105_v50 = vshll.u32 %v591_v40, 8 }
 0x148   :  { %v4111_v52 = vadd.s32 1, %v3390_v43 }
 0x149   :  { %vm490_vm3 = vcmp.gt.s32.totalorder %v489_v39, 0  ;;  %vm594_vm4 = vcmp.gt.s32.totalorder %v593_v41, 0 }
 0x14a   :  { %v491_v44 = vsel %vm490_vm3, %v489_v39, 0  ;;  %v595_v48 = vsel %vm594_vm4, %v593_v41, 0  ;;  %vm698_vm9 = vcmp.gt.s32.totalorder %v4111_v52, 0  ;;  %vm481_vm3 = vcmp.lt.s32.totalorder %v4085_v22, 0 }
 0x14b   :  { %v492_v46 = vshrl.u32 %v491_v44, 5  ;;  %v493_v47 = vand.u32 31, %v491_v44  ;;  %v4114_v56 = vshrl.u32 %v595_v48, 5  ;;  %v597_v57 = vand.u32 31, %v595_v48 }
 0x14c   :  { %vm4226_vm4 = vcmp.le.f32.partialorder %v479_v25, 0.7853982 }
 0x14d   :  { %v494_v53 = vsub.s32 32, %v493_v47  ;;  %v496_v55 = vshll.u32 %v3921_v54, %v493_v47  ;;  %v499_v59 = vshll.u32 %v3922_v58, %v493_v47  ;;  %v502_v61 = vshll.u32 %v3923_v60, %v493_v47 }
 0x14e   :  { %v505_v63 = vshll.u32 %v3924_v62, %v493_v47  ;;  %v508_v1 = vshll.u32 %v3925_v0, %v493_v47  ;;  %vm511_vm5 = vcmp.lt.s32.totalorder %v492_v46, 1  ;;  %vm512_vm6 = vcmp.lt.s32.totalorder %v492_v46, 2 }
 0x14f   :  { %v497_v3 = vshrl.u32 %v3922_v58, %v494_v53  ;;  %v500_v7 = vshrl.u32 %v3923_v60, %v494_v53  ;;  %v503_v8 = vshrl.u32 %v3924_v62, %v494_v53  ;;  %v495_v9 = vshrl.u32 %v3921_v54, %v494_v53 }
 0x150   :  { %v506_v10 = vshrl.u32 %v3925_v0, %v494_v53  ;;  %v509_v12 = vshrl.u32 %v3926_v11, %v494_v53  ;;  %v598_v16 = vsub.s32 32, %v597_v57  ;;  %vm513_vm7 = vcmp.lt.s32.totalorder %v492_v46, 3 }
 0x151   :  { %v498_v13 = vor.u32 %v497_v3, %v496_v55  ;;  %v501_v14 = vor.u32 %v500_v7, %v499_v59  ;;  %v504_v15 = vor.u32 %v503_v8, %v502_v61  ;;  %vm514_vm8 = vcmp.lt.s32.totalorder %v492_v46, 4 }
 0x152   :  { %v507_v17 = vor.u32 %v506_v10, %v505_v63  ;;  %v510_v18 = vor.u32 %v509_v12, %v508_v1  ;;  %v600_v33 = vshll.u32 %v3921_v54, %v597_v57  ;;  %v601_v36 = vshrl.u32 %v3922_v58, %v598_v16 }
 0x153   :  { %v515_v21 = vsel %vm511_vm5, %v495_v9, %v498_v13  ;;  %v516_v26 = vsel %vm514_vm8, %v504_v15, 2102212464  ;;  %v519_v28 = vsel %vm511_vm5, %v498_v13, %v501_v14  ;;  %v523_v29 = vsel %vm511_vm5, %v501_v14, %v504_v15 }
 0x154   :  { %v517_v30 = vsel %vm513_vm7, %v501_v14, %v516_v26  ;;  %v520_v31 = vsel %vm514_vm8, %v507_v17, 920167782  ;;  %v524_v32 = vsel %vm514_vm8, %v510_v18, 1326507024  ;;  %v603_v37 = vshll.u32 %v3922_v58, %v597_v57 }
 0x155   :  { %v521_v34 = vsel %vm513_vm7, %v504_v15, %v520_v31  ;;  %v525_v35 = vsel %vm513_vm7, %v507_v17, %v524_v32  ;;  %v518_v38 = vsel %vm512_vm6, %v515_v21, %v517_v30  ;;  %v604_v41 = vshrl.u32 %v3923_v60, %v598_v16 }
 0x156   :  { %v522_v39 = vsel %vm512_vm6, %v519_v28, %v521_v34  ;;  %v526_v40 = vsel %vm512_vm6, %v523_v29, %v525_v35  ;;  %v602_v53 = vor.u32 %v601_v36, %v600_v33  ;;  %v606_v59 = vshll.u32 %v3923_v60, %v597_v57 }
 0x157   :  { %v4150_v43 = vmul.u32.u64.low %v4103_v49, %v526_v40  ;;  %v4151_v44 = vmul.u32.u64.high %v4103_v49, %v526_v40, %v4150_v43  ;;  %v4154_v47 = vmul.u32.u64.low %v4103_v49, %v522_v39  ;;  %v4155_v48 = vmul.u32.u64.high %v4103_v49, %v522_v39, %v4154_v47 }
 0x158   :  { %v605_v55 = vor.u32 %v604_v41, %v603_v37  ;;  %v607_v61 = vshrl.u32 %v3924_v62, %v598_v16  ;;  %v599_v46 = vshrl.u32 %v3921_v54, %v598_v16  ;;  %v609_v63 = vshll.u32 %v3924_v62, %v597_v57 }
 0x159   :  { %v610_v1 = vshrl.u32 %v3925_v0, %v598_v16  ;;  %v613_v3 = vshrl.u32 %v3926_v11, %v598_v16  ;;  %v534_v7 = vmul.u32 %v4103_v49, %v518_v38  ;;  %v612_v9 = vshll.u32 %v3925_v0, %v597_v57 }
 0x15a   :  { %v608_v8 = vor.u32 %v607_v61, %v606_v59  ;;  %vm615_vm10 = vcmp.lt.s32.totalorder %v4114_v56, 1  ;;  %vm536_vm11 = vc.u32 %v4151_v44, %v4154_v47  ;;  %v537_v10 = vadd.s32 1, %v4155_v48 }
 0x15b   :  { %v611_v12 = vor.u32 %v610_v1, %v609_v63  ;;  %vm616_vm12 = vcmp.lt.s32.totalorder %v4114_v56, 2  ;;  %v614_v13 = vor.u32 %v613_v3, %v612_v9  ;;  %vm617_vm13 = vcmp.lt.s32.totalorder %v4114_v56, 3 }
 0x15c   :  { %vm618_vm14 = vcmp.lt.s32.totalorder %v4114_v56, 4  ;;  %v623_v14 = vsel %vm615_vm10, %v602_v53, %v605_v55  ;;  %v538_v49 = vsel %vm536_vm11, %v537_v10, %v4155_v48  ;;  %v627_v16 = vsel %vm615_vm10, %v605_v55, %v608_v8 }
 0x15d   :  { %v620_v15 = vsel %vm618_vm14, %v608_v8, 2102212464  ;;  %v624_v57 = vsel %vm618_vm14, %v611_v12, 920167782  ;;  %v539_v17 = vadd.s32 %v538_v49, %v534_v7  ;;  %v619_v18 = vsel %vm615_vm10, %v599_v46, %v602_v53 }
 0x15e   :  { %v625_v19 = vsel %vm617_vm13, %v608_v8, %v624_v57  ;;  %v628_v21 = vsel %vm618_vm14, %v614_v13, 1326507024  ;;  %v621_v26 = vsel %vm617_vm13, %v605_v55, %v620_v15  ;;  %v699_v30 = vsel %vm698_vm9, %v4111_v52, 0 }
 0x15f   :  { %v626_v28 = vsel %vm616_vm12, %v623_v14, %v625_v19  ;;  %v629_v29 = vsel %vm617_vm13, %v611_v12, %v628_v21  ;;  %v540_v31 = vadd.s32 536870912, %v539_v17  ;;  %v622_v38 = vsel %vm616_vm12, %v619_v18, %v621_v26 }
 0x160   :  { %v630_v32 = vsel %vm616_vm12, %v627_v16, %v629_v29  ;;  %v4182_v33 = vmul.u32.u64.low %v4105_v50, %v626_v28  ;;  %v4183_v34 = vmul.u32.u64.high %v4105_v50, %v626_v28, %v4182_v33  ;;  %v701_v39 = vand.u32 31, %v699_v30 }
 0x161   :  { %v4187_v35 = vmul.u32.u64.low %v4105_v50, %v630_v32  ;;  %v4188_v36 = vmul.u32.u64.high %v4105_v50, %v630_v32, %v4187_v35  ;;  %v541_v37 = vshrl.u32 %v540_v31, 30  ;;  %v695_v52 = vor.u32 8388608, %v4109_v51 }
 0x162   :  { %v791_v40 = vand.u32 2147483647, %v4101_v45  ;;  %v641_v43 = vadd.s32 1, %v4183_v34  ;;  %v702_v48 = vsub.s32 32, %v701_v39  ;;  %v794_v53 = vand.u32 2139095040, %v4101_v45 }
 0x163   :  { %v542_v41 = vshll.u32 %v541_v37, 30  ;;  %v638_v55 = vmul.u32 %v4105_v50, %v622_v38  ;;  %vm640_vm15 = vc.u32 %v4188_v36, %v4182_v33  ;;  %v4204_v46 = vshll.u32 %v695_v52, 8 }
 0x164   :  { %v642_v56 = vsel %vm640_vm15, %v641_v43, %v4183_v34  ;;  %v705_v61 = vshrl.u32 %v3922_v58, %v702_v48  ;;  %v4208_v63 = vand.u32 8388607, %v791_v40  ;;  %v708_v1 = vshrl.u32 %v3923_v60, %v702_v48 }
 0x165   :  { %v4199_v59 = vsub.s32 %v539_v17, %v542_v41  ;;  %v643_v51 = vadd.s32 %v642_v56, %v638_v55  ;;  %v711_v3 = vshrl.u32 %v3924_v62, %v702_v48  ;;  %v795_v7 = vshrl.u32 %v794_v53, 23 }
 0x166   :  { %v565_v8 = vsub.s32 4, %v541_v37  ;;  %v4213_v10 = vshrl.u32 %v699_v30, 5  ;;  %v704_v12 = vshll.u32 %v3921_v54, %v701_v39  ;;  %v707_v14 = vshll.u32 %v3922_v58, %v701_v39 }
 0x167   :  { %v545_v50 = vsub.s32 0, %v4199_v59  ;;  %v644_v9 = vadd.s32 536870912, %v643_v51  ;;  %v710_v49 = vshll.u32 %v3923_v60, %v701_v39  ;;  %v714_v15 = vshrl.u32 %v3925_v0, %v702_v48 }
 0x168   :  { %v706_v16 = vor.u32 %v705_v61, %v704_v12  ;;  %v713_v17 = vshll.u32 %v3924_v62, %v701_v39  ;;  %v717_v18 = vshrl.u32 %v3926_v11, %v702_v48  ;;  %v709_v26 = vor.u32 %v708_v1, %v707_v14 }
 0x169   :  { %v3383_v13 = vmin.u32 %v545_v50, %v4199_v59  ;;  %v4220_v57 = vshrl.u32 %v644_v9, 30  ;;  %v712_v28 = vor.u32 %v711_v3, %v710_v49  ;;  %v716_v29 = vshll.u32 %v3925_v0, %v701_v39 }
 0x16a   :  { %v535_v30 = vadd.s32 %v4154_v47, %v4151_v44  ;;  %v715_v32 = vor.u32 %v714_v15, %v713_v17  ;;  %v3394_v34 = vadd.s32 4294967169, %v795_v7  ;;  %vm719_vm5 = vcmp.lt.s32.totalorder %v4213_v10, 1 }
 0x16b   :  { %v547_v21 = vclz %v3383_v13  ;;  %v646_v31 = vshll.u32 %v4220_v57, 30  ;;  %v718_v38 = vor.u32 %v717_v18, %v716_v29  ;;  %vm722_vm6 = vcmp.lt.s32.totalorder %v4213_v10, 4 }
 0x16c   :  { %vm720_vm7 = vcmp.lt.s32.totalorder %v4213_v10, 2  ;;  %vm721_vm8 = vcmp.lt.s32.totalorder %v4213_v10, 3  ;;  %v728_v39 = vsel %vm722_vm6, %v715_v32, 920167782  ;;  %v566_v44 = vsel %vm481_vm3, %v565_v8, %v541_v37 }
 0x16d   :  { %v3384_v35 = vadd.s32 4294967294, %v547_v21  ;;  %v4236_v25 = vsub.s32 %v643_v51, %v646_v31  ;;  %v727_v47 = vsel %vm719_vm5, %v706_v16, %v709_v26  ;;  %v729_v52 = vsel %vm721_vm8, %v712_v28, %v728_v39 }
 0x16e   :  { %v703_v53 = vshrl.u32 %v3921_v54, %v702_v48  ;;  %v731_v55 = vsel %vm719_vm5, %v709_v26, %v712_v28  ;;  %v724_v61 = vsel %vm722_vm6, %v712_v28, 2102212464  ;;  %v732_v37 = vsel %vm722_vm6, %v718_v38, 1326507024 }
 0x16f   :  { %vm3385_vm9 = vcmp.lt.s32.totalorder %v3384_v35, 0  ;;  %v649_v43 = vsub.s32 0, %v4236_v25  ;;  %v730_v3 = vsel %vm720_vm7, %v727_v47, %v729_v52  ;;  %v733_v48 = vsel %vm721_vm8, %v715_v32, %v732_v37 }
 0x170   :  { %v550_v41 = vsel %vm3385_vm9, 0, %v3384_v35  ;;  %v734_v9 = vsel %vm720_vm7, %v731_v55, %v733_v48  ;;  %v801_v12 = vadd.s32 1, %v3394_v34  ;;  %v568_v13 = vsel %vm4226_vm4, 0, %v566_v44 }
 0x171   :  { %v551_v56 = vsub.s32 32, %v550_v41  ;;  %v555_v51 = vsub.s32 4294967266, %v550_v41  ;;  %v552_v50 = vshll.u32 %v4199_v59, %v550_v41  ;;  %v3387_v1 = vmin.u32 %v649_v43, %v4236_v25 }
 0x172   :  { %v723_v59 = vsel %vm719_vm5, %v703_v53, %v706_v16  ;;  %v725_v49 = vsel %vm721_vm8, %v709_v26, %v724_v61  ;;  %v4271_v18 = vmul.u32.u64.low %v4204_v46, %v734_v9  ;;  %v4272_v21 = vmul.u32.u64.high %v4204_v46, %v734_v9, %v4271_v18 }
 0x173   :  { %v553_v7 = vshrl.u32 %v535_v30, %v551_v56  ;;  %v556_v8 = vadd.s32 127, %v555_v51  ;;  %v651_v14 = vclz %v3387_v1  ;;  %vm802_vm10 = vcmp.gt.s32.totalorder %v801_v12, 0 }
 0x174   :  { %v4275_v29 = vmul.u32.u64.low %v4204_v46, %v730_v3  ;;  %v4276_v30 = vmul.u32.u64.high %v4204_v46, %v730_v3, %v4275_v29  ;;  %v639_v16 = vadd.s32 %v4182_v33, %v4188_v36  ;;  %v799_v32 = vor.u32 8388608, %v4208_v63 }
 0x175   :  { %v554_v15 = vor.u32 %v553_v7, %v552_v50  ;;  %v557_v17 = vshll.u32 %v556_v8, 23  ;;  %v3388_v28 = vadd.s32 4294967294, %v651_v14  ;;  %v803_v26 = vsel %vm802_vm10, %v801_v12, 0 }
 0x176   :  { %v572_v34 = vadd.s32 3, %v568_v13  ;;  %v726_v35 = vsel %vm720_vm7, %v723_v59, %v725_v49  ;;  %v805_v38 = vand.u32 31, %v803_v26  ;;  %vm744_vm12 = vc.u32 %v4272_v21, %v4275_v29 }
 0x177   :  { %v558_v31 = vor.u32 4788187, %v557_v17  ;;  %vm3389_vm11 = vcmp.lt.s32.totalorder %v3388_v28, 0  ;;  %v561_v44 = vcvt.s32.f32 %v554_v15  ;;  %v669_v43 = vsub.s32 4, %v4220_v57 }
 0x178   :  { %v654_v47 = vsel %vm3389_vm11, 0, %v3388_v28  ;;  %v745_v33 = vadd.s32 1, %v4276_v30  ;;  %v742_v63 = vmul.u32 %v4204_v46, %v726_v35  ;;  %v4289_v53 = vshrl.u32 %v803_v26, 5 }
 0x179   :  { %v559_v39 = vand.u32 2147483647, %v558_v31  ;;  %v655_v52 = vsub.s32 32, %v654_v47  ;;  %v659_v41 = vsub.s32 4294967266, %v654_v47  ;;  %v806_v10 = vsub.s32 32, %v805_v38 }
 0x17a   :  { %v656_v55 = vshll.u32 %v4236_v25, %v654_v47  ;;  %v746_v61 = vsel %vm744_vm12, %v745_v33, %v4276_v30  ;;  %v808_v1 = vshll.u32 %v3921_v54, %v805_v38  ;;  %v811_v8 = vshll.u32 %v3922_v58, %v805_v38 }
 0x17b   :  { %v562_v36 = vmul.f32 %v561_v44, %v559_v39  ;;  %v657_v56 = vshrl.u32 %v639_v16, %v655_v52  ;;  %v660_v51 = vadd.s32 127, %v659_v41  ;;  %v747_v50 = vadd.s32 %v746_v61, %v742_v63 }
 0x17c   :  { %v809_v3 = vshrl.u32 %v3922_v58, %v806_v10  ;;  %v812_v46 = vshrl.u32 %v3923_v60, %v806_v10  ;;  %v814_v12 = vshll.u32 %v3923_v60, %v805_v38  ;;  %v815_v13 = vshrl.u32 %v3924_v62, %v806_v10 }
 0x17d   :  { %v563_v37 = vxor.u32 2147483648, %v562_v36  ;;  %v658_v48 = vor.u32 %v657_v56, %v656_v55  ;;  %v661_v7 = vshll.u32 %v660_v51, 23  ;;  %v748_v25 = vadd.s32 536870912, %v747_v50 }
 0x17e   :  { %v810_v49 = vor.u32 %v809_v3, %v808_v1  ;;  %v817_v15 = vshll.u32 %v3924_v62, %v805_v38  ;;  %v818_v28 = vshrl.u32 %v3925_v0, %v806_v10  ;;  %v813_v31 = vor.u32 %v812_v46, %v811_v8 }
 0x17f   :  { %v564_v9 = vsel %vm481_vm3, %v563_v37, %v562_v36  ;;  %v662_v59 = vor.u32 4788187, %v661_v7  ;;  %v665_v17 = vcvt.s32.f32 %v658_v48  ;;  %v4305_v18 = vshrl.u32 %v748_v25, 30 }
 0x180   :  { %v567_v14 = vsel %vm4226_vm4, %v4085_v22, %v564_v9  ;;  %v821_v16 = vshrl.u32 %v3926_v11, %v806_v10  ;;  %v573_v26 = vand.u32 3, %v572_v34  ;;  %vm585_vm13 = vcmp.lt.s32.totalorder %v4087_v23, 0 }
 0x181   :  { %3812 = vcosq.f32 %v567_v14  ;;  %v663_v30 = vand.u32 2147483647, %v662_v59  ;;  %v750_v19 = vshll.u32 %v4305_v18, 30  ;;  %v819_v35 = vor.u32 %v818_v28, %v817_v15 }
 0x182   :  { %3814 = vsinq.f32 %v567_v14  ;;  %vm4313_vm14 = vcmp.le.f32.partialorder %v583_v27, 0.7853982  ;;  %v816_v47 = vor.u32 %v815_v13, %v814_v12  ;;  %v820_v52 = vshll.u32 %v3925_v0, %v805_v38 }
 0x183   :  { %v666_v44 = vmul.f32 %v665_v17, %v663_v30  ;;  %v670_v41 = vsel %vm585_vm13, %v669_v43, %v4220_v57  ;;  %v4321_v34 = vsub.s32 %v747_v50, %v750_v19  ;;  %vm823_vm15 = vcmp.lt.s32.totalorder %v4289_v53, 1 }
 0x184   :  { %v839_v33 = vshll.u32 %v799_v32, 8  ;;  %v822_v63 = vor.u32 %v821_v16, %v820_v52  ;;  %vm826_vm3 = vcmp.lt.s32.totalorder %v4289_v53, 4  ;;  %v831_v27 = vsel %vm823_vm15, %v810_v49, %v813_v31 }
 0x185   :  { %v667_v36 = vxor.u32 2147483648, %v666_v44  ;;  %vm574_vm4 = vcmp.lt.s32.totalorder %v573_v26, 2  ;;  %v753_v55 = vsub.s32 0, %v4321_v34  ;;  %v807_v38 = vshrl.u32 %v3921_v54, %v806_v10 }
 0x186   :  { %vm825_vm5 = vcmp.lt.s32.totalorder %v4289_v53, 3  ;;  %v832_v57 = vsel %vm826_vm3, %v819_v35, 920167782  ;;  %vm824_vm6 = vcmp.lt.s32.totalorder %v4289_v53, 2  ;;  %v828_v43 = vsel %vm826_vm3, %v816_v47, 2102212464 }
 0x187   :  { %v668_v32 = vsel %vm585_vm13, %v667_v36, %v666_v44  ;;  %v833_v56 = vsel %vm825_vm5, %v816_v47, %v832_v57  ;;  %v3391_v51 = vmin.u32 %v753_v55, %v4321_v34  ;;  %v835_v37 = vsel %vm823_vm15, %v813_v31, %v816_v47 }
 0x188   :  { %v671_v10 = vsel %vm4313_vm14, %v4087_v23, %v668_v32  ;;  %v834_v61 = vsel %vm824_vm6, %v831_v27, %v833_v56  ;;  %v836_v50 = vsel %vm826_vm3, %v822_v63, 1326507024  ;;  %vm575_vm7 = vcmp.eq.s32.totalorder %v573_v26, 0 }
 0x189   :  { %3816 = vcosq.f32 %v671_v10  ;;  %v4349_v1 = vmul.u32.u64.low %v839_v33, %v834_v61  ;;  %v4350_v3 = vmul.u32.u64.high %v839_v33, %v834_v61, %v4349_v1  ;;  %v672_v7 = vsel %vm4313_vm14, 0, %v670_v41 }
 0x18a   :  { %3818 = vsinq.f32 %v671_v10  ;;  %v755_v8 = vclz %v3391_v51  ;;  %v827_v25 = vsel %vm823_vm15, %v807_v38, %v810_v49  ;;  %v829_v12 = vsel %vm825_vm5, %v813_v31, %v828_v43 }
 0x18b   :  { %v3813_v48 = vpop.eup %3812  ;;  %v837_v13 = vsel %vm825_vm5, %v819_v35, %v836_v50  ;;  %vm578_vm8 = vcmp.eq.s32.totalorder %v573_v26, 2  ;;  %v676_v28 = vadd.s32 3, %v672_v7  ;;  %v830_v49 = vsel %vm824_vm6, %v827_v25, %v829_v12 }
 0x18c   :  { %v3815_v46 = vpop.eup %3814  ;;  %v579_v9 = vxor.u32 2147483648, %v3813_v48  ;;  %v3392_v59 = vadd.s32 4294967294, %v755_v8  ;;  %v838_v15 = vsel %vm824_vm6, %v835_v37, %v837_v13  ;;  %v849_v31 = vadd.s32 1, %v4350_v3 }
 0x18d   :  { %v576_v14 = vxor.u32 2147483648, %v3815_v46  ;;  %v4363_v30 = vmul.u32.u64.low %v839_v33, %v838_v15  ;;  %v4364_v16 = vmul.u32.u64.high %v839_v33, %v838_v15, %v4363_v30  ;;  %vm571_vm10 = vweird.f32 %v4085_v22 }
 0x18e   :  { %v580_v17 = vsel %vm578_vm8, %v579_v9, %v3815_v46  ;;  %vm3393_vm9 = vcmp.lt.s32.totalorder %v3392_v59, 0  ;;  %v743_v47 = vadd.s32 %v4275_v29, %v4272_v21  ;;  %v677_v36 = vand.u32 3, %v676_v28 }
 0x18f   :  { %v577_v19 = vsel %vm575_vm7, %v3813_v48, %v576_v14  ;;  %v758_v39 = vsel %vm3393_vm9, 0, %v3392_v59  ;;  %v846_v63 = vmul.u32 %v839_v33, %v830_v49  ;;  %vm848_vm11 = vc.u32 %v4364_v16, %v4349_v1 }
 0x190   :  { %v581_v35 = vsel %vm574_vm4, %v577_v19, %v580_v17  ;;  %v759_v52 = vsub.s32 32, %v758_v39  ;;  %v763_v41 = vsub.s32 4294967266, %v758_v39  ;;  %v760_v27 = vshll.u32 %v4321_v34, %v758_v39 }
 0x191   :  { %v582_v44 = vsel %vm571_vm10, nan, %v581_v35  ;;  %v850_v26 = vsel %vm848_vm11, %v849_v31, %v4350_v3  ;;  %vm682_vm12 = vcmp.eq.s32.totalorder %v677_v36, 2  ;;  %vm679_vm13 = vcmp.eq.s32.totalorder %v677_v36, 0 }
 0x192   :  { %v895_v53 = vmul.f32 %v582_v44, %v582_v44  ;;  %v761_v55 = vshrl.u32 %v743_v47, %v759_v52  ;;  %v764_v38 = vadd.s32 127, %v763_v41  ;;  %v851_v32 = vadd.s32 %v850_v26, %v846_v63  ;;  %v4398_v26 = vld [vmem:[%s5178_s2 + $0x10] sm:$0xff] }
 0x193   :  { %v3817_v57 = vpop.eup %3816  ;;  %vm678_vm14 = vcmp.lt.s32.totalorder %v677_v36, 2  ;;  %vm675_vm15 = vweird.f32 %v4087_v23  ;;  %v773_v12 = vsub.s32 4, %v4305_v18  ;;  %vm689_vm3 = vcmp.lt.s32.totalorder %v4089_v24, 0 }
 0x194   :  { %v899_v43 = vadd.f32 %v895_v53, %v4085_v22  ;;  %v3819_v56 = vpop.eup %3818  ;;  %v683_v21 = vxor.u32 2147483648, %v3817_v57  ;;  %v762_v29 = vor.u32 %v761_v55, %v760_v27  ;;  %v765_v10 = vshll.u32 %v764_v38, 23 }
 0x195   :  { %v680_v51 = vxor.u32 2147483648, %v3819_v56  ;;  %v852_v33 = vadd.s32 536870912, %v851_v32  ;;  %vm688_vm4 = vcmp.le.f32.partialorder %v687_v42, 0.7853982  ;;  %v774_v30 = vsel %vm689_vm3, %v773_v12, %v4305_v18 }
 0x196   :  { %v903_v61 = vmul.f32 0.1, %v899_v43  ;;  %v684_v37 = vsel %vm682_vm12, %v683_v21, %v3819_v56  ;;  %v766_v50 = vor.u32 4788187, %v765_v10  ;;  %v769_v8 = vcvt.s32.f32 %v762_v29 }
 0x197   :  { %v681_v34 = vsel %vm679_vm13, %v3817_v57, %v680_v51  ;;  %v4379_v48 = vshrl.u32 %v852_v33, 30  ;;  %v776_v44 = vsel %vm688_vm4, 0, %v774_v30  ;;  %v847_v18 = vadd.s32 %v4349_v1, %v4364_v16 }
 0x198   :  { %v907_v3 = vmax.f32 %v903_v61, %v899_v43  ;;  %v685_v7 = vsel %vm678_vm14, %v681_v34, %v684_v37  ;;  %v767_v22 = vand.u32 2147483647, %v766_v50  ;;  %v780_v52 = vadd.s32 3, %v776_v44 }
 0x199   :  { %v686_v46 = vsel %vm675_vm15, nan, %v685_v7  ;;  %v854_v9 = vshll.u32 %v4379_v48, 30  ;;  %vm779_vm9 = vweird.f32 %v4089_v24  ;;  %v877_v34 = vsub.s32 4, %v4379_v48 }
 0x19a   :  { %911 = vst.msk [vmem:[#allocation2 + $0x10] sm:$0xff] %vm72_vm0, %v907_v3  ;;  %v770_v25 = vmul.f32 %v769_v8, %v767_v22  ;;  %v896_v13 = vmul.f32 %v686_v46, %v686_v46  ;;  %v781_v63 = vand.u32 3, %v780_v52  ;;  %vm793_vm10 = vcmp.lt.s32.totalorder %v4101_v45, 0  ;;  %v3412_v52 = vld [vmem:[%s5178_s2 + $0x18] sm:$0xff] }
 0x19b   :  { %v855_v14 = vsub.s32 %v851_v32, %v854_v9  ;;  %vm792_vm11 = vcmp.le.f32.partialorder %v791_v40, 0.7853982  ;;  %v878_v8 = vsel %vm793_vm10, %v877_v34, %v4379_v48  ;;  %vm883_vm15 = vweird.f32 %v4101_v45 }
 0x19c   :  { %v771_v59 = vxor.u32 2147483648, %v770_v25  ;;  %v900_v15 = vadd.f32 %v896_v13, %v4087_v23  ;;  %vm786_vm6 = vcmp.eq.s32.totalorder %v781_v63, 2  ;;  %vm783_vm7 = vcmp.eq.s32.totalorder %v781_v63, 0 }
 0x19d   :  { %v857_v17 = vsub.s32 0, %v855_v14  ;;  %vm782_vm8 = vcmp.lt.s32.totalorder %v781_v63, 2  ;;  %v880_v12 = vsel %vm792_vm11, 0, %v878_v8 }
 0x19e   :  { %v772_v28 = vsel %vm689_vm3, %v771_v59, %v770_v25  ;;  %v904_v19 = vmul.f32 0.1, %v900_v15  ;;  %v884_v13 = vadd.s32 3, %v880_v12 }
 0x19f   :  { %v775_v49 = vsel %vm688_vm4, %v4089_v24, %v772_v28  ;;  %v3395_v31 = vmin.u32 %v857_v17, %v855_v14 }
 0x1a0   :  { %3820 = vcosq.f32 %v775_v49  ;;  %v908_v35 = vmax.f32 %v904_v19, %v900_v15 }
 0x1a1   :  { %v920_v39 = vld [vmem:[#allocation2 + $0xf] sm:$0xff]  ;;  %3822 = vsinq.f32 %v775_v49  ;;  %v859_v47 = vclz %v3395_v31 }
 0x1a2   :  { %3599 = vmatprep.mubr.msk.f32.mxu1 %vm72_vm0, %v920_v39  ;;  %912 = vst.msk [vmem:[#allocation2 + $0x18] sm:$0xff] %vm72_vm0, %v908_v35 }
 0x1a3   :  { %v3396_v23 = vadd.s32 4294967294, %v859_v47  ;;  %v915_v47 = vld [vmem:[#allocation2 + $0xe] sm:$0xff] }
 0x1a5   :  { %vm3397_vm5 = vcmp.lt.s32.totalorder %v3396_v23, 0 }
 0x1a6   :  { %v862_v42 = vsel %vm3397_vm5, 0, %v3396_v23 }
 0x1a7   :  { %v863_v41 = vsub.s32 32, %v862_v42  ;;  %v867_v36 = vsub.s32 4294967266, %v862_v42  ;;  %v864_v53 = vshll.u32 %v855_v14, %v862_v42  ;;  %v885_v14 = vand.u32 3, %v884_v13 }
 0x1a9   :  { %v865_v27 = vshrl.u32 %v847_v18, %v863_v41  ;;  %v868_v55 = vadd.s32 127, %v867_v36  ;;  %v921_v38 = vld [vmem:[#allocation2 + $0x17] sm:$0xff]  ;;  %vm890_vm12 = vcmp.eq.s32.totalorder %v885_v14, 2  ;;  %vm887_vm13 = vcmp.eq.s32.totalorder %v885_v14, 0 }
 0x1aa   :  { %v3821_v57 = vpop.eup %3820  ;;  %3600 = vmatmul.mubr.msk.f32.vlgmr.msra.gmra.mrb[4].mxu1 %vm72_vm0, %v921_v38  ;;  %vm886_vm14 = vcmp.lt.s32.totalorder %v885_v14, 2  ;;  %v916_v23 = vld [vmem:[#allocation2 + $0x16] sm:$0xff] }
 0x1ab   :  { %v3823_v32 = vpop.eup %3822  ;;  %v787_v43 = vxor.u32 2147483648, %v3821_v57  ;;  %v866_v56 = vor.u32 %v865_v27, %v864_v53  ;;  %v869_v21 = vshll.u32 %v868_v55, 23  ;;  %3606 = vmatpush3.msra.mxu1 %v4132_v20  ;;  %v1120_v18 = vld [vmem:[#allocation2 + $0x10] sm:$0xff]  ;;  %v1121_v41 = vld [vmem:[#allocation2 + $0x18] sm:$0xff] }
 0x1ac   :  { %v784_v1 = vxor.u32 2147483648, %v3823_v32  ;;  %3613 = vmatprep.subr.mxu1 %v4398_v26  ;;  %v3417_v36 = vld [vmem:[%s5178_s2 + $0x20] sm:$0xff] }
 0x1ad   :  { %v788_v16 = vsel %vm786_vm6, %v787_v43, %v3823_v32  ;;  %v870_v29 = vor.u32 4788187, %v869_v21  ;;  %v873_v61 = vcvt.s32.f32 %v866_v56  ;;  %v1227_v27 = vld [vmem:[#allocation2 + $0x11] sm:$0xff]  ;;  %v1228_v55 = vld [vmem:[#allocation2 + $0x19] sm:$0xff] }
 0x1ae   :  { %v785_v10 = vsel %vm783_vm7, %v3821_v57, %v784_v1  ;;  %v1334_v57 = vld [vmem:[#allocation2 + $0x12] sm:$0xff]  ;;  %v1335_v32 = vld [vmem:[#allocation2 + $0x1a] sm:$0xff] }
 0x1af   :  { %v789_v51 = vsel %vm782_vm8, %v785_v10, %v788_v16  ;;  %v871_v33 = vand.u32 2147483647, %v870_v29 }
 0x1b0   :  { %v790_v37 = vsel %vm779_vm9, nan, %v789_v51 }
 0x1b1   :  { %v874_v50 = vmul.f32 %v873_v61, %v871_v33  ;;  %v897_v3 = vmul.f32 %v790_v37, %v790_v37 }
 0x1b3   :  { %v875_v20 = vxor.u32 2147483648, %v874_v50  ;;  %v901_v7 = vadd.f32 %v897_v3, %v4089_v24 }
 0x1b5   :  { %v876_v22 = vsel %vm793_vm10, %v875_v20, %v874_v50  ;;  %v905_v46 = vmul.f32 0.1, %v901_v7 }
 0x1b6   :  { %v879_v9 = vsel %vm792_vm11, %v4101_v45, %v876_v22 }
 0x1b7   :  { %3824 = vcosq.f32 %v879_v9  ;;  %v909_v25 = vmax.f32 %v905_v46, %v901_v7 }
 0x1b8   :  { %3826 = vsinq.f32 %v879_v9 }
 0x1b9   :  { %913 = vst.msk [vmem:[#allocation2 + $0x40] sm:$0xff] %vm72_vm0, %v909_v25 }
 0x1c0   :  { %v922_v24 = vld [vmem:[#allocation2 + $0x3f] sm:$0xff] }
 0x1c1   :  { %v3825_v59 = vpop.eup %3824  ;;  %3602 = vmatprep.mubr.msk.f32.mxu1 %vm72_vm0, %v922_v24  ;;  %v917_v42 = vld [vmem:[#allocation2 + $0x3e] sm:$0xff] }
 0x1c2   :  { %v3827_v15 = vpop.eup %3826  ;;  %v891_v40 = vxor.u32 2147483648, %v3825_v59  ;;  %v1122_v63 = vld [vmem:[#allocation2 + $0x40] sm:$0xff] }
 0x1c3   :  { %v888_v17 = vxor.u32 2147483648, %v3827_v15 }
 0x1c4   :  { %v892_v48 = vsel %vm890_vm12, %v891_v40, %v3827_v15 }
 0x1c5   :  { %v889_v28 = vsel %vm887_vm13, %v3825_v59, %v888_v17 }
 0x1c6   :  { %v893_v30 = vsel %vm886_vm14, %v889_v28, %v892_v48 }
 0x1c7   :  { %v894_v19 = vsel %vm883_vm15, nan, %v893_v30 }
 0x1c8   :  { %v898_v49 = vmul.f32 %v894_v19, %v894_v19 }
 0x1ca   :  { %v902_v31 = vadd.f32 %v898_v49, %v4101_v45 }
 0x1cc   :  { %v906_v35 = vmul.f32 0.1, %v902_v31 }
 0x1ce   :  { %v910_v39 = vmax.f32 %v906_v35, %v902_v31 }
 0x1d0   :  { %914 = vst.msk [vmem:[#allocation2 + $0x48] sm:$0xff] %vm72_vm0, %v910_v39 }
 0x1d7   :  { %v923_v44 = vld [vmem:[#allocation2 + $0x47] sm:$0xff] }
 0x1d8   :  { %3603 = vmatmul.mubr.msk.f32.gmra.mrb[6].mxu1 %vm72_vm0, %v923_v44  ;;  %v918_v45 = vld [vmem:[#allocation2 + $0x46] sm:$0xff] }
 0x1d9   :  { %3607 = vmatprep.mubr.msk.f32.mxu1 %vm72_vm0, %v915_v47  ;;  %v1123_v53 = vld [vmem:[#allocation2 + $0x48] sm:$0xff] }
 0x1da   :  { %v1229_v38 = vld [vmem:[#allocation2 + $0x41] sm:$0xff]  ;;  %v1337_v56 = vld [vmem:[#allocation2 + $0x4a] sm:$0xff] }
 0x1db   :  { %v1336_v43 = vld [vmem:[#allocation2 + $0x42] sm:$0xff] }
 0x1dc   :  { %3608 = vmatmul.mubr.msk.f32.vlgmr.msra.gmra.mrb[4].mxu1 %vm72_vm0, %v916_v23 }
 0x1dd   :  { %3614 = vmatpush3.msra.mxu1 %v4398_v26  ;;  %3610 = vmatprep.mubr.msk.f32.mxu1 %vm72_vm0, %v917_v42  ;;  %v1230_v26 = vld [vmem:[#allocation2 + $0x49] sm:$0xff] }
 0x1de   :  { %3621 = vmatprep.subr.mxu1 %v3412_v52 }
 0x1e0   :  { %3611 = vmatmul.mubr.msk.f32.gmra.mrb[6].mxu1 %vm72_vm0, %v918_v45 }
 0x1e1   :  { %3615 = vmatprep.mubr.msk.f32.mxu1 %vm72_vm0, %v1120_v18 }
 0x1e4   :  { %3616 = vmatmul.mubr.msk.f32.vlgmr.msra.gmra.mrb[4].mxu1 %vm72_vm0, %v1121_v41 }
 0x1e5   :  { %3622 = vmatpush3.msra.mxu1 %v3412_v52  ;;  %3618 = vmatprep.mubr.msk.f32.mxu1 %vm72_vm0, %v1122_v63  ;;  %v3422_v63 = vld [vmem:[%s5183_s7] ss:$0 sm:$0xff] }
 0x1e6   :  { %3629 = vmatprep.subr.mxu1 %v3417_v36 }
 0x1e8   :  { %3619 = vmatmul.mubr.msk.f32.gmra.mrb[6].mxu1 %vm72_vm0, %v1123_v53 }
 0x1e9   :  { %3623 = vmatprep.mubr.msk.f32.mxu1 %vm72_vm0, %v1227_v27 }
 0x1ec   :  { %3624 = vmatmul.mubr.msk.f32.vlgmr.msra.gmra.mrb[4].mxu1 %vm72_vm0, %v1228_v55 }
 0x1ed   :  { %3630 = vmatpush3.msra.mxu1 %v3417_v36  ;;  %3626 = vmatprep.mubr.msk.f32.mxu1 %vm72_vm0, %v1229_v38 }
 0x1f0   :  { %3627 = vmatmul.mubr.msk.f32.gmra.mrb[6].mxu1 %vm72_vm0, %v1230_v26  ;;  %v3423_v26 = vld [vmem:[%s5184_s8] ss:$0 sm:$0xff] }
 0x1f1   :  { %3631 = vmatprep.mubr.msk.f32.mxu1 %vm72_vm0, %v1334_v57 }
 0x1f4   :  { %3632 = vmatmul.mubr.msk.f32.vlgmr.msra.gmra.mrb[4].mxu1 %vm72_vm0, %v1335_v32 }
 0x1f5   :  { %3634 = vmatprep.mubr.msk.f32.mxu1 %vm72_vm0, %v1336_v43 }
 0x1f8   :  { %3635 = vmatmul.mubr.msk.f32.gmra.mrb[6].mxu1 %vm72_vm0, %v1337_v56 }
 0x1f9   :  { %3695 = vmatprep.mubr.msk.f32.mxu1 %vm85_vm2, %v4028_v2 }
 0x2c7   :  { %v3633_v21 = vpop.f32.mrb[4].mxu1 }
 0x2c8   :  { %v1442_v1 = vsel %vm72_vm0, %v3633_v21, 0.0  ;;  %v1456_v16 = vmul.f32 %v3633_v21, %v3633_v21  ;;  %v1418_v29 = vpop.f32.mrb[5].mxu1 }
 0x2c9   :  { %v1441_v10 = vsel %vm72_vm0, %v1418_v29, 0.0  ;;  %v1455_v51 = vmul.f32 %v1418_v29, %v1418_v29 }
 0x2ca   :  { %v1460_v33 = vsel %vm72_vm0, %v1456_v16, 0.0  ;;  %v1443_v61 = vadd.f32 %v1442_v1, %v1441_v10 }
 0x2cb   :  { %v1459_v37 = vsel %vm72_vm0, %v1455_v51, 0.0  ;;  %v3636_v50 = vpop.f32.mrb[6].mxu1 }
 0x2cc   :  { %v1461_v34 = vadd.f32 %v1460_v33, %v1459_v37  ;;  %v1428_v3 = vpop.f32.mrb[7].mxu1  ;;  %v1458_v20 = vmul.f32 %v3636_v50, %v3636_v50  ;;  %v1446_v8 = vsel %vm72_vm0, %v3636_v50, 0.0 }
 0x2cd   :  { %v1444_v7 = vsel %vm72_vm0, %v1428_v3, 0.0  ;;  %v1457_v2 = vmul.f32 %v1428_v3, %v1428_v3 }
 0x2ce   :  { %v1445_v22 = vadd.f32 %v1444_v7, %v1443_v61  ;;  %v1464_v12 = vsel %vm72_vm0, %v1458_v20, 0.0 }
 0x2cf   :  { %v1462_v46 = vsel %vm72_vm0, %v1457_v2, 0.0 }
 0x2d0   :  { %v1447_v9 = vadd.f32 %v1446_v8, %v1445_v22  ;;  %v1463_v25 = vadd.f32 %v1462_v46, %v1461_v34 }
 0x2d2   :  { %v1448_v13 = vrot.slane %v1447_v9, 4  ;;  %v1465_v14 = vadd.f32 %v1464_v12, %v1463_v25 }
 0x2d4   :  { %v1449_v24 = vadd.f32 %v1448_v13, %v1447_v9  ;;  %v1466_v59 = vrot.slane %v1465_v14, 4 }
 0x2d6   :  { %v1450_v15 = vrot.slane %v1449_v24, 2  ;;  %v1467_v40 = vadd.f32 %v1466_v59, %v1465_v14 }
 0x2d8   :  { %v1451_v17 = vadd.f32 %v1450_v15, %v1449_v24  ;;  %v1468_v48 = vrot.slane %v1467_v40, 2 }
 0x2da   :  { %v1452_v28 = vrot.slane %v1451_v17, 1  ;;  %v1469_v30 = vadd.f32 %v1468_v48, %v1467_v40 }
 0x2dc   :  { %v1453_v19 = vadd.f32 %v1452_v28, %v1451_v17  ;;  %v1470_v49 = vrot.slane %v1469_v30, 1 }
 0x2de   :  { %v1454_v31 = vmul.f32 0.03125, %v1453_v19  ;;  %v1471_v35 = vadd.f32 %v1470_v49, %v1469_v30 }
 0x2e0   :  { %v1472_v39 = vmul.f32 0.03125, %v1471_v35  ;;  %v1473_v44 = vmul.f32 %v1454_v31, %v1454_v31  ;;  %v1476_v47 = vsub.f32 %v1418_v29, %v1454_v31  ;;  %v1477_v23 = vsub.f32 %v3633_v21, %v1454_v31 }
 0x2e1   :  { %v1478_v52 = vsub.f32 %v1428_v3, %v1454_v31  ;;  %v1479_v42 = vsub.f32 %v3636_v50, %v1454_v31 }
 0x2e2   :  { %v1474_v45 = vsub.f32 %v1472_v39, %v1473_v44 }
 0x2e4   :  { %v1475_v18 = vmax.f32 %v1474_v45, 0.0 }
 0x2e6   :  { %v1480_v41 = vadd.f32 1e-05, %v1475_v18 }
 0x2e8   :  { %3828 = vrsqrt.f32 %v1480_v41 }
 0x2f2   :  { %v3829_v36 = vpop.eup %3828 }
 0x2f3   :  { %v1482_v53 = vmul.f32 %v3829_v36, %v1476_v47  ;;  %v1483_v27 = vmul.f32 %v3829_v36, %v1477_v23  ;;  %v1484_v55 = vmul.f32 %v3829_v36, %v1478_v52  ;;  %v1485_v38 = vmul.f32 %v3829_v36, %v1479_v42 }
 0x2f5   :  { %v1493_v57 = vmul.f32 %v3422_v63, %v1482_v53  ;;  %v1494_v32 = vmul.f32 %v3422_v63, %v1483_v27  ;;  %v1495_v43 = vmul.f32 %v3422_v63, %v1484_v55  ;;  %v1496_v2 = vmul.f32 %v3422_v63, %v1485_v38 }
 0x2f7   :  { %v4456_v56 = vadd.f32 %v3423_v26, %v1493_v57  ;;  %v4458_v21 = vadd.f32 %v3423_v26, %v1494_v32  ;;  %v4460_v1 = vadd.f32 %v3423_v26, %v1495_v43  ;;  %v4472_v14 = vadd.f32 %v3423_v26, %v1496_v2  ;;  %v1954_v26 = vld [vmem:[#allocation5 + $0x8] sm:$0xff]  ;;  %v4497_v57 = vld [vmem:[#allocation5] sm:$0xff] }
 0x2f8   :  { %3637 = vmatprep.subr.mxu0 %v1954_v26 }
 0x2f9   :  { %v1508_v16 = vand.u32 2147483647, %v4456_v56  ;;  %v1511_v29 = vand.u32 2139095040, %v4456_v56  ;;  %v1612_v10 = vand.u32 2147483647, %v4458_v21  ;;  %v1615_v51 = vand.u32 2139095040, %v4458_v21  ;;  %3638 = vmatpush3.msra.mxu0 %v1954_v26 }
 0x2fa   :  { %v1719_v34 = vand.u32 2139095040, %v4460_v1  ;;  %v1716_v25 = vand.u32 2147483647, %v4460_v1  ;;  %3645 = vmatprep.subr.mxu0 %v4497_v57 }
 0x2fb   :  { %v1512_v33 = vshrl.u32 %v1511_v29, 23  ;;  %v1515_v61 = vand.u32 8388607, %v1508_v16  ;;  %v1616_v37 = vshrl.u32 %v1615_v51, 23  ;;  %v1619_v50 = vand.u32 8388607, %v1612_v10 }
 0x2fc   :  { %v1720_v7 = vshrl.u32 %v1719_v34, 23  ;;  %v4480_v48 = vand.u32 8388607, %v1716_v25  ;;  %vm4614_vm15 = vcmp.le.f32.partialorder %v1508_v16, 0.7853982 }
 0x2fd   :  { %v3424_v3 = vadd.s32 4294967169, %v1512_v33  ;;  %v3428_v20 = vadd.s32 4294967169, %v1616_v37  ;;  %v1516_v22 = vor.u32 8388608, %v1515_v61  ;;  %v1620_v46 = vor.u32 8388608, %v1619_v50 }
 0x2fe   :  { %v3432_v12 = vadd.s32 4294967169, %v1720_v7 }
 0x2ff   :  { %v1518_v8 = vadd.s32 1, %v3424_v3  ;;  %v1622_v9 = vadd.s32 1, %v3428_v20  ;;  %v4474_v40 = vshll.u32 %v1516_v22, 8  ;;  %v4476_v17 = vshll.u32 %v1620_v46, 8 }
 0x300   :  { %v4482_v28 = vadd.s32 1, %v3432_v12 }
 0x301   :  { %vm1519_vm3 = vcmp.gt.s32.totalorder %v1518_v8, 0  ;;  %vm1623_vm4 = vcmp.gt.s32.totalorder %v1622_v9, 0 }
 0x302   :  { %v1520_v13 = vsel %vm1519_vm3, %v1518_v8, 0  ;;  %v1624_v15 = vsel %vm1623_vm4, %v1622_v9, 0  ;;  %vm1727_vm9 = vcmp.gt.s32.totalorder %v4482_v28, 0 }
 0x303   :  { %v1521_v24 = vshrl.u32 %v1520_v13, 5  ;;  %v1522_v59 = vand.u32 31, %v1520_v13  ;;  %v4485_v49 = vshrl.u32 %v1624_v15, 5  ;;  %v1626_v31 = vand.u32 31, %v1624_v15 }
 0x305   :  { %v1523_v30 = vsub.s32 32, %v1522_v59  ;;  %v1525_v19 = vshll.u32 %v3921_v54, %v1522_v59  ;;  %v1528_v35 = vshll.u32 %v3922_v58, %v1522_v59  ;;  %v1531_v39 = vshll.u32 %v3923_v60, %v1522_v59 }
 0x306   :  { %v1534_v44 = vshll.u32 %v3924_v62, %v1522_v59  ;;  %v1537_v47 = vshll.u32 %v3925_v0, %v1522_v59  ;;  %vm1540_vm5 = vcmp.lt.s32.totalorder %v1521_v24, 1  ;;  %vm1541_vm6 = vcmp.lt.s32.totalorder %v1521_v24, 2 }
 0x307   :  { %v1526_v23 = vshrl.u32 %v3922_v58, %v1523_v30  ;;  %v1529_v52 = vshrl.u32 %v3923_v60, %v1523_v30  ;;  %v1532_v42 = vshrl.u32 %v3924_v62, %v1523_v30  ;;  %v1524_v45 = vshrl.u32 %v3921_v54, %v1523_v30 }
 0x308   :  { %v1535_v18 = vshrl.u32 %v3925_v0, %v1523_v30  ;;  %v1538_v41 = vshrl.u32 %v3926_v11, %v1523_v30  ;;  %v1627_v27 = vsub.s32 32, %v1626_v31  ;;  %vm1542_vm7 = vcmp.lt.s32.totalorder %v1521_v24, 3 }
 0x309   :  { %v1527_v36 = vor.u32 %v1526_v23, %v1525_v19  ;;  %v1530_v63 = vor.u32 %v1529_v52, %v1528_v35  ;;  %v1533_v53 = vor.u32 %v1532_v42, %v1531_v39  ;;  %vm1543_vm8 = vcmp.lt.s32.totalorder %v1521_v24, 4 }
 0x30a   :  { %v1536_v55 = vor.u32 %v1535_v18, %v1534_v44  ;;  %v1539_v38 = vor.u32 %v1538_v41, %v1537_v47  ;;  %v1629_v50 = vshll.u32 %v3921_v54, %v1626_v31  ;;  %v1630_v20 = vshrl.u32 %v3922_v58, %v1627_v27  ;;  %v2751_v41 = vld [vmem:[%s5180_s4] sm:$0xf] }
 0x30b   :  { %v1544_v32 = vsel %vm1540_vm5, %v1524_v45, %v1527_v36  ;;  %v1545_v43 = vsel %vm1543_vm8, %v1533_v53, 2102212464  ;;  %v1548_v29 = vsel %vm1540_vm5, %v1527_v36, %v1530_v63  ;;  %v1552_v51 = vsel %vm1540_vm5, %v1530_v63, %v1533_v53  ;;  %3693 = vmatprep.subr.msk.mxu1 %vm113_vm1, %v2751_v41 }
 0x30c   :  { %v1546_v33 = vsel %vm1542_vm7, %v1530_v63, %v1545_v43  ;;  %v1549_v61 = vsel %vm1543_vm8, %v1536_v55, 920167782  ;;  %v1553_v37 = vsel %vm1543_vm8, %v1539_v38, 1326507024  ;;  %v1632_v7 = vshll.u32 %v3922_v58, %v1626_v31  ;;  %3694 = vmatpush3.msk.msra.mxu1 %vm113_vm1, %v2751_v41 }
 0x30d   :  { %v1550_v34 = vsel %vm1542_vm7, %v1533_v53, %v1549_v61  ;;  %v1554_v3 = vsel %vm1542_vm7, %v1536_v55, %v1553_v37  ;;  %v1547_v2 = vsel %vm1541_vm6, %v1544_v32, %v1546_v33  ;;  %v1633_v46 = vshrl.u32 %v3923_v60, %v1627_v27  ;;  %3696 = vmatmul.mubr.msk.f32.vlgmr.msra.gmra.mrb[8].mxu1 %vm85_vm2, %v4036_v4 }
 0x30e   :  { %v1551_v22 = vsel %vm1541_vm6, %v1548_v29, %v1550_v34  ;;  %v1555_v8 = vsel %vm1541_vm6, %v1552_v51, %v1554_v3  ;;  %v1631_v15 = vor.u32 %v1630_v20, %v1629_v50  ;;  %v1635_v19 = vshll.u32 %v3923_v60, %v1626_v31  ;;  %3698 = vmatprep.mubr.msk.f32.mxu1 %vm85_vm2, %v4041_v5 }
 0x30f   :  { %v4515_v9 = vmul.u32.u64.low %v4474_v40, %v1555_v8  ;;  %v4516_v12 = vmul.u32.u64.high %v4474_v40, %v1555_v8, %v4515_v9  ;;  %v4519_v13 = vmul.u32.u64.low %v4474_v40, %v1551_v22  ;;  %v4520_v59 = vmul.u32.u64.high %v4474_v40, %v1551_v22, %v4519_v13 }
 0x310   :  { %v1634_v30 = vor.u32 %v1633_v46, %v1632_v7  ;;  %v1636_v35 = vshrl.u32 %v3924_v62, %v1627_v27  ;;  %v1628_v24 = vshrl.u32 %v3921_v54, %v1627_v27  ;;  %v1638_v39 = vshll.u32 %v3924_v62, %v1626_v31 }
 0x311   :  { %v1639_v44 = vshrl.u32 %v3925_v0, %v1627_v27  ;;  %v1642_v47 = vshrl.u32 %v3926_v11, %v1627_v27  ;;  %v1563_v23 = vmul.u32 %v4474_v40, %v1547_v2  ;;  %v1641_v42 = vshll.u32 %v3925_v0, %v1626_v31  ;;  %3699 = vmatmul.mubr.msk.f32.gmra.mrb[10].mxu1 %vm85_vm2, %v4046_v6 }
 0x312   :  { %v1637_v52 = vor.u32 %v1636_v35, %v1635_v19  ;;  %vm1644_vm10 = vcmp.lt.s32.totalorder %v4485_v49, 1  ;;  %vm1565_vm11 = vc.u32 %v4516_v12, %v4519_v13  ;;  %v1566_v45 = vadd.s32 1, %v4520_v59 }
 0x313   :  { %v1640_v18 = vor.u32 %v1639_v44, %v1638_v39  ;;  %vm1645_vm12 = vcmp.lt.s32.totalorder %v4485_v49, 2  ;;  %v1643_v36 = vor.u32 %v1642_v47, %v1641_v42  ;;  %vm1646_vm13 = vcmp.lt.s32.totalorder %v4485_v49, 3 }
 0x314   :  { %vm1647_vm14 = vcmp.lt.s32.totalorder %v4485_v49, 4  ;;  %v1652_v40 = vsel %vm1644_vm10, %v1631_v15, %v1634_v30  ;;  %v1567_v31 = vsel %vm1565_vm11, %v1566_v45, %v4520_v59  ;;  %v1656_v27 = vsel %vm1644_vm10, %v1634_v30, %v1637_v52 }
 0x315   :  { %v1649_v63 = vsel %vm1647_vm14, %v1637_v52, 2102212464  ;;  %v1653_v53 = vsel %vm1647_vm14, %v1640_v18, 920167782  ;;  %v1568_v55 = vadd.s32 %v1567_v31, %v1563_v23  ;;  %v1648_v38 = vsel %vm1644_vm10, %v1628_v24, %v1631_v15 }
 0x316   :  { %v1654_v26 = vsel %vm1646_vm13, %v1637_v52, %v1653_v53  ;;  %v1657_v32 = vsel %vm1647_vm14, %v1643_v36, 1326507024  ;;  %v1650_v43 = vsel %vm1646_vm13, %v1634_v30, %v1649_v63  ;;  %v1728_v33 = vsel %vm1727_vm9, %v4482_v28, 0 }
 0x317   :  { %v1655_v29 = vsel %vm1645_vm12, %v1652_v40, %v1654_v26  ;;  %v1658_v51 = vsel %vm1646_vm13, %v1640_v18, %v1657_v32  ;;  %v1569_v61 = vadd.s32 536870912, %v1568_v55  ;;  %v1651_v28 = vsel %vm1645_vm12, %v1648_v38, %v1650_v43 }
 0x318   :  { %v1659_v4 = vsel %vm1645_vm12, %v1656_v27, %v1658_v51  ;;  %v4568_v37 = vmul.u32.u64.low %v4476_v17, %v1655_v29  ;;  %v4569_v50 = vmul.u32.u64.high %v4476_v17, %v1655_v29, %v4568_v37  ;;  %v1730_v7 = vand.u32 31, %v1728_v33 }
 0x319   :  { %v4573_v34 = vmul.u32.u64.low %v4476_v17, %v1659_v4  ;;  %v4574_v3 = vmul.u32.u64.high %v4476_v17, %v1659_v4, %v4573_v34  ;;  %v1570_v20 = vshrl.u32 %v1569_v61, 30  ;;  %v1724_v5 = vor.u32 8388608, %v4480_v48 }
 0x31a   :  { %v1820_v2 = vand.u32 2147483647, %v4472_v14  ;;  %v1670_v8 = vadd.s32 1, %v4569_v50  ;;  %v1731_v46 = vsub.s32 32, %v1730_v7  ;;  %v1823_v9 = vand.u32 2139095040, %v4472_v14 }
 0x31b   :  { %v1571_v22 = vshll.u32 %v1570_v20, 30  ;;  %v1667_v59 = vmul.u32 %v4476_v17, %v1651_v28  ;;  %vm1669_vm1 = vc.u32 %v4574_v3, %v4568_v37  ;;  %vm1510_vm2 = vcmp.lt.s32.totalorder %v4456_v56, 0 }
 0x31c   :  { %v1671_v15 = vsel %vm1669_vm1, %v1670_v8, %v4569_v50  ;;  %v1734_v48 = vshrl.u32 %v3922_v58, %v1731_v46  ;;  %v4592_v30 = vshll.u32 %v1724_v5, 8  ;;  %v4596_v19 = vand.u32 8388607, %v1820_v2 }
 0x31d   :  { %v4587_v49 = vsub.s32 %v1568_v55, %v1571_v22  ;;  %v1672_v6 = vadd.s32 %v1671_v15, %v1667_v59  ;;  %v1737_v35 = vshrl.u32 %v3923_v60, %v1731_v46  ;;  %v1740_v24 = vshrl.u32 %v3924_v62, %v1731_v46 }
 0x31e   :  { %v1824_v39 = vshrl.u32 %v1823_v9, 23  ;;  %v1594_v44 = vsub.s32 4, %v1570_v20  ;;  %v4601_v23 = vshrl.u32 %v1728_v33, 5  ;;  %v1733_v52 = vshll.u32 %v3921_v54, %v1730_v7 }
 0x31f   :  { %v1574_v17 = vsub.s32 0, %v4587_v49  ;;  %v1673_v47 = vadd.s32 536870912, %v1672_v6  ;;  %v1736_v45 = vshll.u32 %v3922_v58, %v1730_v7  ;;  %v1739_v18 = vshll.u32 %v3923_v60, %v1730_v7 }
 0x320   :  { %v1743_v41 = vshrl.u32 %v3925_v0, %v1731_v46  ;;  %v1735_v40 = vor.u32 %v1734_v48, %v1733_v52  ;;  %v1742_v31 = vshll.u32 %v3924_v62, %v1730_v7  ;;  %v1746_v63 = vshrl.u32 %v3926_v11, %v1731_v46 }
 0x321   :  { %v3425_v42 = vmin.u32 %v1574_v17, %v4587_v49  ;;  %v4608_v36 = vshrl.u32 %v1673_v47, 30  ;;  %v1738_v55 = vor.u32 %v1737_v35, %v1736_v45  ;;  %v1741_v38 = vor.u32 %v1740_v24, %v1739_v18 }
 0x322   :  { %v1745_v26 = vshll.u32 %v3925_v0, %v1730_v7  ;;  %v1564_v32 = vadd.s32 %v4519_v13, %v4516_v12  ;;  %v1744_v29 = vor.u32 %v1743_v41, %v1742_v31  ;;  %v3436_v51 = vadd.s32 4294967169, %v1824_v39 }
 0x323   :  { %v1576_v27 = vclz %v3425_v42  ;;  %v1675_v43 = vshll.u32 %v4608_v36, 30  ;;  %vm1748_vm3 = vcmp.lt.s32.totalorder %v4601_v23, 1  ;;  %vm1751_vm4 = vcmp.lt.s32.totalorder %v4601_v23, 4 }
 0x324   :  { %v1747_v61 = vor.u32 %v1746_v63, %v1745_v26  ;;  %vm1749_vm5 = vcmp.lt.s32.totalorder %v4601_v23, 2  ;;  %vm1750_vm6 = vcmp.lt.s32.totalorder %v4601_v23, 3  ;;  %v1757_v4 = vsel %vm1751_vm4, %v1744_v29, 920167782 }
 0x325   :  { %v3426_v33 = vadd.s32 4294967294, %v1576_v27  ;;  %v4624_v16 = vsub.s32 %v1672_v6, %v1675_v43  ;;  %v1595_v12 = vsel %vm1510_vm2, %v1594_v44, %v1570_v20  ;;  %v1756_v13 = vsel %vm1748_vm3, %v1735_v40, %v1738_v55 }
 0x326   :  { %v1758_v50 = vsel %vm1750_vm6, %v1741_v38, %v1757_v4  ;;  %v1732_v7 = vshrl.u32 %v3921_v54, %v1731_v46  ;;  %v1760_v5 = vsel %vm1748_vm3, %v1738_v55, %v1741_v38  ;;  %v1753_v9 = vsel %vm1751_vm4, %v1741_v38, 2102212464 }
 0x327   :  { %vm3427_vm7 = vcmp.lt.s32.totalorder %v3426_v33, 0  ;;  %v1678_v28 = vsub.s32 0, %v4624_v16  ;;  %v1761_v20 = vsel %vm1751_vm4, %v1747_v61, 1326507024  ;;  %v1759_v6 = vsel %vm1749_vm5, %v1756_v13, %v1758_v50 }
 0x328   :  { %v1579_v34 = vsel %vm3427_vm7, 0, %v3426_v33  ;;  %v1762_v46 = vsel %vm1750_vm6, %v1744_v29, %v1761_v20  ;;  %v1830_v24 = vadd.s32 1, %v3436_v51  ;;  %v1597_v39 = vsel %vm4614_vm15, 0, %v1595_v12 }
 0x329   :  { %v1580_v22 = vsub.s32 32, %v1579_v34  ;;  %v1584_v8 = vsub.s32 4294967266, %v1579_v34  ;;  %v1581_v59 = vshll.u32 %v4587_v49, %v1579_v34  ;;  %v3429_v15 = vmin.u32 %v1678_v28, %v4624_v16 }
 0x32a   :  { %v1763_v35 = vsel %vm1749_vm5, %v1760_v5, %v1762_v46  ;;  %v1752_v49 = vsel %vm1748_vm3, %v1732_v7, %v1735_v40  ;;  %v1754_v47 = vsel %vm1750_vm6, %v1738_v55, %v1753_v9  ;;  %vm1831_vm8 = vcmp.gt.s32.totalorder %v1830_v24, 0 }
 0x32b   :  { %v1582_v48 = vshrl.u32 %v1564_v32, %v1580_v22  ;;  %v1585_v17 = vadd.s32 127, %v1584_v8  ;;  %v1680_v44 = vclz %v3429_v15  ;;  %v1668_v40 = vadd.s32 %v4568_v37, %v4574_v3 }
 0x32c   :  { %v4659_v45 = vmul.u32.u64.low %v4592_v30, %v1763_v35  ;;  %v4660_v18 = vmul.u32.u64.high %v4592_v30, %v1763_v35, %v4659_v45  ;;  %v4663_v31 = vmul.u32.u64.low %v4592_v30, %v1759_v6  ;;  %v4664_v63 = vmul.u32.u64.high %v4592_v30, %v1759_v6, %v4663_v31 }
 0x32d   :  { %v1583_v52 = vor.u32 %v1582_v48, %v1581_v59  ;;  %v1586_v42 = vshll.u32 %v1585_v17, 23  ;;  %v3430_v41 = vadd.s32 4294967294, %v1680_v44  ;;  %v1828_v38 = vor.u32 8388608, %v4596_v19 }
 0x32e   :  { %v1832_v55 = vsel %vm1831_vm8, %v1830_v24, 0  ;;  %v1601_v26 = vadd.s32 3, %v1597_v39  ;;  %v1755_v32 = vsel %vm1749_vm5, %v1752_v49, %v1754_v47  ;;  %vm1773_vm10 = vc.u32 %v4660_v18, %v4663_v31 }
 0x32f   :  { %v1587_v27 = vor.u32 4788187, %v1586_v42  ;;  %vm3431_vm9 = vcmp.lt.s32.totalorder %v3430_v41, 0  ;;  %v1834_v43 = vand.u32 31, %v1832_v55  ;;  %v1590_v51 = vcvt.s32.f32 %v1583_v52 }
 0x330   :  { %v1683_v33 = vsel %vm3431_vm9, 0, %v3430_v41  ;;  %v1698_v12 = vsub.s32 4, %v4608_v36  ;;  %v1774_v37 = vadd.s32 1, %v4664_v63  ;;  %v1771_v19 = vmul.u32 %v4592_v30, %v1755_v32 }
 0x331   :  { %v1588_v29 = vand.u32 2147483647, %v1587_v27  ;;  %v1684_v61 = vsub.s32 32, %v1683_v33  ;;  %v1688_v4 = vsub.s32 4294967266, %v1683_v33  ;;  %v4677_v13 = vshrl.u32 %v1832_v55, 5 }
 0x332   :  { %v1835_v23 = vsub.s32 32, %v1834_v43  ;;  %v1685_v50 = vshll.u32 %v4624_v16, %v1683_v33  ;;  %v1775_v7 = vsel %vm1773_vm10, %v1774_v37, %v4664_v63  ;;  %v1837_v8 = vshll.u32 %v3921_v54, %v1834_v43 }
 0x333   :  { %v1591_v3 = vmul.f32 %v1590_v51, %v1588_v29  ;;  %v1686_v34 = vshrl.u32 %v1668_v40, %v1684_v61  ;;  %v1689_v28 = vadd.s32 127, %v1688_v4  ;;  %v1776_v22 = vadd.s32 %v1775_v7, %v1771_v19 }
 0x334   :  { %v1838_v9 = vshrl.u32 %v3922_v58, %v1835_v23  ;;  %v1840_v15 = vshll.u32 %v3922_v58, %v1834_v43  ;;  %v1841_v30 = vshrl.u32 %v3923_v60, %v1835_v23  ;;  %v1843_v46 = vshll.u32 %v3923_v60, %v1834_v43 }
 0x335   :  { %v1592_v5 = vxor.u32 2147483648, %v1591_v3  ;;  %v1687_v20 = vor.u32 %v1686_v34, %v1685_v50  ;;  %v1690_v59 = vshll.u32 %v1689_v28, 23  ;;  %v1777_v16 = vadd.s32 536870912, %v1776_v22 }
 0x336   :  { %v1844_v48 = vshrl.u32 %v3924_v62, %v1835_v23  ;;  %v1839_v24 = vor.u32 %v1838_v9, %v1837_v8  ;;  %v1846_v39 = vshll.u32 %v3924_v62, %v1834_v43  ;;  %v1847_v47 = vshrl.u32 %v3925_v0, %v1835_v23 }
 0x337   :  { %v1593_v6 = vsel %vm1510_vm2, %v1592_v5, %v1591_v3  ;;  %v1691_v35 = vor.u32 4788187, %v1690_v59  ;;  %v1694_v44 = vcvt.s32.f32 %v1687_v20  ;;  %v4693_v49 = vshrl.u32 %v1777_v16, 30 }
 0x338   :  { %v1596_v17 = vsel %vm4614_vm15, %v4456_v56, %v1593_v6  ;;  %v1842_v42 = vor.u32 %v1841_v30, %v1840_v15  ;;  %v1850_v45 = vshrl.u32 %v3926_v11, %v1835_v23  ;;  %v1602_v41 = vand.u32 3, %v1601_v26 }
 0x339   :  { %3830 = vcosq.f32 %v1596_v17  ;;  %v1692_v52 = vand.u32 2147483647, %v1691_v35  ;;  %vm1614_vm11 = vcmp.lt.s32.totalorder %v4458_v21, 0  ;;  %v1779_v53 = vshll.u32 %v4693_v49, 30 }
 0x33a   :  { %3832 = vsinq.f32 %v1596_v17  ;;  %v1848_v63 = vor.u32 %v1847_v47, %v1846_v39  ;;  %vm4701_vm12 = vcmp.le.f32.partialorder %v1612_v10, 0.7853982  ;;  %v1845_v55 = vor.u32 %v1844_v48, %v1843_v46 }
 0x33b   :  { %v1695_v40 = vmul.f32 %v1694_v44, %v1692_v52  ;;  %v1849_v32 = vshll.u32 %v3925_v0, %v1834_v43  ;;  %v1699_v29 = vsel %vm1614_vm11, %v1698_v12, %v4608_v36  ;;  %v4709_v26 = vsub.s32 %v1776_v22, %v1779_v53 }
 0x33c   :  { %vm1852_vm13 = vcmp.lt.s32.totalorder %v4677_v13, 1  ;;  %v1868_v51 = vshll.u32 %v1828_v38, 8  ;;  %vm1855_vm14 = vcmp.lt.s32.totalorder %v4677_v13, 4  ;;  %vm1603_vm1 = vcmp.lt.s32.totalorder %v1602_v41, 2 }
 0x33d   :  { %v1696_v33 = vxor.u32 2147483648, %v1695_v40  ;;  %v1851_v61 = vor.u32 %v1850_v45, %v1849_v32  ;;  %v1860_v10 = vsel %vm1852_vm13, %v1839_v24, %v1842_v42  ;;  %v1782_v4 = vsub.s32 0, %v4709_v26 }
 0x33e   :  { %v1836_v43 = vshrl.u32 %v3921_v54, %v1835_v23  ;;  %vm1854_vm2 = vcmp.lt.s32.totalorder %v4677_v13, 3  ;;  %v1861_v36 = vsel %vm1855_vm14, %v1848_v63, 920167782  ;;  %vm1853_vm15 = vcmp.lt.s32.totalorder %v4677_v13, 2 }
 0x33f   :  { %v1697_v38 = vsel %vm1614_vm11, %v1696_v33, %v1695_v40  ;;  %v1857_v12 = vsel %vm1855_vm14, %v1845_v55, 2102212464  ;;  %v1862_v37 = vsel %vm1854_vm2, %v1845_v55, %v1861_v36  ;;  %v3433_v19 = vmin.u32 %v1782_v4, %v4709_v26 }
 0x340   :  { %v1700_v3 = vsel %vm4701_vm12, %v4458_v21, %v1697_v38  ;;  %v1863_v23 = vsel %vm1853_vm15, %v1860_v10, %v1862_v37  ;;  %v1864_v50 = vsel %vm1852_vm13, %v1842_v42, %v1845_v55  ;;  %v1865_v34 = vsel %vm1855_vm14, %v1851_v61, 1326507024 }
 0x341   :  { %3834 = vcosq.f32 %v1700_v3  ;;  %v4737_v28 = vmul.u32.u64.low %v1868_v51, %v1863_v23  ;;  %v4738_v7 = vmul.u32.u64.high %v1868_v51, %v1863_v23, %v4737_v28  ;;  %vm1604_vm3 = vcmp.eq.s32.totalorder %v1602_v41, 0 }
 0x342   :  { %v1701_v22 = vsel %vm4701_vm12, 0, %v1699_v29  ;;  %3836 = vsinq.f32 %v1700_v3  ;;  %v1784_v8 = vclz %v3433_v19  ;;  %v1856_v59 = vsel %vm1852_vm13, %v1836_v43, %v1839_v24 }
 0x343   :  { %v3831_v5 = vpop.eup %3830  ;;  %v1858_v15 = vsel %vm1854_vm2, %v1842_v42, %v1857_v12  ;;  %v1866_v30 = vsel %vm1854_vm2, %v1848_v63, %v1865_v34  ;;  %vm1607_vm4 = vcmp.eq.s32.totalorder %v1602_v41, 2  ;;  %v1705_v17 = vadd.s32 3, %v1701_v22 }
 0x344   :  { %v3833_v9 = vpop.eup %3832  ;;  %v1608_v20 = vxor.u32 2147483648, %v3831_v5  ;;  %v3434_v16 = vadd.s32 4294967294, %v1784_v8  ;;  %v1867_v46 = vsel %vm1853_vm15, %v1864_v50, %v1866_v30  ;;  %v1859_v24 = vsel %vm1853_vm15, %v1856_v59, %v1858_v15 }
 0x345   :  { %v1605_v6 = vxor.u32 2147483648, %v3833_v9  ;;  %v4751_v35 = vmul.u32.u64.low %v1868_v51, %v1867_v46  ;;  %v4752_v39 = vmul.u32.u64.high %v1868_v51, %v1867_v46, %v4751_v35  ;;  %v1878_v47 = vadd.s32 1, %v4738_v7 }
 0x346   :  { %v1609_v48 = vsel %vm1607_vm4, %v1608_v20, %v3833_v9  ;;  %vm3435_vm5 = vcmp.lt.s32.totalorder %v3434_v16, 0  ;;  %vm1600_vm6 = vweird.f32 %v4456_v56  ;;  %v1772_v53 = vadd.s32 %v4663_v31, %v4660_v18 }
 0x347   :  { %v1606_v44 = vsel %vm1604_vm3, %v3831_v5, %v1605_v6  ;;  %v1787_v42 = vsel %vm3435_vm5, 0, %v3434_v16  ;;  %v1706_v40 = vand.u32 3, %v1705_v17  ;;  %v1875_v55 = vmul.u32 %v1868_v51, %v1859_v24 }
 0x348   :  { %v1610_v52 = vsel %vm1603_vm1, %v1606_v44, %v1609_v48  ;;  %v1788_v63 = vsub.s32 32, %v1787_v42  ;;  %v1792_v27 = vsub.s32 4294967266, %v1787_v42  ;;  %vm1877_vm7 = vc.u32 %v4752_v39, %v4737_v28 }
 0x349   :  { %v1611_v45 = vsel %vm1600_vm6, nan, %v1610_v52  ;;  %v1789_v32 = vshll.u32 %v4709_v26, %v1787_v42  ;;  %v1879_v41 = vsel %vm1877_vm7, %v1878_v47, %v4738_v7  ;;  %vm1711_vm8 = vcmp.eq.s32.totalorder %v1706_v40, 2 }
 0x34a   :  { %v1924_v13 = vmul.f32 %v1611_v45, %v1611_v45  ;;  %v1790_v29 = vshrl.u32 %v1772_v53, %v1788_v63  ;;  %v1793_v33 = vadd.s32 127, %v1792_v27  ;;  %v1880_v10 = vadd.s32 %v1879_v41, %v1875_v55 }
 0x34b   :  { %v3835_v61 = vpop.eup %3834  ;;  %vm1708_vm9 = vcmp.eq.s32.totalorder %v1706_v40, 0  ;;  %vm1707_vm10 = vcmp.lt.s32.totalorder %v1706_v40, 2  ;;  %vm1704_vm11 = vweird.f32 %v4458_v21  ;;  %v1802_v8 = vsub.s32 4, %v4693_v49 }
 0x34c   :  { %v1928_v4 = vadd.f32 %v1924_v13, %v4456_v56  ;;  %v3837_v43 = vpop.eup %3836  ;;  %v1712_v18 = vxor.u32 2147483648, %v3835_v61  ;;  %v1791_v31 = vor.u32 %v1790_v29, %v1789_v32  ;;  %v1794_v36 = vshll.u32 %v1793_v33, 23  ;;  %v4783_v13 = vld [vmem:[#allocation5 + $0x10] sm:$0xff] }
 0x34d   :  { %v1709_v38 = vxor.u32 2147483648, %v3837_v43  ;;  %v1881_v51 = vadd.s32 536870912, %v1880_v10  ;;  %vm1718_vm12 = vcmp.lt.s32.totalorder %v4460_v1, 0  ;;  %vm1717_vm13 = vcmp.le.f32.partialorder %v1716_v25, 0.7853982 }
 0x34e   :  { %v1932_v12 = vmul.f32 0.1, %v1928_v4  ;;  %v1713_v37 = vsel %vm1711_vm8, %v1712_v18, %v3837_v43  ;;  %v1795_v3 = vor.u32 4788187, %v1794_v36  ;;  %v1798_v34 = vcvt.s32.f32 %v1791_v31 }
 0x34f   :  { %v1710_v26 = vsel %vm1708_vm9, %v3835_v61, %v1709_v38  ;;  %v4767_v19 = vshrl.u32 %v1881_v51, 30  ;;  %v1803_v16 = vsel %vm1718_vm12, %v1802_v8, %v4693_v49  ;;  %v1876_v49 = vadd.s32 %v4737_v28, %v4752_v39 }
 0x350   :  { %v1936_v23 = vmax.f32 %v1932_v12, %v1928_v4  ;;  %v1714_v50 = vsel %vm1707_vm10, %v1710_v26, %v1713_v37  ;;  %v1796_v56 = vand.u32 2147483647, %v1795_v3  ;;  %v1805_v24 = vsel %vm1717_vm13, 0, %v1803_v16 }
 0x351   :  { %v1715_v7 = vsel %vm1704_vm11, nan, %v1714_v50  ;;  %v1883_v5 = vshll.u32 %v4767_v19, 30  ;;  %v1809_v52 = vadd.s32 3, %v1805_v24  ;;  %vm1808_vm3 = vweird.f32 %v4460_v1 }
 0x352   :  { %1940 = vst.msk [vmem:[#allocation2 + $0x10] sm:$0xff] %vm72_vm0, %v1936_v23  ;;  %v1799_v22 = vmul.f32 %v1798_v34, %v1796_v56  ;;  %v1925_v9 = vmul.f32 %v1715_v7, %v1715_v7  ;;  %v1906_v51 = vsub.s32 4, %v4767_v19  ;;  %vm1822_vm4 = vcmp.lt.s32.totalorder %v4472_v14, 0 }
 0x353   :  { %v1884_v20 = vsub.s32 %v1880_v10, %v1883_v5  ;;  %v1810_v53 = vand.u32 3, %v1809_v52  ;;  %vm1821_vm5 = vcmp.le.f32.partialorder %v1820_v2, 0.7853982  ;;  %vm1912_vm9 = vweird.f32 %v4472_v14  ;;  %v2368_v52 = vld [vmem:[#allocation5 + $0x20] sm:$0xff] }
 0x354   :  { %v1800_v59 = vxor.u32 2147483648, %v1799_v22  ;;  %v1929_v15 = vadd.f32 %v1925_v9, %v4458_v21  ;;  %v1907_v26 = vsel %vm1822_vm4, %v1906_v51, %v4767_v19 }
 0x355   :  { %v1886_v30 = vsub.s32 0, %v1884_v20  ;;  %vm1815_vm1 = vcmp.eq.s32.totalorder %v1810_v53, 2  ;;  %vm1812_vm2 = vcmp.eq.s32.totalorder %v1810_v53, 0  ;;  %vm1811_vm15 = vcmp.lt.s32.totalorder %v1810_v53, 2  ;;  %v2475_v53 = vld [vmem:[#allocation5 + $0x28] sm:$0xff] }
 0x356   :  { %v1801_v6 = vsel %vm1718_vm12, %v1800_v59, %v1799_v22  ;;  %v1933_v46 = vmul.f32 0.1, %v1929_v15  ;;  %v1909_v34 = vsel %vm1821_vm5, 0, %v1907_v26 }
 0x357   :  { %v1804_v48 = vsel %vm1717_vm13, %v4460_v1, %v1801_v6  ;;  %v3437_v17 = vmin.u32 %v1886_v30, %v1884_v20  ;;  %v1913_v7 = vadd.s32 3, %v1909_v34 }
 0x358   :  { %3838 = vcosq.f32 %v1804_v48  ;;  %v1937_v35 = vmax.f32 %v1933_v46, %v1929_v15 }
 0x359   :  { %v1949_v44 = vld [vmem:[#allocation2 + $0xe] sm:$0xff]  ;;  %3840 = vsinq.f32 %v1804_v48  ;;  %v1888_v47 = vclz %v3437_v17  ;;  %v1914_v5 = vand.u32 3, %v1913_v7 }
 0x35a   :  { %3639 = vmatprep.mubr.msk.f32.mxu0 %vm72_vm0, %v1949_v44  ;;  %1941 = vst.msk [vmem:[#allocation2 + $0x18] sm:$0xff] %vm72_vm0, %v1937_v35  ;;  %v1944_v17 = vld [vmem:[#allocation2 + $0xd] sm:$0xff]  ;;  %v2261_v44 = vld [vmem:[#allocation5 + $0x18] sm:$0xff] }
 0x35b   :  { %v3438_v21 = vadd.s32 4294967294, %v1888_v47  ;;  %vm1919_vm6 = vcmp.eq.s32.totalorder %v1914_v5, 2  ;;  %vm1916_vm7 = vcmp.eq.s32.totalorder %v1914_v5, 0  ;;  %vm1915_vm8 = vcmp.lt.s32.totalorder %v1914_v5, 2  ;;  %v2149_v47 = vld [vmem:[#allocation2 + $0xf] sm:$0xff] }
 0x35d   :  { %vm3439_vm14 = vcmp.lt.s32.totalorder %v3438_v21, 0 }
 0x35e   :  { %v1891_v25 = vsel %vm3439_vm14, 0, %v3438_v21 }
 0x35f   :  { %v1892_v42 = vsub.s32 32, %v1891_v25  ;;  %v1896_v45 = vsub.s32 4294967266, %v1891_v25  ;;  %v1893_v63 = vshll.u32 %v1884_v20, %v1891_v25 }
 0x361   :  { %v1894_v27 = vshrl.u32 %v1876_v49, %v1892_v42  ;;  %v1897_v40 = vadd.s32 127, %v1896_v45  ;;  %v1950_v55 = vld [vmem:[#allocation2 + $0x16] sm:$0xff] }
 0x362   :  { %v3839_v32 = vpop.eup %3838  ;;  %3640 = vmatmul.mubr.msk.f32.vlgmr.msra.gmra.mrb[4].mxu0 %vm72_vm0, %v1950_v55  ;;  %v1945_v35 = vld [vmem:[#allocation2 + $0x15] sm:$0xff] }
 0x363   :  { %v3841_v29 = vpop.eup %3840  ;;  %v1816_v33 = vxor.u32 2147483648, %v3839_v32  ;;  %v1895_v41 = vor.u32 %v1894_v27, %v1893_v63  ;;  %v1898_v61 = vshll.u32 %v1897_v40, 23  ;;  %3646 = vmatpush3.msra.mxu0 %v4497_v57  ;;  %v2150_v21 = vld [vmem:[#allocation2 + $0x17] sm:$0xff] }
 0x364   :  { %v1813_v10 = vxor.u32 2147483648, %v3841_v29  ;;  %3653 = vmatprep.subr.mxu0 %v4783_v13  ;;  %v2256_v42 = vld [vmem:[#allocation2 + $0x10] sm:$0xff]  ;;  %v2257_v45 = vld [vmem:[#allocation2 + $0x18] sm:$0xff] }
 0x365   :  { %v1817_v28 = vsel %vm1815_vm1, %v1816_v33, %v3841_v29  ;;  %v1899_v39 = vor.u32 4788187, %v1898_v61  ;;  %v1902_v31 = vcvt.s32.f32 %v1895_v41  ;;  %v2363_v40 = vld [vmem:[#allocation2 + $0x11] sm:$0xff]  ;;  %v2364_v55 = vld [vmem:[#allocation2 + $0x19] sm:$0xff] }
 0x366   :  { %v1814_v4 = vsel %vm1812_vm2, %v3839_v32, %v1813_v10  ;;  %v2470_v33 = vld [vmem:[#allocation2 + $0x12] sm:$0xff]  ;;  %v2471_v41 = vld [vmem:[#allocation2 + $0x1a] sm:$0xff] }
 0x367   :  { %v1818_v43 = vsel %vm1811_vm15, %v1814_v4, %v1817_v28  ;;  %v1900_v18 = vand.u32 2147483647, %v1899_v39  ;;  %v2577_v28 = vld [vmem:[#allocation2 + $0x13] sm:$0xff]  ;;  %v2578_v39 = vld [vmem:[#allocation2 + $0x1b] sm:$0xff] }
 0x368   :  { %v1819_v36 = vsel %vm1808_vm3, nan, %v1818_v43 }
 0x369   :  { %v1903_v38 = vmul.f32 %v1902_v31, %v1900_v18  ;;  %v1926_v12 = vmul.f32 %v1819_v36, %v1819_v36 }
 0x36b   :  { %v1904_v57 = vxor.u32 2147483648, %v1903_v38  ;;  %v1930_v37 = vadd.f32 %v1926_v12, %v4460_v1 }
 0x36d   :  { %v1905_v3 = vsel %vm1822_vm4, %v1904_v57, %v1903_v38  ;;  %v1934_v23 = vmul.f32 0.1, %v1930_v37 }
 0x36e   :  { %v1908_v50 = vsel %vm1821_vm5, %v4472_v14, %v1905_v3 }
 0x36f   :  { %3842 = vcosq.f32 %v1908_v50  ;;  %v1938_v56 = vmax.f32 %v1934_v23, %v1930_v37 }
 0x370   :  { %3844 = vsinq.f32 %v1908_v50 }
 0x371   :  { %1942 = vst.msk [vmem:[#allocation2 + $0x40] sm:$0xff] %vm72_vm0, %v1938_v56 }
 0x378   :  { %v1951_v1 = vld [vmem:[#allocation2 + $0x3e] sm:$0xff] }
 0x379   :  { %v3843_v22 = vpop.eup %3842  ;;  %3642 = vmatprep.mubr.msk.f32.mxu0 %vm72_vm0, %v1951_v1  ;;  %v1946_v24 = vld [vmem:[#allocation2 + $0x3d] sm:$0xff] }
 0x37a   :  { %v3845_v8 = vpop.eup %3844  ;;  %v1920_v2 = vxor.u32 2147483648, %v3843_v22  ;;  %v2151_v25 = vld [vmem:[#allocation2 + $0x3f] sm:$0xff] }
 0x37b   :  { %v1917_v9 = vxor.u32 2147483648, %v3845_v8  ;;  %v2258_v63 = vld [vmem:[#allocation2 + $0x40] sm:$0xff] }
 0x37c   :  { %v1921_v19 = vsel %vm1919_vm6, %v1920_v2, %v3845_v8 }
 0x37d   :  { %v1918_v20 = vsel %vm1916_vm7, %v3843_v22, %v1917_v9 }
 0x37e   :  { %v1922_v59 = vsel %vm1915_vm8, %v1918_v20, %v1921_v19 }
 0x37f   :  { %v1923_v15 = vsel %vm1912_vm9, nan, %v1922_v59 }
 0x380   :  { %v1927_v30 = vmul.f32 %v1923_v15, %v1923_v15 }
 0x382   :  { %v1931_v6 = vadd.f32 %v1927_v30, %v4472_v14 }
 0x384   :  { %v1935_v16 = vmul.f32 0.1, %v1931_v6 }
 0x386   :  { %v1939_v46 = vmax.f32 %v1935_v16, %v1931_v6 }
 0x388   :  { %1943 = vst.msk [vmem:[#allocation2 + $0x48] sm:$0xff] %vm72_vm0, %v1939_v46 }
 0x38f   :  { %v1952_v48 = vld [vmem:[#allocation2 + $0x46] sm:$0xff] }
 0x390   :  { %3643 = vmatmul.mubr.msk.f32.gmra.mrb[6].mxu0 %vm72_vm0, %v1952_v48  ;;  %v1947_v14 = vld [vmem:[#allocation2 + $0x45] sm:$0xff] }
 0x391   :  { %3647 = vmatprep.mubr.msk.f32.mxu0 %vm72_vm0, %v1944_v17  ;;  %v2152_v49 = vld [vmem:[#allocation2 + $0x47] sm:$0xff] }
 0x392   :  { %v2259_v27 = vld [vmem:[#allocation2 + $0x48] sm:$0xff] }
 0x393   :  { %v2365_v32 = vld [vmem:[#allocation2 + $0x41] sm:$0xff]  ;;  %v2366_v29 = vld [vmem:[#allocation2 + $0x49] sm:$0xff] }
 0x394   :  { %3648 = vmatmul.mubr.msk.f32.vlgmr.msra.gmra.mrb[4].mxu0 %vm72_vm0, %v1945_v35  ;;  %v2472_v61 = vld [vmem:[#allocation2 + $0x42] sm:$0xff]  ;;  %v2473_v10 = vld [vmem:[#allocation2 + $0x4a] sm:$0xff] }
 0x395   :  { %3654 = vmatpush3.msra.mxu0 %v4783_v13  ;;  %3650 = vmatprep.mubr.msk.f32.mxu0 %vm72_vm0, %v1946_v24  ;;  %v2582_v13 = vld [vmem:[#allocation5 + $0x30] sm:$0xff]  ;;  %v2580_v43 = vld [vmem:[#allocation2 + $0x4b] sm:$0xff] }
 0x396   :  { %3661 = vmatprep.subr.mxu0 %v2261_v44  ;;  %v2579_v4 = vld [vmem:[#allocation2 + $0x43] sm:$0xff] }
 0x398   :  { %3651 = vmatmul.mubr.msk.f32.gmra.mrb[6].mxu0 %vm72_vm0, %v1947_v14 }
 0x399   :  { %3655 = vmatprep.mubr.msk.f32.mxu0 %vm72_vm0, %v2149_v47 }
 0x39c   :  { %3656 = vmatmul.mubr.msk.f32.vlgmr.msra.gmra.mrb[4].mxu0 %vm72_vm0, %v2150_v21 }
 0x39d   :  { %3662 = vmatpush3.msra.mxu0 %v2261_v44  ;;  %3658 = vmatprep.mubr.msk.f32.mxu0 %vm72_vm0, %v2151_v25 }
 0x39e   :  { %3669 = vmatprep.subr.mxu0 %v2368_v52 }
 0x3a0   :  { %3659 = vmatmul.mubr.msk.f32.gmra.mrb[6].mxu0 %vm72_vm0, %v2152_v49 }
 0x3a1   :  { %3663 = vmatprep.mubr.msk.f32.mxu0 %vm72_vm0, %v2256_v42 }
 0x3a4   :  { %3664 = vmatmul.mubr.msk.f32.vlgmr.msra.gmra.mrb[4].mxu0 %vm72_vm0, %v2257_v45 }
 0x3a5   :  { %3670 = vmatpush3.msra.mxu0 %v2368_v52  ;;  %3666 = vmatprep.mubr.msk.f32.mxu0 %vm72_vm0, %v2258_v63 }
 0x3a6   :  { %3677 = vmatprep.subr.mxu0 %v2475_v53 }
 0x3a8   :  { %3667 = vmatmul.mubr.msk.f32.gmra.mrb[6].mxu0 %vm72_vm0, %v2259_v27 }
 0x3a9   :  { %3671 = vmatprep.mubr.msk.f32.mxu0 %vm72_vm0, %v2363_v40 }
 0x3ac   :  { %3672 = vmatmul.mubr.msk.f32.vlgmr.msra.gmra.mrb[4].mxu0 %vm72_vm0, %v2364_v55 }
 0x3ad   :  { %3678 = vmatpush3.msra.mxu0 %v2475_v53  ;;  %3674 = vmatprep.mubr.msk.f32.mxu0 %vm72_vm0, %v2365_v32 }
 0x3ae   :  { %3685 = vmatprep.subr.mxu0 %v2582_v13 }
 0x3b0   :  { %3675 = vmatmul.mubr.msk.f32.gmra.mrb[6].mxu0 %vm72_vm0, %v2366_v29 }
 0x3b1   :  { %3679 = vmatprep.mubr.msk.f32.mxu0 %vm72_vm0, %v2470_v33 }
 0x3b4   :  { %3680 = vmatmul.mubr.msk.f32.vlgmr.msra.gmra.mrb[4].mxu0 %vm72_vm0, %v2471_v41 }
 0x3b5   :  { %3686 = vmatpush3.msra.mxu0 %v2582_v13  ;;  %3682 = vmatprep.mubr.msk.f32.mxu0 %vm72_vm0, %v2472_v61 }
 0x3b8   :  { %3683 = vmatmul.mubr.msk.f32.gmra.mrb[6].mxu0 %vm72_vm0, %v2473_v10 }
 0x3b9   :  { %3687 = vmatprep.mubr.msk.f32.mxu0 %vm72_vm0, %v2577_v28 }
 0x3bc   :  { %3688 = vmatmul.mubr.msk.f32.vlgmr.msra.gmra.mrb[4].mxu0 %vm72_vm0, %v2578_v39 }
 0x3bd   :  { %3690 = vmatprep.mubr.msk.f32.mxu0 %vm72_vm0, %v2579_v4 }
 0x3c0   :  { %3691 = vmatmul.mubr.msk.f32.gmra.mrb[6].mxu0 %vm72_vm0, %v2580_v43 }
 0x3e0   :  { %v3697_v18 = vpop.f32.mrb[8].mxu1 }
 0x3e1   :  { %v2853_v31 = vsel %vm72_vm0, %v3697_v18, 0.0  ;;  %v2867_v36 = vmul.f32 %v3697_v18, %v3697_v18  ;;  %v2833_v38 = vpop.f32.mrb[9].mxu1 }
 0x3e2   :  { %v2852_v51 = vsel %vm72_vm0, %v2833_v38, 0.0  ;;  %v2866_v12 = vmul.f32 %v2833_v38, %v2833_v38 }
 0x3e3   :  { %v2871_v57 = vsel %vm72_vm0, %v2867_v36, 0.0  ;;  %v2854_v37 = vadd.f32 %v2853_v31, %v2852_v51 }
 0x3e4   :  { %v2870_v3 = vsel %vm72_vm0, %v2866_v12, 0.0  ;;  %v3700_v26 = vpop.f32.mrb[10].mxu1 }
 0x3e5   :  { %v2872_v23 = vadd.f32 %v2871_v57, %v2870_v3  ;;  %v2869_v50 = vmul.f32 %v3700_v26, %v3700_v26  ;;  %v2843_v56 = vpop.f32.mrb[11].mxu1  ;;  %v2857_v34 = vsel %vm72_vm0, %v3700_v26, 0.0 }
 0x3e6   :  { %v2855_v7 = vsel %vm72_vm0, %v2843_v56, 0.0  ;;  %v2868_v5 = vmul.f32 %v2843_v56, %v2843_v56 }
 0x3e7   :  { %v2856_v1 = vadd.f32 %v2855_v7, %v2854_v37  ;;  %v2875_v22 = vsel %vm72_vm0, %v2869_v50, 0.0 }
 0x3e8   :  { %v2873_v8 = vsel %vm72_vm0, %v2868_v5, 0.0 }
 0x3e9   :  { %v2858_v2 = vadd.f32 %v2857_v34, %v2856_v1  ;;  %v2874_v9 = vadd.f32 %v2873_v8, %v2872_v23 }
 0x3eb   :  { %v2859_v19 = vrot.slane %v2858_v2, 4  ;;  %v2876_v20 = vadd.f32 %v2875_v22, %v2874_v9 }
 0x3ed   :  { %v2860_v59 = vadd.f32 %v2859_v19, %v2858_v2  ;;  %v2877_v15 = vrot.slane %v2876_v20, 4 }
 0x3ef   :  { %v2861_v30 = vrot.slane %v2860_v59, 2  ;;  %v2878_v6 = vadd.f32 %v2877_v15, %v2876_v20 }
 0x3f1   :  { %v2862_v16 = vadd.f32 %v2861_v30, %v2860_v59  ;;  %v2879_v46 = vrot.slane %v2878_v6, 2 }
 0x3f3   :  { %v2863_v48 = vrot.slane %v2862_v16, 1  ;;  %v2880_v17 = vadd.f32 %v2879_v46, %v2878_v6 }
 0x3f5   :  { %v2864_v35 = vadd.f32 %v2863_v48, %v2862_v16  ;;  %v2881_v44 = vrot.slane %v2880_v17, 1 }
 0x3f7   :  { %v2865_v24 = vmul.f32 0.03125, %v2864_v35  ;;  %v2882_v14 = vadd.f32 %v2881_v44, %v2880_v17 }
 0x3f9   :  { %v2883_v47 = vmul.f32 0.03125, %v2882_v14  ;;  %v2884_v21 = vmul.f32 %v2865_v24, %v2865_v24  ;;  %v2887_v52 = vsub.f32 %v2833_v38, %v2865_v24  ;;  %v2888_v25 = vsub.f32 %v3697_v18, %v2865_v24 }
 0x3fa   :  { %v2889_v49 = vsub.f32 %v2843_v56, %v2865_v24  ;;  %v2890_v42 = vsub.f32 %v3700_v26, %v2865_v24 }
 0x3fb   :  { %v2885_v45 = vsub.f32 %v2883_v47, %v2884_v21  ;;  %v3475_v47 = vld [vmem:[%s5187_s11] ss:$0 sm:$0xff] }
 0x3fd   :  { %v2886_v53 = vmax.f32 %v2885_v45, 0.0  ;;  %v3468_v45 = vld [vmem:[%s5185_s9] ss:$0 sm:$0xff] }
 0x3ff   :  { %v2891_v63 = vadd.f32 1e-05, %v2886_v53  ;;  %v3476_v53 = vld [vmem:[%s5188_s12] ss:$0 sm:$0xff] }
 0x401   :  { %3846 = vrsqrt.f32 %v2891_v63 }
 0x40b   :  { %v3847_v27 = vpop.eup %3846 }
 0x40c   :  { %v2893_v40 = vmul.f32 %v3847_v27, %v2887_v52  ;;  %v2894_v55 = vmul.f32 %v3847_v27, %v2888_v25  ;;  %v2895_v13 = vmul.f32 %v3847_v27, %v2889_v49  ;;  %v2896_v32 = vmul.f32 %v3847_v27, %v2890_v42 }
 0x40e   :  { %v2904_v52 = vmul.f32 %v3475_v47, %v2893_v40  ;;  %v2905_v25 = vmul.f32 %v3475_v47, %v2894_v55  ;;  %v2906_v49 = vmul.f32 %v3475_v47, %v2895_v13  ;;  %v2907_v42 = vmul.f32 %v3475_v47, %v2896_v32 }
 0x48f   :  { %v3689_v29 = vpop.f32.mrb[4].mxu0 }
 0x490   :  { %v2685_v33 = vsel %vm72_vm0, %v3689_v29, 0.0  ;;  %v2699_v41 = vmul.f32 %v3689_v29, %v3689_v29  ;;  %v2661_v61 = vpop.f32.mrb[5].mxu0 }
 0x491   :  { %v2684_v10 = vsel %vm72_vm0, %v2661_v61, 0.0  ;;  %v2698_v28 = vmul.f32 %v2661_v61, %v2661_v61 }
 0x492   :  { %v2703_v39 = vsel %vm72_vm0, %v2699_v41, 0.0  ;;  %v2686_v4 = vadd.f32 %v2685_v33, %v2684_v10  ;;  %v3469_v41 = vld [vmem:[%s5186_s10] ss:$0 sm:$0xff]  ;;  %v2916_v10 = vadd.f32 %v3476_v53, %v2905_v25 }
 0x493   :  { %v2702_v43 = vsel %vm72_vm0, %v2698_v28, 0.0  ;;  %v3692_v18 = vpop.f32.mrb[6].mxu0  ;;  %v2917_v28 = vadd.f32 %v3476_v53, %v2906_v49 }
 0x494   :  { %v2704_v31 = vadd.f32 %v2703_v39, %v2702_v43  ;;  %v2671_v36 = vpop.f32.mrb[7].mxu0  ;;  %v2701_v38 = vmul.f32 %v3692_v18, %v3692_v18  ;;  %v2689_v37 = vsel %vm72_vm0, %v3692_v18, 0.0  ;;  %v2918_v39 = vadd.f32 %v3476_v53, %v2907_v42 }
 0x495   :  { %v2687_v51 = vsel %vm72_vm0, %v2671_v36, 0.0  ;;  %v2700_v12 = vmul.f32 %v2671_v36, %v2671_v36 }
 0x496   :  { %v2688_v57 = vadd.f32 %v2687_v51, %v2686_v4  ;;  %v2707_v50 = vsel %vm72_vm0, %v2701_v38, 0.0 }
 0x497   :  { %v2705_v3 = vsel %vm72_vm0, %v2700_v12, 0.0 }
 0x498   :  { %v2690_v26 = vadd.f32 %v2689_v37, %v2688_v57  ;;  %v2706_v23 = vadd.f32 %v2705_v3, %v2704_v31 }
 0x49a   :  { %v2691_v56 = vrot.slane %v2690_v26, 4  ;;  %v2708_v34 = vadd.f32 %v2707_v50, %v2706_v23 }
 0x49c   :  { %v2692_v7 = vadd.f32 %v2691_v56, %v2690_v26  ;;  %v2709_v5 = vrot.slane %v2708_v34, 4 }
 0x49e   :  { %v2693_v1 = vrot.slane %v2692_v7, 2  ;;  %v2710_v22 = vadd.f32 %v2709_v5, %v2708_v34 }
 0x4a0   :  { %v2694_v8 = vadd.f32 %v2693_v1, %v2692_v7  ;;  %v2711_v2 = vrot.slane %v2710_v22, 2 }
 0x4a2   :  { %v2695_v9 = vrot.slane %v2694_v8, 1  ;;  %v2712_v19 = vadd.f32 %v2711_v2, %v2710_v22 }
 0x4a4   :  { %v2696_v20 = vadd.f32 %v2695_v9, %v2694_v8  ;;  %v2713_v59 = vrot.slane %v2712_v19, 1 }
 0x4a6   :  { %v2697_v15 = vmul.f32 0.03125, %v2696_v20  ;;  %v2714_v30 = vadd.f32 %v2713_v59, %v2712_v19 }
 0x4a8   :  { %v2715_v6 = vmul.f32 0.03125, %v2714_v30  ;;  %v2716_v16 = vmul.f32 %v2697_v15, %v2697_v15  ;;  %v2719_v46 = vsub.f32 %v2661_v61, %v2697_v15  ;;  %v2720_v48 = vsub.f32 %v3689_v29, %v2697_v15 }
 0x4a9   :  { %v2721_v17 = vsub.f32 %v2671_v36, %v2697_v15  ;;  %v2722_v35 = vsub.f32 %v3692_v18, %v2697_v15  ;;  %v2915_v61 = vadd.f32 %v3476_v53, %v2904_v52 }
 0x4aa   :  { %v2717_v44 = vsub.f32 %v2715_v6, %v2716_v16 }
 0x4ac   :  { %v2718_v24 = vmax.f32 %v2717_v44, 0.0 }
 0x4ae   :  { %v2723_v14 = vadd.f32 1e-05, %v2718_v24 }
 0x4b0   :  { %3848 = vrsqrt.f32 %v2723_v14 }
 0x4ba   :  { %v3849_v21 = vpop.eup %3848 }
 0x4bb   :  { %v2725_v63 = vmul.f32 %v3849_v21, %v2719_v46  ;;  %v2726_v27 = vmul.f32 %v3849_v21, %v2720_v48  ;;  %v2727_v29 = vmul.f32 %v3849_v21, %v2721_v17  ;;  %v2728_v33 = vmul.f32 %v3849_v21, %v2722_v35 }
 0x4bd   :  { %v2736_v40 = vmul.f32 %v3468_v45, %v2725_v63  ;;  %v2737_v55 = vmul.f32 %v3468_v45, %v2726_v27  ;;  %v2738_v13 = vmul.f32 %v3468_v45, %v2727_v29  ;;  %v2739_v32 = vmul.f32 %v3468_v45, %v2728_v33 }
 0x4bf   :  { %v2747_v4 = vadd.f32 %v3469_v41, %v2736_v40  ;;  %v2748_v43 = vadd.f32 %v3469_v41, %v2737_v55  ;;  %v2749_v18 = vadd.f32 %v3469_v41, %v2738_v13  ;;  %v2750_v31 = vadd.f32 %v3469_v41, %v2739_v32 }
 0x4c1   :  { %v4855_v36 = vadd.f32 %v2915_v61, %v2747_v4  ;;  %v4857_v38 = vadd.f32 %v2916_v10, %v2748_v43  ;;  %v4859_v51 = vadd.f32 %v2917_v28, %v2749_v18  ;;  %v4861_v12 = vadd.f32 %v2918_v39, %v2750_v31 }
 0x4c3   :  { %v2923_v57 = vand.u32 2147483647, %v4855_v36  ;;  %v2926_v37 = vand.u32 2139095040, %v4855_v36  ;;  %v3027_v3 = vand.u32 2147483647, %v4857_v38  ;;  %v3030_v26 = vand.u32 2139095040, %v4857_v38 }
 0x4c4   :  { %v3134_v7 = vand.u32 2139095040, %v4859_v51  ;;  %v3131_v20 = vand.u32 2147483647, %v4859_v51  ;;  %vm2925_vm8 = vcmp.lt.s32.totalorder %v4855_v36, 0 }
 0x4c5   :  { %v2927_v23 = vshrl.u32 %v2926_v37, 23  ;;  %v2930_v50 = vand.u32 8388607, %v2923_v57  ;;  %v3031_v56 = vshrl.u32 %v3030_v26, 23  ;;  %v3034_v34 = vand.u32 8388607, %v3027_v3 }
 0x4c6   :  { %v3135_v22 = vshrl.u32 %v3134_v7, 23  ;;  %v4879_v17 = vand.u32 8388607, %v3131_v20  ;;  %vm4984_vm9 = vcmp.le.f32.partialorder %v2923_v57, 0.7853982 }
 0x4c7   :  { %v3477_v5 = vadd.s32 4294967169, %v2927_v23  ;;  %v3481_v1 = vadd.s32 4294967169, %v3031_v56  ;;  %v2931_v8 = vor.u32 8388608, %v2930_v50  ;;  %v3035_v9 = vor.u32 8388608, %v3034_v34 }
 0x4c8   :  { %v3485_v59 = vadd.s32 4294967169, %v3135_v22 }
 0x4c9   :  { %v2933_v2 = vadd.s32 1, %v3477_v5  ;;  %v3037_v19 = vadd.s32 1, %v3481_v1  ;;  %v4873_v46 = vshll.u32 %v2931_v8, 8  ;;  %v4875_v48 = vshll.u32 %v3035_v9, 8 }
 0x4ca   :  { %v4881_v35 = vadd.s32 1, %v3485_v59 }
 0x4cb   :  { %vm2934_vm10 = vcmp.gt.s32.totalorder %v2933_v2, 0  ;;  %vm3038_vm11 = vcmp.gt.s32.totalorder %v3037_v19, 0 }
 0x4cc   :  { %v2935_v15 = vsel %vm2934_vm10, %v2933_v2, 0  ;;  %v3039_v16 = vsel %vm3038_vm11, %v3037_v19, 0  ;;  %vm3142_vm2 = vcmp.gt.s32.totalorder %v4881_v35, 0 }
 0x4cd   :  { %v2936_v30 = vshrl.u32 %v2935_v15, 5  ;;  %v2937_v6 = vand.u32 31, %v2935_v15  ;;  %v4884_v14 = vshrl.u32 %v3039_v16, 5  ;;  %v3041_v47 = vand.u32 31, %v3039_v16 }
 0x4cf   :  { %v2938_v44 = vsub.s32 32, %v2937_v6  ;;  %v2940_v24 = vshll.u32 %v3921_v54, %v2937_v6  ;;  %v2943_v21 = vshll.u32 %v3922_v58, %v2937_v6  ;;  %v2946_v52 = vshll.u32 %v3923_v60, %v2937_v6 }
 0x4d0   :  { %v2949_v25 = vshll.u32 %v3924_v62, %v2937_v6  ;;  %v2952_v49 = vshll.u32 %v3925_v0, %v2937_v6  ;;  %vm2955_vm12 = vcmp.lt.s32.totalorder %v2936_v30, 1  ;;  %vm2956_vm13 = vcmp.lt.s32.totalorder %v2936_v30, 2 }
 0x4d1   :  { %v2941_v42 = vshrl.u32 %v3922_v58, %v2938_v44  ;;  %v2944_v45 = vshrl.u32 %v3923_v60, %v2938_v44  ;;  %v2947_v53 = vshrl.u32 %v3924_v62, %v2938_v44  ;;  %v2939_v63 = vshrl.u32 %v3921_v54, %v2938_v44 }
 0x4d2   :  { %v2950_v27 = vshrl.u32 %v3925_v0, %v2938_v44  ;;  %v2953_v29 = vshrl.u32 %v3926_v11, %v2938_v44  ;;  %v3042_v55 = vsub.s32 32, %v3041_v47  ;;  %vm2957_vm14 = vcmp.lt.s32.totalorder %v2936_v30, 3 }
 0x4d3   :  { %v2942_v33 = vor.u32 %v2941_v42, %v2940_v24  ;;  %v2945_v41 = vor.u32 %v2944_v45, %v2943_v21  ;;  %v2948_v40 = vor.u32 %v2947_v53, %v2946_v52  ;;  %vm2958_vm1 = vcmp.lt.s32.totalorder %v2936_v30, 4 }
 0x4d4   :  { %v2951_v13 = vor.u32 %v2950_v27, %v2949_v25  ;;  %v2954_v32 = vor.u32 %v2953_v29, %v2952_v49  ;;  %v3044_v31 = vshll.u32 %v3921_v54, %v3041_v47  ;;  %v3045_v23 = vshrl.u32 %v3922_v58, %v3042_v55 }
 0x4d5   :  { %v2959_v61 = vsel %vm2955_vm12, %v2939_v63, %v2942_v33  ;;  %v2960_v10 = vsel %vm2958_vm1, %v2948_v40, 2102212464  ;;  %v2963_v28 = vsel %vm2955_vm12, %v2942_v33, %v2945_v41  ;;  %v2967_v39 = vsel %vm2955_vm12, %v2945_v41, %v2948_v40 }
 0x4d6   :  { %v2961_v4 = vsel %vm2957_vm14, %v2945_v41, %v2960_v10  ;;  %v2964_v43 = vsel %vm2958_vm1, %v2951_v13, 920167782  ;;  %v2968_v18 = vsel %vm2958_vm1, %v2954_v32, 1326507024  ;;  %v3047_v50 = vshll.u32 %v3922_v58, %v3041_v47 }
 0x4d7   :  { %v2965_v37 = vsel %vm2957_vm14, %v2948_v40, %v2964_v43  ;;  %v2969_v26 = vsel %vm2957_vm14, %v2951_v13, %v2968_v18  ;;  %v2962_v56 = vsel %vm2956_vm13, %v2959_v61, %v2961_v4  ;;  %v3048_v5 = vshrl.u32 %v3923_v60, %v3042_v55 }
 0x4d8   :  { %v2966_v34 = vsel %vm2956_vm13, %v2963_v28, %v2965_v37  ;;  %v2970_v7 = vsel %vm2956_vm13, %v2967_v39, %v2969_v26  ;;  %v3046_v9 = vor.u32 %v3045_v23, %v3044_v31  ;;  %v3050_v59 = vshll.u32 %v3923_v60, %v3041_v47 }
 0x4d9   :  { %v4908_v1 = vmul.u32.u64.low %v4873_v46, %v2970_v7  ;;  %v4909_v22 = vmul.u32.u64.high %v4873_v46, %v2970_v7, %v4908_v1  ;;  %v4912_v8 = vmul.u32.u64.low %v4873_v46, %v2966_v34  ;;  %v4913_v2 = vmul.u32.u64.high %v4873_v46, %v2966_v34, %v4912_v8 }
 0x4da   :  { %v3049_v19 = vor.u32 %v3048_v5, %v3047_v50  ;;  %v3051_v15 = vshrl.u32 %v3924_v62, %v3042_v55  ;;  %v3043_v30 = vshrl.u32 %v3921_v54, %v3042_v55  ;;  %v3053_v6 = vshll.u32 %v3924_v62, %v3041_v47 }
 0x4db   :  { %v3054_v16 = vshrl.u32 %v3925_v0, %v3042_v55  ;;  %v3057_v44 = vshrl.u32 %v3926_v11, %v3042_v55  ;;  %v2978_v24 = vmul.u32 %v4873_v46, %v2962_v56  ;;  %v3056_v52 = vshll.u32 %v3925_v0, %v3041_v47 }
 0x4dc   :  { %v3052_v21 = vor.u32 %v3051_v15, %v3050_v59  ;;  %vm3059_vm15 = vcmp.lt.s32.totalorder %v4884_v14, 1  ;;  %vm2980_vm3 = vc.u32 %v4909_v22, %v4912_v8  ;;  %v2981_v25 = vadd.s32 1, %v4913_v2 }
 0x4dd   :  { %v3055_v49 = vor.u32 %v3054_v16, %v3053_v6  ;;  %vm3060_vm4 = vcmp.lt.s32.totalorder %v4884_v14, 2  ;;  %v3058_v42 = vor.u32 %v3057_v44, %v3056_v52  ;;  %vm3061_vm5 = vcmp.lt.s32.totalorder %v4884_v14, 3 }
 0x4de   :  { %vm3062_vm6 = vcmp.lt.s32.totalorder %v4884_v14, 4  ;;  %v3067_v45 = vsel %vm3059_vm15, %v3046_v9, %v3049_v19  ;;  %v2982_v46 = vsel %vm2980_vm3, %v2981_v25, %v4913_v2  ;;  %v3071_v63 = vsel %vm3059_vm15, %v3049_v19, %v3052_v21 }
 0x4df   :  { %v3064_v53 = vsel %vm3062_vm6, %v3052_v21, 2102212464  ;;  %v3068_v47 = vsel %vm3062_vm6, %v3055_v49, 920167782  ;;  %v2983_v27 = vadd.s32 %v2982_v46, %v2978_v24  ;;  %v3063_v29 = vsel %vm3059_vm15, %v3043_v30, %v3046_v9 }
 0x4e0   :  { %v3069_v33 = vsel %vm3061_vm5, %v3052_v21, %v3068_v47  ;;  %v3072_v41 = vsel %vm3062_vm6, %v3058_v42, 1326507024  ;;  %v3065_v40 = vsel %vm3061_vm5, %v3049_v19, %v3064_v53  ;;  %v3143_v32 = vsel %vm3142_vm2, %v4881_v35, 0 }
 0x4e1   :  { %v3070_v55 = vsel %vm3060_vm4, %v3067_v45, %v3069_v33  ;;  %v3073_v13 = vsel %vm3061_vm5, %v3055_v49, %v3072_v41  ;;  %v2984_v61 = vadd.s32 536870912, %v2983_v27  ;;  %v3066_v31 = vsel %vm3060_vm4, %v3063_v29, %v3065_v40 }
 0x4e2   :  { %v3074_v10 = vsel %vm3060_vm4, %v3071_v63, %v3073_v13  ;;  %v4940_v28 = vmul.u32.u64.low %v4875_v48, %v3070_v55  ;;  %v4941_v39 = vmul.u32.u64.high %v4875_v48, %v3070_v55, %v4940_v28  ;;  %v3145_v37 = vand.u32 31, %v3143_v32 }
 0x4e3   :  { %v4945_v4 = vmul.u32.u64.low %v4875_v48, %v3074_v10  ;;  %v4946_v43 = vmul.u32.u64.high %v4875_v48, %v3074_v10, %v4945_v4  ;;  %v2985_v18 = vshrl.u32 %v2984_v61, 30  ;;  %v3139_v35 = vor.u32 8388608, %v4879_v17 }
 0x4e4   :  { %v3235_v26 = vand.u32 2147483647, %v4861_v12  ;;  %v3085_v50 = vadd.s32 1, %v4941_v39  ;;  %v3146_v56 = vsub.s32 32, %v3145_v37  ;;  %v3238_v34 = vand.u32 2139095040, %v4861_v12 }
 0x4e5   :  { %v2986_v23 = vshll.u32 %v2985_v18, 30  ;;  %v3082_v7 = vmul.u32 %v4875_v48, %v3066_v31  ;;  %vm3084_vm7 = vc.u32 %v4946_v43, %v4940_v28  ;;  %v4962_v2 = vshll.u32 %v3139_v35, 8 }
 0x4e6   :  { %v3086_v14 = vsel %vm3084_vm7, %v3085_v50, %v4941_v39  ;;  %v3149_v1 = vshrl.u32 %v3922_v58, %v3146_v56  ;;  %v4966_v9 = vand.u32 8388607, %v3235_v26  ;;  %v3152_v19 = vshrl.u32 %v3923_v60, %v3146_v56 }
 0x4e7   :  { %v4957_v5 = vsub.s32 %v2983_v27, %v2986_v23  ;;  %v3087_v17 = vadd.s32 %v3086_v14, %v3082_v7  ;;  %v3155_v59 = vshrl.u32 %v3924_v62, %v3146_v56  ;;  %v3239_v15 = vshrl.u32 %v3238_v34, 23 }
 0x4e8   :  { %v3009_v30 = vsub.s32 4, %v2985_v18  ;;  %v4971_v16 = vshrl.u32 %v3143_v32, 5  ;;  %v3148_v44 = vshll.u32 %v3921_v54, %v3145_v37  ;;  %v3151_v21 = vshll.u32 %v3922_v58, %v3145_v37 }
 0x4e9   :  { %v2989_v48 = vsub.s32 0, %v4957_v5  ;;  %v3088_v6 = vadd.s32 536870912, %v3087_v17  ;;  %v3154_v52 = vshll.u32 %v3923_v60, %v3145_v37  ;;  %v3158_v25 = vshrl.u32 %v3925_v0, %v3146_v56 }
 0x4ea   :  { %v3150_v42 = vor.u32 %v3149_v1, %v3148_v44  ;;  %v3157_v45 = vshll.u32 %v3924_v62, %v3145_v37  ;;  %v3161_v46 = vshrl.u32 %v3926_v11, %v3146_v56  ;;  %v3153_v63 = vor.u32 %v3152_v19, %v3151_v21 }
 0x4eb   :  { %v3478_v24 = vmin.u32 %v2989_v48, %v4957_v5  ;;  %v4978_v49 = vshrl.u32 %v3088_v6, 30  ;;  %v3156_v27 = vor.u32 %v3155_v59, %v3154_v52  ;;  %v3160_v29 = vshll.u32 %v3925_v0, %v3145_v37 }
 0x4ec   :  { %v2979_v33 = vadd.s32 %v4912_v8, %v4909_v22  ;;  %v3159_v40 = vor.u32 %v3158_v25, %v3157_v45  ;;  %v3489_v55 = vadd.s32 4294967169, %v3239_v15  ;;  %vm3163_vm10 = vcmp.lt.s32.totalorder %v4971_v16, 1 }
 0x4ed   :  { %v2991_v47 = vclz %v3478_v24  ;;  %v3090_v41 = vshll.u32 %v4978_v49, 30  ;;  %v3162_v32 = vor.u32 %v3161_v46, %v3160_v29  ;;  %vm3166_vm11 = vcmp.lt.s32.totalorder %v4971_v16, 4 }
 0x4ee   :  { %vm3164_vm12 = vcmp.lt.s32.totalorder %v4971_v16, 2  ;;  %vm3165_vm13 = vcmp.lt.s32.totalorder %v4971_v16, 3  ;;  %v3172_v61 = vsel %vm3166_vm11, %v3159_v40, 920167782  ;;  %v3010_v22 = vsel %vm2925_vm8, %v3009_v30, %v2985_v18 }
 0x4ef   :  { %v3479_v13 = vadd.s32 4294967294, %v2991_v47  ;;  %v4994_v57 = vsub.s32 %v3087_v17, %v3090_v41  ;;  %v3171_v8 = vsel %vm3163_vm10, %v3150_v42, %v3153_v63  ;;  %v3173_v10 = vsel %vm3165_vm13, %v3156_v27, %v3172_v61 }
 0x4f0   :  { %v3147_v31 = vshrl.u32 %v3921_v54, %v3146_v56  ;;  %v3175_v37 = vsel %vm3163_vm10, %v3153_v63, %v3156_v27  ;;  %v3168_v50 = vsel %vm3166_vm11, %v3156_v27, 2102212464  ;;  %v3176_v18 = vsel %vm3166_vm11, %v3162_v32, 1326507024 }
 0x4f1   :  { %vm3480_vm14 = vcmp.lt.s32.totalorder %v3479_v13, 0  ;;  %v3093_v4 = vsub.s32 0, %v4994_v57  ;;  %v3174_v14 = vsel %vm3164_vm12, %v3171_v8, %v3173_v10  ;;  %v3177_v56 = vsel %vm3165_vm13, %v3159_v40, %v3176_v18 }
 0x4f2   :  { %v2994_v39 = vsel %vm3480_vm14, 0, %v3479_v13  ;;  %v3178_v48 = vsel %vm3164_vm12, %v3175_v37, %v3177_v56  ;;  %v3245_v19 = vadd.s32 1, %v3489_v55  ;;  %v3012_v59 = vsel %vm4984_vm9, 0, %v3010_v22 }
 0x4f3   :  { %v2995_v35 = vsub.s32 32, %v2994_v39  ;;  %v2999_v23 = vsub.s32 4294967266, %v2994_v39  ;;  %v2996_v34 = vshll.u32 %v4957_v5, %v2994_v39  ;;  %v3482_v7 = vmin.u32 %v3093_v4, %v4994_v57 }
 0x4f4   :  { %v3167_v5 = vsel %vm3163_vm10, %v3147_v31, %v3150_v42  ;;  %v3169_v30 = vsel %vm3165_vm13, %v3153_v63, %v3168_v50  ;;  %v5029_v24 = vmul.u32.u64.low %v4962_v2, %v3178_v48  ;;  %v5030_v21 = vmul.u32.u64.high %v4962_v2, %v3178_v48, %v5029_v24 }
 0x4f5   :  { %v2997_v17 = vshrl.u32 %v2979_v33, %v2995_v35  ;;  %v3000_v1 = vadd.s32 127, %v2999_v23  ;;  %v3095_v15 = vclz %v3482_v7  ;;  %vm3246_vm1 = vcmp.gt.s32.totalorder %v3245_v19, 0 }
 0x4f6   :  { %v5033_v25 = vmul.u32.u64.low %v4962_v2, %v3174_v14  ;;  %v5034_v45 = vmul.u32.u64.high %v4962_v2, %v3174_v14, %v5033_v25  ;;  %v3083_v42 = vadd.s32 %v4940_v28, %v4946_v43  ;;  %v3243_v47 = vor.u32 8388608, %v4966_v9 }
 0x4f7   :  { %v2998_v6 = vor.u32 %v2997_v17, %v2996_v34  ;;  %v3001_v44 = vshll.u32 %v3000_v1, 23  ;;  %v3483_v52 = vadd.s32 4294967294, %v3095_v15  ;;  %v3247_v63 = vsel %vm3246_vm1, %v3245_v19, 0 }
 0x4f8   :  { %v3016_v27 = vadd.s32 3, %v3012_v59  ;;  %v3170_v29 = vsel %vm3164_vm12, %v3167_v5, %v3169_v30  ;;  %v3249_v33 = vand.u32 31, %v3247_v63  ;;  %vm3188_vm15 = vc.u32 %v5030_v21, %v5033_v25 }
 0x4f9   :  { %v3002_v46 = vor.u32 4788187, %v3001_v44  ;;  %vm3484_vm2 = vcmp.lt.s32.totalorder %v3483_v52, 0  ;;  %v3005_v40 = vcvt.s32.f32 %v2998_v6  ;;  %v3113_v61 = vsub.s32 4, %v4978_v49 }
 0x4fa   :  { %v3098_v55 = vsel %vm3484_vm2, 0, %v3483_v52  ;;  %v3189_v28 = vadd.s32 1, %v5034_v45  ;;  %v3186_v9 = vmul.u32 %v4962_v2, %v3170_v29  ;;  %v5047_v22 = vshrl.u32 %v3247_v63, 5 }
 0x4fb   :  { %v3003_v41 = vand.u32 2147483647, %v3002_v46  ;;  %v3099_v13 = vsub.s32 32, %v3098_v55  ;;  %v3103_v32 = vsub.s32 4294967266, %v3098_v55  ;;  %v3250_v16 = vsub.s32 32, %v3249_v33 }
 0x4fc   :  { %v3100_v8 = vshll.u32 %v4994_v57, %v3098_v55  ;;  %v3190_v4 = vsel %vm3188_vm15, %v3189_v28, %v5034_v45  ;;  %v3252_v35 = vshll.u32 %v3921_v54, %v3249_v33  ;;  %v3255_v34 = vshll.u32 %v3922_v58, %v3249_v33 }
 0x4fd   :  { %v3006_v43 = vmul.f32 %v3005_v40, %v3003_v41  ;;  %v3101_v10 = vshrl.u32 %v3083_v42, %v3099_v13  ;;  %v3104_v39 = vadd.s32 127, %v3103_v32  ;;  %v3191_v37 = vadd.s32 %v3190_v4, %v3186_v9 }
 0x4fe   :  { %v3253_v23 = vshrl.u32 %v3922_v58, %v3250_v16  ;;  %v3256_v2 = vshrl.u32 %v3923_v60, %v3250_v16  ;;  %v3258_v14 = vshll.u32 %v3923_v60, %v3249_v33  ;;  %v3259_v56 = vshrl.u32 %v3924_v62, %v3250_v16 }
 0x4ff   :  { %v3007_v31 = vxor.u32 2147483648, %v3006_v43  ;;  %v3102_v50 = vor.u32 %v3101_v10, %v3100_v8  ;;  %v3105_v18 = vshll.u32 %v3104_v39, 23  ;;  %v3192_v57 = vadd.s32 536870912, %v3191_v37 }
 0x500   :  { %v3254_v48 = vor.u32 %v3253_v23, %v3252_v35  ;;  %v3261_v19 = vshll.u32 %v3924_v62, %v3249_v33  ;;  %v3262_v15 = vshrl.u32 %v3925_v0, %v3250_v16  ;;  %v3257_v30 = vor.u32 %v3256_v2, %v3255_v34 }
 0x501   :  { %v3008_v7 = vsel %vm2925_vm8, %v3007_v31, %v3006_v43  ;;  %v3106_v1 = vor.u32 4788187, %v3105_v18  ;;  %v3109_v58 = vcvt.s32.f32 %v3102_v50  ;;  %v5063_v59 = vshrl.u32 %v3192_v57, 30 }
 0x502   :  { %v3011_v17 = vsel %vm4984_vm9, %v4855_v36, %v3008_v7  ;;  %v3265_v60 = vshrl.u32 %v3926_v11, %v3250_v16  ;;  %v3017_v6 = vand.u32 3, %v3016_v27  ;;  %vm3029_vm3 = vcmp.lt.s32.totalorder %v4857_v38, 0 }
 0x503   :  { %3850 = vcosq.f32 %v3011_v17  ;;  %v3107_v5 = vand.u32 2147483647, %v3106_v1  ;;  %v3194_v53 = vshll.u32 %v5063_v59, 30  ;;  %v3263_v44 = vor.u32 %v3262_v15, %v3261_v19 }
 0x504   :  { %3852 = vsinq.f32 %v3011_v17  ;;  %vm5071_vm4 = vcmp.le.f32.partialorder %v3027_v3, 0.7853982  ;;  %v3260_v52 = vor.u32 %v3259_v56, %v3258_v14  ;;  %v3264_v45 = vshll.u32 %v3925_v0, %v3249_v33 }
 0x505   :  { %v3110_v24 = vmul.f32 %v3109_v58, %v3107_v5  ;;  %v3114_v11 = vsel %vm3029_vm3, %v3113_v61, %v4978_v49  ;;  %v5079_v46 = vsub.s32 %v3191_v37, %v3194_v53  ;;  %vm3267_vm5 = vcmp.lt.s32.totalorder %v5047_v22, 1 }
 0x506   :  { %v3283_v42 = vshll.u32 %v3243_v47, 8  ;;  %v3266_v27 = vor.u32 %v3265_v60, %v3264_v45  ;;  %vm3270_vm6 = vcmp.lt.s32.totalorder %v5047_v22, 4  ;;  %v3275_v3 = vsel %vm3267_vm5, %v3254_v48, %v3257_v30 }
 0x507   :  { %v3111_v63 = vxor.u32 2147483648, %v3110_v24  ;;  %vm3018_vm7 = vcmp.lt.s32.totalorder %v3017_v6, 2  ;;  %v3197_v29 = vsub.s32 0, %v5079_v46  ;;  %v3251_v0 = vshrl.u32 %v3921_v54, %v3250_v16 }
 0x508   :  { %vm3269_vm8 = vcmp.lt.s32.totalorder %v5047_v22, 3  ;;  %v3276_v49 = vsel %vm3270_vm6, %v3263_v44, 920167782  ;;  %vm3268_vm9 = vcmp.lt.s32.totalorder %v5047_v22, 2  ;;  %v3272_v33 = vsel %vm3270_vm6, %v3260_v52, 2102212464 }
 0x509   :  { %v3112_v47 = vsel %vm3029_vm3, %v3111_v63, %v3110_v24  ;;  %v3277_v41 = vsel %vm3269_vm8, %v3260_v52, %v3276_v49  ;;  %v3486_v40 = vmin.u32 %v3197_v29, %v5079_v46  ;;  %v3279_v13 = vsel %vm3267_vm5, %v3257_v30, %v3260_v52 }
 0x50a   :  { %v3115_v54 = vsel %vm5071_vm4, %v4857_v38, %v3112_v47  ;;  %v3278_v55 = vsel %vm3268_vm9, %v3275_v3, %v3277_v41  ;;  %v3280_v32 = vsel %vm3270_vm6, %v3266_v27, 1326507024  ;;  %vm3019_vm10 = vcmp.eq.s32.totalorder %v3017_v6, 0 }
 0x50b   :  { %3854 = vcosq.f32 %v3115_v54  ;;  %v5107_v61 = vmul.u32.u64.low %v3283_v42, %v3278_v55  ;;  %v5108_v28 = vmul.u32.u64.high %v3283_v42, %v3278_v55, %v5107_v61  ;;  %v3116_v9 = vsel %vm5071_vm4, 0, %v3114_v11 }
 0x50c   :  { %3856 = vsinq.f32 %v3115_v54  ;;  %v3199_v16 = vclz %v3486_v40  ;;  %v3271_v39 = vsel %vm3267_vm5, %v3251_v0, %v3254_v48  ;;  %v3273_v4 = vsel %vm3269_vm8, %v3257_v30, %v3272_v33 }
 0x50d   :  { %v3851_v43 = vpop.eup %3850  ;;  %v3281_v31 = vsel %vm3269_vm8, %v3263_v44, %v3280_v32  ;;  %vm3022_vm11 = vcmp.eq.s32.totalorder %v3017_v6, 2  ;;  %v3120_v18 = vadd.s32 3, %v3116_v9  ;;  %v3274_v57 = vsel %vm3268_vm9, %v3271_v39, %v3273_v4 }
 0x50e   :  { %v3853_v8 = vpop.eup %3852  ;;  %v3023_v10 = vxor.u32 2147483648, %v3851_v43  ;;  %v3487_v35 = vadd.s32 4294967294, %v3199_v16  ;;  %v3282_v23 = vsel %vm3268_vm9, %v3279_v13, %v3281_v31  ;;  %v3293_v14 = vadd.s32 1, %v5108_v28 }
 0x50f   :  { %v3020_v37 = vxor.u32 2147483648, %v3853_v8  ;;  %v5121_v34 = vmul.u32.u64.low %v3283_v42, %v3282_v23  ;;  %v5122_v2 = vmul.u32.u64.high %v3283_v42, %v3282_v23, %v5121_v34  ;;  %vm3015_vm13 = vweird.f32 %v4855_v36 }
 0x510   :  { %v3024_v50 = vsel %vm3022_vm11, %v3023_v10, %v3853_v8  ;;  %vm3488_vm12 = vcmp.lt.s32.totalorder %v3487_v35, 0  ;;  %v3187_v48 = vadd.s32 %v5033_v25, %v5030_v21  ;;  %v3121_v15 = vand.u32 3, %v3120_v18 }
 0x511   :  { %v3021_v7 = vsel %vm3019_vm10, %v3851_v43, %v3020_v37  ;;  %v3202_v17 = vsel %vm3488_vm12, 0, %v3487_v35  ;;  %v3290_v5 = vmul.u32 %v3283_v42, %v3274_v57  ;;  %vm3292_vm14 = vc.u32 %v5122_v2, %v5107_v61 }
 0x512   :  { %v3025_v56 = vsel %vm3018_vm7, %v3021_v7, %v3024_v50  ;;  %v3203_v19 = vsub.s32 32, %v3202_v17  ;;  %v3207_v58 = vsub.s32 4294967266, %v3202_v17  ;;  %v3204_v30 = vshll.u32 %v5079_v46, %v3202_v17 }
 0x513   :  { %v3026_v1 = vsel %vm3015_vm13, nan, %v3025_v56  ;;  %v3294_v6 = vsel %vm3292_vm14, %v3293_v14, %v5108_v28  ;;  %vm3126_vm1 = vcmp.eq.s32.totalorder %v3121_v15, 2  ;;  %vm3123_vm2 = vcmp.eq.s32.totalorder %v3121_v15, 0 }
 0x514   :  { %v3339_v22 = vmul.f32 %v3026_v1, %v3026_v1  ;;  %v3205_v60 = vshrl.u32 %v3187_v48, %v3203_v19  ;;  %v3208_v53 = vadd.s32 127, %v3207_v58  ;;  %v3295_v62 = vadd.s32 %v3294_v6, %v3290_v5 }
 0x515   :  { %v3855_v44 = vpop.eup %3854  ;;  %vm3122_vm15 = vcmp.lt.s32.totalorder %v3121_v15, 2  ;;  %vm3119_vm3 = vweird.f32 %v4857_v38  ;;  %v3217_v40 = vsub.s32 4, %v5063_v59  ;;  %vm3133_vm4 = vcmp.lt.s32.totalorder %v4859_v51, 0 }
 0x516   :  { %v3343_v24 = vadd.f32 %v3339_v22, %v4855_v36  ;;  %v3857_v52 = vpop.eup %3856  ;;  %v3127_v21 = vxor.u32 2147483648, %v3855_v44  ;;  %v3206_v25 = vor.u32 %v3205_v60, %v3204_v30  ;;  %v3209_v45 = vshll.u32 %v3208_v53, 23 }
 0x517   :  { %v3124_v11 = vxor.u32 2147483648, %v3857_v52  ;;  %v3296_v42 = vadd.s32 536870912, %v3295_v62  ;;  %vm3132_vm5 = vcmp.le.f32.partialorder %v3131_v20, 0.7853982  ;;  %v3218_v16 = vsel %vm3133_vm4, %v3217_v40, %v5063_v59 }
 0x518   :  { %v3347_v63 = vmul.f32 0.1, %v3343_v24  ;;  %v3128_v27 = vsel %vm3126_vm1, %v3127_v21, %v3857_v52  ;;  %v3210_v3 = vor.u32 4788187, %v3209_v45  ;;  %v3213_v47 = vcvt.s32.f32 %v3206_v25 }
 0x519   :  { %v3125_v46 = vsel %vm3123_vm2, %v3855_v44, %v3124_v11  ;;  %v5137_v29 = vshrl.u32 %v3296_v42, 30  ;;  %v3220_v31 = vsel %vm3132_vm5, 0, %v3218_v16  ;;  %v3291_v59 = vadd.s32 %v5107_v61, %v5122_v2 }
 0x51a   :  { %v3351_v0 = vmax.f32 %v3347_v63, %v3343_v24  ;;  %v3129_v49 = vsel %vm3122_vm15, %v3125_v46, %v3128_v27  ;;  %v3211_v36 = vand.u32 2147483647, %v3210_v3  ;;  %v3224_v35 = vadd.s32 3, %v3220_v31 }
 0x51b   :  { %v3130_v33 = vsel %vm3119_vm3, nan, %v3129_v49  ;;  %v3298_v41 = vshll.u32 %v5137_v29, 30  ;;  %vm3223_vm10 = vweird.f32 %v4859_v51  ;;  %v3321_v53 = vsub.s32 4, %v5137_v29 }
 0x51c   :  { %3355 = vst.msk [vmem:[%s5189_s13] sm:$0xff] %vm72_vm0, %v3351_v0  ;;  %v3214_v54 = vmul.f32 %v3213_v47, %v3211_v36  ;;  %v3340_v55 = vmul.f32 %v3130_v33, %v3130_v33  ;;  %v3225_v18 = vand.u32 3, %v3224_v35  ;;  %vm3237_vm11 = vcmp.lt.s32.totalorder %v4861_v12, 0 }
 0x51d   :  { %v3299_v13 = vsub.s32 %v3295_v62, %v3298_v41  ;;  %vm3236_vm12 = vcmp.le.f32.partialorder %v3235_v26, 0.7853982  ;;  %v3322_v52 = vsel %vm3237_vm11, %v3321_v53, %v5137_v29  ;;  %vm3327_vm2 = vweird.f32 %v4861_v12 }
 0x51e   :  { %v3215_v32 = vxor.u32 2147483648, %v3214_v54  ;;  %v3344_v28 = vadd.f32 %v3340_v55, %v4857_v38  ;;  %vm3230_vm7 = vcmp.eq.s32.totalorder %v3225_v18, 2  ;;  %vm3227_vm8 = vcmp.eq.s32.totalorder %v3225_v18, 0 }
 0x51f   :  { %v3301_v43 = vsub.s32 0, %v3299_v13  ;;  %vm3226_vm9 = vcmp.lt.s32.totalorder %v3225_v18, 2  ;;  %v3324_v11 = vsel %vm3236_vm12, 0, %v3322_v52 }
 0x520   :  { %v3216_v9 = vsel %vm3133_vm4, %v3215_v32, %v3214_v54  ;;  %v3348_v8 = vmul.f32 0.1, %v3344_v28 }
 0x521   :  { %v3219_v10 = vsel %vm3132_vm5, %v4859_v51, %v3216_v9  ;;  %v3490_v39 = vmin.u32 %v3301_v43, %v3299_v13 }
 0x522   :  { %3858 = vcosq.f32 %v3219_v10  ;;  %v3352_v4 = vmax.f32 %v3348_v8, %v3344_v28 }
 0x523   :  { %3860 = vsinq.f32 %v3219_v10  ;;  %v3303_v37 = vclz %v3490_v39 }
 0x524   :  { %3356 = vst.msk [vmem:[%s5189_s13 + $0x8] sm:$0xff] %vm72_vm0, %v3352_v4 }
 0x525   :  { %v3491_v38 = vadd.s32 4294967294, %v3303_v37 }
 0x527   :  { %vm3492_vm6 = vcmp.lt.s32.totalorder %v3491_v38, 0 }
 0x528   :  { %v3306_v20 = vsel %vm3492_vm6, 0, %v3491_v38 }
 0x529   :  { %v3307_v23 = vsub.s32 32, %v3306_v20  ;;  %v3311_v50 = vsub.s32 4294967266, %v3306_v20  ;;  %v3308_v34 = vshll.u32 %v3299_v13, %v3306_v20 }
 0x52b   :  { %v3309_v7 = vshrl.u32 %v3291_v59, %v3307_v23  ;;  %v3312_v57 = vadd.s32 127, %v3311_v50 }
 0x52c   :  { %v3859_v14 = vpop.eup %3858 }
 0x52d   :  { %v3861_v56 = vpop.eup %3860  ;;  %v3231_v17 = vxor.u32 2147483648, %v3859_v14  ;;  %v3310_v1 = vor.u32 %v3309_v7, %v3308_v34  ;;  %v3313_v48 = vshll.u32 %v3312_v57, 23 }
 0x52e   :  { %v3228_v19 = vxor.u32 2147483648, %v3861_v56 }
 0x52f   :  { %v3232_v58 = vsel %vm3230_vm7, %v3231_v17, %v3861_v56  ;;  %v3314_v15 = vor.u32 4788187, %v3313_v48  ;;  %v3317_v22 = vcvt.s32.f32 %v3310_v1 }
 0x530   :  { %v3229_v5 = vsel %vm3227_vm8, %v3859_v14, %v3228_v19 }
 0x531   :  { %v3233_v61 = vsel %vm3226_vm9, %v3229_v5, %v3232_v58  ;;  %v3315_v2 = vand.u32 2147483647, %v3314_v15 }
 0x532   :  { %v3234_v30 = vsel %vm3223_vm10, nan, %v3233_v61 }
 0x533   :  { %v3318_v60 = vmul.f32 %v3317_v22, %v3315_v2  ;;  %v3341_v6 = vmul.f32 %v3234_v30, %v3234_v30 }
 0x535   :  { %v3319_v44 = vxor.u32 2147483648, %v3318_v60  ;;  %v3345_v62 = vadd.f32 %v3341_v6, %v4859_v51  ;;  %v3328_v51 = vadd.s32 3, %v3324_v11 }
 0x537   :  { %v3320_v24 = vsel %vm3237_vm11, %v3319_v44, %v3318_v60  ;;  %v3349_v21 = vmul.f32 0.1, %v3345_v62  ;;  %v3329_v42 = vand.u32 3, %v3328_v51 }
 0x538   :  { %v3323_v25 = vsel %vm3236_vm12, %v4861_v12, %v3320_v24 }
 0x539   :  { %3862 = vcosq.f32 %v3323_v25  ;;  %v3353_v45 = vmax.f32 %v3349_v21, %v3345_v62  ;;  %vm3334_vm13 = vcmp.eq.s32.totalorder %v3329_v42, 2  ;;  %vm3331_vm14 = vcmp.eq.s32.totalorder %v3329_v42, 0 }
 0x53a   :  { %3864 = vsinq.f32 %v3323_v25  ;;  %vm3330_vm1 = vcmp.lt.s32.totalorder %v3329_v42, 2 }
 0x53b   :  { %3357 = vst.msk [vmem:[%s5189_s13 + $0x10] sm:$0xff] %vm72_vm0, %v3353_v45 }
 0x543   :  { %v3863_v63 = vpop.eup %3862 }
 0x544   :  { %v3865_v27 = vpop.eup %3864  ;;  %v3335_v26 = vxor.u32 2147483648, %v3863_v63 }
 0x545   :  { %v3332_v3 = vxor.u32 2147483648, %v3865_v27 }
 0x546   :  { %v3336_v46 = vsel %vm3334_vm13, %v3335_v26, %v3865_v27 }
 0x547   :  { %v3333_v29 = vsel %vm3331_vm14, %v3863_v63, %v3332_v3 }
 0x548   :  { %v3337_v0 = vsel %vm3330_vm1, %v3333_v29, %v3336_v46 }
 0x549   :  { %v3338_v49 = vsel %vm3327_vm2, nan, %v3337_v0 }
 0x54a   :  { %v3342_v36 = vmul.f32 %v3338_v49, %v3338_v49 }
 0x54c   :  { %v3346_v47 = vadd.f32 %v3342_v36, %v4861_v12 }
 0x54e   :  { %v3350_v33 = vmul.f32 0.1, %v3346_v47 }
 0x550   :  { %v3354_v41 = vmax.f32 %v3350_v33, %v3346_v47 }
 0x552   :  { %3358 = vst.msk [vmem:[%s5189_s13 + $0x18] sm:$0xff] %vm72_vm0, %v3354_v41 }
 0x553   :  { %3363 = vsyncpa [#allocation4], 1 }
 0x554   :  { %3364 = vsyncpa [#allocation6], 1 }

</bundles_post_ra>
